<compile_context>
chip_gen: v5e
topology: v5e:2x2
jax: 0.10.0
libtpu: 0.0.40
codegen_flags: <defaults>
</compile_context>

<pallas_src>
import jax
import jax.numpy as jnp
from jax.experimental import pallas as pl
from jax.experimental.pallas import tpu as pltpu

EPS = 1e-5
LANE = 128
VMEM_LIMIT = 48 * 1024 * 1024  # < v7x 64 MiB physical, > default scoped limits


def _round_up(x, m):
    return (x + m - 1) // m * m


# --------------------------- in-kernel helpers ---------------------------
def _pad_hw(img):
    """Zero-pad a (H, W, C) VMEM array to (H+2, W+2, C) (conv 'same' halo)."""
    H, W, C = img.shape
    zc = jnp.zeros((H, 1, C), img.dtype)
    img = jnp.concatenate([zc, img, zc], axis=1)
    zr = jnp.zeros((1, W + 2, C), img.dtype)
    return jnp.concatenate([zr, img, zr], axis=0)


def _conv3x3_taps(img_p, w_refs, H, W, Cp_out):
    """3x3 'same' conv as 9 shifted-slice MXU matmuls (im2col stays in VMEM).

    img_p : (H+2, W+2, Cp_in) already padded + cast to the matmul dtype.
    w_refs: list of refs of shape (9, Cp_in, Cp_out).
    Returns one f32 (H*W, Cp_out) accumulator per weight ref.
    """
    Cp_in = img_p.shape[-1]
    accs = [jnp.zeros((H * W, Cp_out), jnp.float32) for _ in w_refs]
    for dh in range(3):
        for dw in range(3):
            tap = img_p[dh:dh + H, dw:dw + W, :].reshape(H * W, Cp_in)
            for i, w_ref in enumerate(w_refs):
                accs[i] = accs[i] + jnp.dot(
                    tap, w_ref[dh * 3 + dw], preferred_element_type=jnp.float32)
    return accs


def _sum_sumsq(acc):
    """Per-channel sum and sum-of-squares over the image rows -> (2, Cp)."""
    return jnp.concatenate(
        [jnp.sum(acc, axis=0, keepdims=True),
         jnp.sum(acc * acc, axis=0, keepdims=True)], axis=0)


# ------------------------------- kernels -------------------------------
def make_branch_kernel(H, W, Cp_out, mm_dtype):
    # conv1(x) and conv3(x) for one image + per-image BN stats partials.
    def branch_kernel(x_ref, w1_ref, w3_ref, y1_ref, y3_ref, st_ref):
        img = _pad_hw(x_ref[0].astype(mm_dtype))                 # (H+2,W+2,Cpi)
        acc1, acc3 = _conv3x3_taps(img, [w1_ref, w3_ref], H, W, Cp_out)
        y1_ref[0] = acc1.reshape(H, W, Cp_out)
        y3_ref[0] = acc3.reshape(H, W, Cp_out)
        st_ref[0] = jnp.concatenate([_sum_sumsq(acc1), _sum_sumsq(acc3)], axis=0)
    return branch_kernel


def make_mid_kernel(H, W, Cp_out, mm_dtype):
    # out1 = relu(bn1(y1)) in VMEM, then conv2(out1) + BN2 stats partials.
    M_img = H * W

    def mid_kernel(y1_ref, aff1_ref, w2_ref, y2_ref, st_ref):
        y1 = y1_ref[0].reshape(M_img, Cp_out)
        out1 = jnp.maximum(y1 * aff1_ref[0:1, :] + aff1_ref[1:2, :], 0.0)
        img = _pad_hw(out1.reshape(H, W, Cp_out).astype(mm_dtype))
        (acc2,) = _conv3x3_taps(img, [w2_ref], H, W, Cp_out)
        y2_ref[0] = acc2.reshape(H, W, Cp_out)
        st_ref[0] = _sum_sumsq(acc2)
    return mid_kernel


def make_final_kernel(H, W, Cp_out):
    # out = relu(bn2(y2) + bn3(y3)) -- pure VPU epilogue, lane-dense stores.
    M_img = H * W

    def final_kernel(y2_ref, y3_ref, aff2_ref, aff3_ref, out_ref):
        y2 = y2_ref[0].reshape(M_img, Cp_out)
        y3 = y3_ref[0].reshape(M_img, Cp_out)
        o = (y2 * aff2_ref[0:1, :] + aff2_ref[1:2, :]
             + y3 * aff3_ref[0:1, :] + aff3_ref[1:2, :])
        out_ref[0] = jnp.maximum(o, 0.0).reshape(H, W, Cp_out)
    return final_kernel


# ------------------------------- wrapper -------------------------------
def _bn_affine(s, q, gamma, beta, count):
    """Fold global batch stats + gamma/beta into per-channel scale/shift."""
    mean = s / count
    var = jnp.maximum(q / count - mean * mean, 0.0)   # biased var (PyTorch train)
    scale = gamma * jax.lax.rsqrt(var + EPS)
    shift = beta - mean * scale
    return jnp.stack([scale, shift], axis=0)          # (2, Cp)


def resblock_forward(x_nchw, params, mm_dtype=jnp.bfloat16):
    x = jnp.transpose(x_nchw, (0, 2, 3, 1)).astype(jnp.float32)   # NCHW -> NHWC
    N, H, W, Cin = x.shape
    Cout = params["w1"].shape[-1]
    Cpi = _round_up(Cin, LANE)
    Cpo = _round_up(Cout, LANE)
    M = N * H * W
    mm_size = jnp.dtype(mm_dtype).itemsize

    # lane-dense channel padding; matmul operands in mm_dtype, epilogue in f32
    xp = jnp.pad(x, ((0, 0), (0, 0), (0, 0), (0, Cpi - Cin))).astype(mm_dtype)

    def pad_w(w, cp_in):
        wpad = jnp.pad(w, ((0, 0), (0, 0), (0, cp_in - w.shape[2]),
                           (0, Cpo - w.shape[3])))
        return wpad.reshape(9, cp_in, Cpo).astype(mm_dtype)

    def pad_vec(v):
        return jnp.pad(v.astype(jnp.float32), (0, Cpo - v.shape[0]))

    w1 = pad_w(params["w1"], Cpi)
    w3 = pad_w(params["w3"], Cpi)
    w2 = pad_w(params["w2"], Cpo)

    cp = pltpu.CompilerParams(dimension_semantics=("parallel",),
                              vmem_limit_bytes=VMEM_LIMIT)

    img_spec_in = pl.BlockSpec((1, H, W, Cpi), lambda n: (n, 0, 0, 0))
    img_spec_out = pl.BlockSpec((1, H, W, Cpo), lambda n: (n, 0, 0, 0))
    aff_spec = pl.BlockSpec((2, Cpo), lambda n: (0, 0))

    # ---- pass 1: conv1 & conv3, pre-BN outputs + stats partials ----
    ce1 = pl.CostEstimate(
        flops=int(2 * 2 * M * 9 * Cpi * Cpo), transcendentals=0,
        bytes_accessed=int(N * H * W * Cpi * mm_size + 2 * 9 * Cpi * Cpo * mm_size
                           + (2 * N * H * W * Cpo + N * 4 * Cpo) * 4))
    y1, y3, st13 = pl.pallas_call(
        make_branch_kernel(H, W, Cpo, mm_dtype),
        grid=(N,),
        in_specs=[img_spec_in,
                  pl.BlockSpec((9, Cpi, Cpo), lambda n: (0, 0, 0)),
                  pl.BlockSpec((9, Cpi, Cpo), lambda n: (0, 0, 0))],
        out_specs=(img_spec_out, img_spec_out,
                   pl.BlockSpec((1, 4, Cpo), lambda n: (n, 0, 0))),
        out_shape=(jax.ShapeDtypeStruct((N, H, W, Cpo), jnp.float32),
                   jax.ShapeDtypeStruct((N, H, W, Cpo), jnp.float32),
                   jax.ShapeDtypeStruct((N, 4, Cpo), jnp.float32)),
        compiler_params=cp, cost_estimate=ce1,
    )(xp, w1, w3)

    st13 = jnp.sum(st13, axis=0)                                  # (4, Cpo)
    aff1 = _bn_affine(st13[0], st13[1], pad_vec(params["g1"]),
                      pad_vec(params["be1"]), M)
    aff3 = _bn_affine(st13[2], st13[3], pad_vec(params["g3"]),
                      pad_vec(params["be3"]), M)

    # ---- pass 2: relu(bn1(y1)) -> conv2, pre-BN y2 + stats partials ----
    ce2 = pl.CostEstimate(
        flops=int(2 * M * 9 * Cpo * Cpo), transcendentals=0,
        bytes_accessed=int(9 * Cpo * Cpo * mm_size
                           + (2 * N * H * W * Cpo + N * 2 * Cpo + 2 * Cpo) * 4))
    y2, st2 = pl.pallas_call(
        make_mid_kernel(H, W, Cpo, mm_dtype),
        grid=(N,),
        in_specs=[img_spec_out, aff_spec,
                  pl.BlockSpec((9, Cpo, Cpo), lambda n: (0, 0, 0))],
        out_specs=(img_spec_out,
                   pl.BlockSpec((1, 2, Cpo), lambda n: (n, 0, 0))),
        out_shape=(jax.ShapeDtypeStruct((N, H, W, Cpo), jnp.float32),
                   jax.ShapeDtypeStruct((N, 2, Cpo), jnp.float32)),
        compiler_params=cp, cost_estimate=ce2,
    )(y1, aff1, w2)

    st2 = jnp.sum(st2, axis=0)                                    # (2, Cpo)
    aff2 = _bn_affine(st2[0], st2[1], pad_vec(params["g2"]),
                      pad_vec(params["be2"]), M)

    # ---- pass 3: relu(bn2(y2) + bn3(y3)) ----
    ce3 = pl.CostEstimate(
        flops=int(7 * M * Cpo), transcendentals=0,
        bytes_accessed=int((3 * N * H * W * Cpo + 4 * Cpo) * 4))
    out_p = pl.pallas_call(
        make_final_kernel(H, W, Cpo),
        grid=(N,),
        in_specs=[img_spec_out, img_spec_out, aff_spec, aff_spec],
        out_specs=img_spec_out,
        out_shape=jax.ShapeDtypeStruct((N, H, W, Cpo), jnp.float32),
        compiler_params=cp, cost_estimate=ce3,
    )(y2, y3, aff2, aff3)

    out = out_p[..., :Cout]                                        # strip pad
    return jnp.transpose(out, (0, 3, 1, 2))                        # NHWC -> NCHW


# ----------------------- pure-JAX reference (PyTorch semantics) -----------------------
def _conv3x3_ref(x, w, b):
    y = jax.lax.conv_general_dilated(x, w, (1, 1), "SAME",
                                     dimension_numbers=("NHWC", "HWIO", "NHWC"))
    return y + b


def _bn_ref(y, g, be):
    mean = y.mean(axis=(0, 1, 2), keepdims=True)
    var = jnp.square(y - mean).mean(axis=(0, 1, 2), keepdims=True)
    return (y - mean) * jax.lax.rsqrt(var + EPS) * g + be


def resblock_ref(x_nchw, p):
    x = jnp.transpose(x_nchw, (0, 2, 3, 1)).astype(jnp.float32)
    out = jnp.maximum(_bn_ref(_conv3x3_ref(x, p["w1"], p["b1"]), p["g1"], p["be1"]), 0.0)
    out = _bn_ref(_conv3x3_ref(out, p["w2"], p["b2"]), p["g2"], p["be2"])
    res = _bn_ref(_conv3x3_ref(x, p["w3"], p["b3"]), p["g3"], p["be3"])
    out = jnp.maximum(out + res, 0.0)
    return jnp.transpose(out, (0, 3, 1, 2))


if __name__ == "__main__":
    key = jax.random.PRNGKey(0)
    N, C, H, W = 2, 4, 16, 16          # channels_in == num_filters == 4, stride=1
    num_filters = C

    keys = jax.random.split(key, 10)
    x = jax.random.normal(keys[0], (N, C, H, W), dtype=jnp.float32)

    def conv_w(k, cin, cout):
        return jax.random.normal(k, (3, 3, cin, cout), dtype=jnp.float32) * 0.1

    params = {
        "w1": conv_w(keys[1], C, num_filters),
        "b1": jax.random.normal(keys[2], (num_filters,), dtype=jnp.float32) * 0.05,
        "g1": jnp.ones((num_filters,), jnp.float32),
        "be1": jnp.zeros((num_filters,), jnp.float32),
        "w2": conv_w(keys[3], num_filters, num_filters),
        "b2": jax.random.normal(keys[4], (num_filters,), dtype=jnp.float32) * 0.05,
        "g2": jnp.ones((num_filters,), jnp.float32),
        "be2": jnp.zeros((num_filters,), jnp.float32),
        "w3": conv_w(keys[5], C, num_filters),
        "b3": jax.random.normal(keys[6], (num_filters,), dtype=jnp.float32) * 0.05,
        "g3": jnp.ones((num_filters,), jnp.float32),
        "be3": jnp.zeros((num_filters,), jnp.float32),
    }

    ref = jax.block_until_ready(resblock_ref(x, params))

    # f32 matmul path: exact-algorithm check against the PyTorch-semantics reference.
    out_f32 = jax.block_until_ready(resblock_forward(x, params, mm_dtype=jnp.float32))
    assert out_f32.shape == (N, num_filters, H, W), out_f32.shape
    assert jnp.allclose(out_f32, ref, atol=1e-4, rtol=1e-4), \
        float(jnp.max(jnp.abs(out_f32 - ref)))

    # bf16 matmul-operand path (v5e/v6e/v7x MXU-native): loose tolerance covers
    # bf16 operand-rounding only; the algorithm is identical.
    out_bf16 = jax.block_until_ready(resblock_forward(x, params, mm_dtype=jnp.bfloat16))
    assert out_bf16.shape == (N, num_filters, H, W), out_bf16.shape
    assert jnp.allclose(out_bf16, ref, atol=1e-1, rtol=1e-1), \
        float(jnp.max(jnp.abs(out_bf16 - ref)))

    print("KERNEL_OK")
</pallas_src>

<mosaic_0001>
module attributes {stable_mosaic.version = 11 : i64} {
  func.func @branch_kernel(%arg0: i32, %arg1: memref<1x16x16x128xf32, #tpu.memory_space<vmem>>, %arg2: memref<9x128x128xf32, #tpu.memory_space<vmem>>, %arg3: memref<9x128x128xf32, #tpu.memory_space<vmem>>, %arg4: memref<1x16x16x128xf32, #tpu.memory_space<vmem>>, %arg5: memref<1x16x16x128xf32, #tpu.memory_space<vmem>>, %arg6: memref<1x4x128xf32, #tpu.memory_space<vmem>>) attributes {dimension_semantics = [#tpu.dimension_semantics<parallel>], iteration_bounds = array<i64: 2>, scalar_prefetch = 0 : i64, scratch_operands = 0 : i64, tpu.core_type = #tpu.core_type<tc>, window_params = [{transform_indices = @transform_0, window_bounds = array<i64: 1, 16, 16, 128>}, {pipeline_mode = #tpu.pipeline_mode<synchronous>, transform_indices = @transform_1, window_bounds = array<i64: 9, 128, 128>}, {pipeline_mode = #tpu.pipeline_mode<synchronous>, transform_indices = @transform_2, window_bounds = array<i64: 9, 128, 128>}, {transform_indices = @transform_3, window_bounds = array<i64: 1, 16, 16, 128>}, {transform_indices = @transform_4, window_bounds = array<i64: 1, 16, 16, 128>}, {transform_indices = @transform_5, window_bounds = array<i64: 1, 4, 128>}]} {
    %c0 = arith.constant 0 : index
    %c0_0 = arith.constant 0 : index
    %c0_1 = arith.constant 0 : index
    %c0_2 = arith.constant 0 : index
    %0 = vector.load %arg1[%c0, %c0_0, %c0_1, %c0_2] : memref<1x16x16x128xf32, #tpu.memory_space<vmem>>, vector<1x16x16x128xf32>
    %1 = vector.shape_cast %0 : vector<1x16x16x128xf32> to vector<16x16x128xf32>
    %cst = arith.constant 0.000000e+00 : f32
    %2 = vector.broadcast %cst : f32 to vector<16x1x128xf32>
    %3 = tpu.concatenate %2, %1, %2 in 1 : vector<16x1x128xf32>, vector<16x16x128xf32>, vector<16x1x128xf32> -> vector<16x18x128xf32>
    %cst_3 = arith.constant 0.000000e+00 : f32
    %4 = vector.broadcast %cst_3 : f32 to vector<1x18x128xf32>
    %5 = tpu.concatenate %4, %3, %4 in 0 : vector<1x18x128xf32>, vector<16x18x128xf32>, vector<1x18x128xf32> -> vector<18x18x128xf32>
    %cst_4 = arith.constant 0.000000e+00 : f32
    %6 = vector.broadcast %cst_4 : f32 to vector<256x128xf32>
    %cst_5 = arith.constant 0.000000e+00 : f32
    %7 = vector.broadcast %cst_5 : f32 to vector<256x128xf32>
    %8 = vector.extract_strided_slice %5 {offsets = [0, 0, 0], sizes = [16, 16, 128], strides = [1, 1, 1]} : vector<18x18x128xf32> to vector<16x16x128xf32>
    %9 = vector.shape_cast %8 : vector<16x16x128xf32> to vector<256x128xf32>
    %c0_6 = arith.constant 0 : index
    %c0_7 = arith.constant 0 : index
    %c0_8 = arith.constant 0 : index
    %10 = vector.load %arg2[%c0_6, %c0_7, %c0_8] : memref<9x128x128xf32, #tpu.memory_space<vmem>>, vector<1x128x128xf32>
    %11 = vector.shape_cast %10 : vector<1x128x128xf32> to vector<128x128xf32>
    %cst_9 = arith.constant dense<0.000000e+00> : vector<256x128xf32>
    %12 = tpu.matmul %9, %11, %cst_9 {dimension_numbers = #tpu.dot_dimension_numbers<[1], [0], [0], [1], [0, 0, 1, 1], [], []>} : vector<256x128xf32>, vector<128x128xf32>, vector<256x128xf32> -> vector<256x128xf32>
    %13 = arith.addf %6, %12 : vector<256x128xf32>
    %c0_10 = arith.constant 0 : index
    %c0_11 = arith.constant 0 : index
    %c0_12 = arith.constant 0 : index
    %14 = vector.load %arg3[%c0_10, %c0_11, %c0_12] : memref<9x128x128xf32, #tpu.memory_space<vmem>>, vector<1x128x128xf32>
    %15 = vector.shape_cast %14 : vector<1x128x128xf32> to vector<128x128xf32>
    %cst_13 = arith.constant dense<0.000000e+00> : vector<256x128xf32>
    %16 = tpu.matmul %9, %15, %cst_13 {dimension_numbers = #tpu.dot_dimension_numbers<[1], [0], [0], [1], [0, 0, 1, 1], [], []>} : vector<256x128xf32>, vector<128x128xf32>, vector<256x128xf32> -> vector<256x128xf32>
    %17 = arith.addf %7, %16 : vector<256x128xf32>
    %18 = vector.extract_strided_slice %5 {offsets = [0, 1, 0], sizes = [16, 16, 128], strides = [1, 1, 1]} : vector<18x18x128xf32> to vector<16x16x128xf32>
    %19 = vector.shape_cast %18 : vector<16x16x128xf32> to vector<256x128xf32>
    %c1 = arith.constant 1 : index
    %c0_14 = arith.constant 0 : index
    %c0_15 = arith.constant 0 : index
    %20 = vector.load %arg2[%c1, %c0_14, %c0_15] : memref<9x128x128xf32, #tpu.memory_space<vmem>>, vector<1x128x128xf32>
    %21 = vector.shape_cast %20 : vector<1x128x128xf32> to vector<128x128xf32>
    %cst_16 = arith.constant dense<0.000000e+00> : vector<256x128xf32>
    %22 = tpu.matmul %19, %21, %cst_16 {dimension_numbers = #tpu.dot_dimension_numbers<[1], [0], [0], [1], [0, 0, 1, 1], [], []>} : vector<256x128xf32>, vector<128x128xf32>, vector<256x128xf32> -> vector<256x128xf32>
    %23 = arith.addf %13, %22 : vector<256x128xf32>
    %c1_17 = arith.constant 1 : index
    %c0_18 = arith.constant 0 : index
    %c0_19 = arith.constant 0 : index
    %24 = vector.load %arg3[%c1_17, %c0_18, %c0_19] : memref<9x128x128xf32, #tpu.memory_space<vmem>>, vector<1x128x128xf32>
    %25 = vector.shape_cast %24 : vector<1x128x128xf32> to vector<128x128xf32>
    %cst_20 = arith.constant dense<0.000000e+00> : vector<256x128xf32>
    %26 = tpu.matmul %19, %25, %cst_20 {dimension_numbers = #tpu.dot_dimension_numbers<[1], [0], [0], [1], [0, 0, 1, 1], [], []>} : vector<256x128xf32>, vector<128x128xf32>, vector<256x128xf32> -> vector<256x128xf32>
    %27 = arith.addf %17, %26 : vector<256x128xf32>
    %28 = vector.extract_strided_slice %5 {offsets = [0, 2, 0], sizes = [16, 16, 128], strides = [1, 1, 1]} : vector<18x18x128xf32> to vector<16x16x128xf32>
    %29 = vector.shape_cast %28 : vector<16x16x128xf32> to vector<256x128xf32>
    %c2 = arith.constant 2 : index
    %c0_21 = arith.constant 0 : index
    %c0_22 = arith.constant 0 : index
    %30 = vector.load %arg2[%c2, %c0_21, %c0_22] : memref<9x128x128xf32, #tpu.memory_space<vmem>>, vector<1x128x128xf32>
    %31 = vector.shape_cast %30 : vector<1x128x128xf32> to vector<128x128xf32>
    %cst_23 = arith.constant dense<0.000000e+00> : vector<256x128xf32>
    %32 = tpu.matmul %29, %31, %cst_23 {dimension_numbers = #tpu.dot_dimension_numbers<[1], [0], [0], [1], [0, 0, 1, 1], [], []>} : vector<256x128xf32>, vector<128x128xf32>, vector<256x128xf32> -> vector<256x128xf32>
    %33 = arith.addf %23, %32 : vector<256x128xf32>
    %c2_24 = arith.constant 2 : index
    %c0_25 = arith.constant 0 : index
    %c0_26 = arith.constant 0 : index
    %34 = vector.load %arg3[%c2_24, %c0_25, %c0_26] : memref<9x128x128xf32, #tpu.memory_space<vmem>>, vector<1x128x128xf32>
    %35 = vector.shape_cast %34 : vector<1x128x128xf32> to vector<128x128xf32>
    %cst_27 = arith.constant dense<0.000000e+00> : vector<256x128xf32>
    %36 = tpu.matmul %29, %35, %cst_27 {dimension_numbers = #tpu.dot_dimension_numbers<[1], [0], [0], [1], [0, 0, 1, 1], [], []>} : vector<256x128xf32>, vector<128x128xf32>, vector<256x128xf32> -> vector<256x128xf32>
    %37 = arith.addf %27, %36 : vector<256x128xf32>
    %38 = vector.extract_strided_slice %5 {offsets = [1, 0, 0], sizes = [16, 16, 128], strides = [1, 1, 1]} : vector<18x18x128xf32> to vector<16x16x128xf32>
    %39 = vector.shape_cast %38 : vector<16x16x128xf32> to vector<256x128xf32>
    %c3 = arith.constant 3 : index
    %c0_28 = arith.constant 0 : index
    %c0_29 = arith.constant 0 : index
    %40 = vector.load %arg2[%c3, %c0_28, %c0_29] : memref<9x128x128xf32, #tpu.memory_space<vmem>>, vector<1x128x128xf32>
    %41 = vector.shape_cast %40 : vector<1x128x128xf32> to vector<128x128xf32>
    %cst_30 = arith.constant dense<0.000000e+00> : vector<256x128xf32>
    %42 = tpu.matmul %39, %41, %cst_30 {dimension_numbers = #tpu.dot_dimension_numbers<[1], [0], [0], [1], [0, 0, 1, 1], [], []>} : vector<256x128xf32>, vector<128x128xf32>, vector<256x128xf32> -> vector<256x128xf32>
    %43 = arith.addf %33, %42 : vector<256x128xf32>
    %c3_31 = arith.constant 3 : index
    %c0_32 = arith.constant 0 : index
    %c0_33 = arith.constant 0 : index
    %44 = vector.load %arg3[%c3_31, %c0_32, %c0_33] : memref<9x128x128xf32, #tpu.memory_space<vmem>>, vector<1x128x128xf32>
    %45 = vector.shape_cast %44 : vector<1x128x128xf32> to vector<128x128xf32>
    %cst_34 = arith.constant dense<0.000000e+00> : vector<256x128xf32>
    %46 = tpu.matmul %39, %45, %cst_34 {dimension_numbers = #tpu.dot_dimension_numbers<[1], [0], [0], [1], [0, 0, 1, 1], [], []>} : vector<256x128xf32>, vector<128x128xf32>, vector<256x128xf32> -> vector<256x128xf32>
    %47 = arith.addf %37, %46 : vector<256x128xf32>
    %48 = vector.extract_strided_slice %5 {offsets = [1, 1, 0], sizes = [16, 16, 128], strides = [1, 1, 1]} : vector<18x18x128xf32> to vector<16x16x128xf32>
    %49 = vector.shape_cast %48 : vector<16x16x128xf32> to vector<256x128xf32>
    %c4 = arith.constant 4 : index
    %c0_35 = arith.constant 0 : index
    %c0_36 = arith.constant 0 : index
    %50 = vector.load %arg2[%c4, %c0_35, %c0_36] : memref<9x128x128xf32, #tpu.memory_space<vmem>>, vector<1x128x128xf32>
    %51 = vector.shape_cast %50 : vector<1x128x128xf32> to vector<128x128xf32>
    %cst_37 = arith.constant dense<0.000000e+00> : vector<256x128xf32>
    %52 = tpu.matmul %49, %51, %cst_37 {dimension_numbers = #tpu.dot_dimension_numbers<[1], [0], [0], [1], [0, 0, 1, 1], [], []>} : vector<256x128xf32>, vector<128x128xf32>, vector<256x128xf32> -> vector<256x128xf32>
    %53 = arith.addf %43, %52 : vector<256x128xf32>
    %c4_38 = arith.constant 4 : index
    %c0_39 = arith.constant 0 : index
    %c0_40 = arith.constant 0 : index
    %54 = vector.load %arg3[%c4_38, %c0_39, %c0_40] : memref<9x128x128xf32, #tpu.memory_space<vmem>>, vector<1x128x128xf32>
    %55 = vector.shape_cast %54 : vector<1x128x128xf32> to vector<128x128xf32>
    %cst_41 = arith.constant dense<0.000000e+00> : vector<256x128xf32>
    %56 = tpu.matmul %49, %55, %cst_41 {dimension_numbers = #tpu.dot_dimension_numbers<[1], [0], [0], [1], [0, 0, 1, 1], [], []>} : vector<256x128xf32>, vector<128x128xf32>, vector<256x128xf32> -> vector<256x128xf32>
    %57 = arith.addf %47, %56 : vector<256x128xf32>
    %58 = vector.extract_strided_slice %5 {offsets = [1, 2, 0], sizes = [16, 16, 128], strides = [1, 1, 1]} : vector<18x18x128xf32> to vector<16x16x128xf32>
    %59 = vector.shape_cast %58 : vector<16x16x128xf32> to vector<256x128xf32>
    %c5 = arith.constant 5 : index
    %c0_42 = arith.constant 0 : index
    %c0_43 = arith.constant 0 : index
    %60 = vector.load %arg2[%c5, %c0_42, %c0_43] : memref<9x128x128xf32, #tpu.memory_space<vmem>>, vector<1x128x128xf32>
    %61 = vector.shape_cast %60 : vector<1x128x128xf32> to vector<128x128xf32>
    %cst_44 = arith.constant dense<0.000000e+00> : vector<256x128xf32>
    %62 = tpu.matmul %59, %61, %cst_44 {dimension_numbers = #tpu.dot_dimension_numbers<[1], [0], [0], [1], [0, 0, 1, 1], [], []>} : vector<256x128xf32>, vector<128x128xf32>, vector<256x128xf32> -> vector<256x128xf32>
    %63 = arith.addf %53, %62 : vector<256x128xf32>
    %c5_45 = arith.constant 5 : index
    %c0_46 = arith.constant 0 : index
    %c0_47 = arith.constant 0 : index
    %64 = vector.load %arg3[%c5_45, %c0_46, %c0_47] : memref<9x128x128xf32, #tpu.memory_space<vmem>>, vector<1x128x128xf32>
    %65 = vector.shape_cast %64 : vector<1x128x128xf32> to vector<128x128xf32>
    %cst_48 = arith.constant dense<0.000000e+00> : vector<256x128xf32>
    %66 = tpu.matmul %59, %65, %cst_48 {dimension_numbers = #tpu.dot_dimension_numbers<[1], [0], [0], [1], [0, 0, 1, 1], [], []>} : vector<256x128xf32>, vector<128x128xf32>, vector<256x128xf32> -> vector<256x128xf32>
    %67 = arith.addf %57, %66 : vector<256x128xf32>
    %68 = vector.extract_strided_slice %5 {offsets = [2, 0, 0], sizes = [16, 16, 128], strides = [1, 1, 1]} : vector<18x18x128xf32> to vector<16x16x128xf32>
    %69 = vector.shape_cast %68 : vector<16x16x128xf32> to vector<256x128xf32>
    %c6 = arith.constant 6 : index
    %c0_49 = arith.constant 0 : index
    %c0_50 = arith.constant 0 : index
    %70 = vector.load %arg2[%c6, %c0_49, %c0_50] : memref<9x128x128xf32, #tpu.memory_space<vmem>>, vector<1x128x128xf32>
    %71 = vector.shape_cast %70 : vector<1x128x128xf32> to vector<128x128xf32>
    %cst_51 = arith.constant dense<0.000000e+00> : vector<256x128xf32>
    %72 = tpu.matmul %69, %71, %cst_51 {dimension_numbers = #tpu.dot_dimension_numbers<[1], [0], [0], [1], [0, 0, 1, 1], [], []>} : vector<256x128xf32>, vector<128x128xf32>, vector<256x128xf32> -> vector<256x128xf32>
    %73 = arith.addf %63, %72 : vector<256x128xf32>
    %c6_52 = arith.constant 6 : index
    %c0_53 = arith.constant 0 : index
    %c0_54 = arith.constant 0 : index
    %74 = vector.load %arg3[%c6_52, %c0_53, %c0_54] : memref<9x128x128xf32, #tpu.memory_space<vmem>>, vector<1x128x128xf32>
    %75 = vector.shape_cast %74 : vector<1x128x128xf32> to vector<128x128xf32>
    %cst_55 = arith.constant dense<0.000000e+00> : vector<256x128xf32>
    %76 = tpu.matmul %69, %75, %cst_55 {dimension_numbers = #tpu.dot_dimension_numbers<[1], [0], [0], [1], [0, 0, 1, 1], [], []>} : vector<256x128xf32>, vector<128x128xf32>, vector<256x128xf32> -> vector<256x128xf32>
    %77 = arith.addf %67, %76 : vector<256x128xf32>
    %78 = vector.extract_strided_slice %5 {offsets = [2, 1, 0], sizes = [16, 16, 128], strides = [1, 1, 1]} : vector<18x18x128xf32> to vector<16x16x128xf32>
    %79 = vector.shape_cast %78 : vector<16x16x128xf32> to vector<256x128xf32>
    %c7 = arith.constant 7 : index
    %c0_56 = arith.constant 0 : index
    %c0_57 = arith.constant 0 : index
    %80 = vector.load %arg2[%c7, %c0_56, %c0_57] : memref<9x128x128xf32, #tpu.memory_space<vmem>>, vector<1x128x128xf32>
    %81 = vector.shape_cast %80 : vector<1x128x128xf32> to vector<128x128xf32>
    %cst_58 = arith.constant dense<0.000000e+00> : vector<256x128xf32>
    %82 = tpu.matmul %79, %81, %cst_58 {dimension_numbers = #tpu.dot_dimension_numbers<[1], [0], [0], [1], [0, 0, 1, 1], [], []>} : vector<256x128xf32>, vector<128x128xf32>, vector<256x128xf32> -> vector<256x128xf32>
    %83 = arith.addf %73, %82 : vector<256x128xf32>
    %c7_59 = arith.constant 7 : index
    %c0_60 = arith.constant 0 : index
    %c0_61 = arith.constant 0 : index
    %84 = vector.load %arg3[%c7_59, %c0_60, %c0_61] : memref<9x128x128xf32, #tpu.memory_space<vmem>>, vector<1x128x128xf32>
    %85 = vector.shape_cast %84 : vector<1x128x128xf32> to vector<128x128xf32>
    %cst_62 = arith.constant dense<0.000000e+00> : vector<256x128xf32>
    %86 = tpu.matmul %79, %85, %cst_62 {dimension_numbers = #tpu.dot_dimension_numbers<[1], [0], [0], [1], [0, 0, 1, 1], [], []>} : vector<256x128xf32>, vector<128x128xf32>, vector<256x128xf32> -> vector<256x128xf32>
    %87 = arith.addf %77, %86 : vector<256x128xf32>
    %88 = vector.extract_strided_slice %5 {offsets = [2, 2, 0], sizes = [16, 16, 128], strides = [1, 1, 1]} : vector<18x18x128xf32> to vector<16x16x128xf32>
    %89 = vector.shape_cast %88 : vector<16x16x128xf32> to vector<256x128xf32>
    %c8 = arith.constant 8 : index
    %c0_63 = arith.constant 0 : index
    %c0_64 = arith.constant 0 : index
    %90 = vector.load %arg2[%c8, %c0_63, %c0_64] : memref<9x128x128xf32, #tpu.memory_space<vmem>>, vector<1x128x128xf32>
    %91 = vector.shape_cast %90 : vector<1x128x128xf32> to vector<128x128xf32>
    %cst_65 = arith.constant dense<0.000000e+00> : vector<256x128xf32>
    %92 = tpu.matmul %89, %91, %cst_65 {dimension_numbers = #tpu.dot_dimension_numbers<[1], [0], [0], [1], [0, 0, 1, 1], [], []>} : vector<256x128xf32>, vector<128x128xf32>, vector<256x128xf32> -> vector<256x128xf32>
    %93 = arith.addf %83, %92 : vector<256x128xf32>
    %c8_66 = arith.constant 8 : index
    %c0_67 = arith.constant 0 : index
    %c0_68 = arith.constant 0 : index
    %94 = vector.load %arg3[%c8_66, %c0_67, %c0_68] : memref<9x128x128xf32, #tpu.memory_space<vmem>>, vector<1x128x128xf32>
    %95 = vector.shape_cast %94 : vector<1x128x128xf32> to vector<128x128xf32>
    %cst_69 = arith.constant dense<0.000000e+00> : vector<256x128xf32>
    %96 = tpu.matmul %89, %95, %cst_69 {dimension_numbers = #tpu.dot_dimension_numbers<[1], [0], [0], [1], [0, 0, 1, 1], [], []>} : vector<256x128xf32>, vector<128x128xf32>, vector<256x128xf32> -> vector<256x128xf32>
    %97 = arith.addf %87, %96 : vector<256x128xf32>
    %98 = vector.shape_cast %93 : vector<256x128xf32> to vector<16x16x128xf32>
    %c0_70 = arith.constant 0 : index
    %c0_71 = arith.constant 0 : index
    %c0_72 = arith.constant 0 : index
    %c0_73 = arith.constant 0 : index
    %99 = vector.load %arg4[%c0_70, %c0_71, %c0_72, %c0_73] : memref<1x16x16x128xf32, #tpu.memory_space<vmem>>, vector<1x16x16x128xf32>
    %100 = vector.shape_cast %99 : vector<1x16x16x128xf32> to vector<16x16x128xf32>
    %101 = vector.shape_cast %98 : vector<16x16x128xf32> to vector<1x16x16x128xf32>
    tpu.vector_store %arg4[%c0_70, %c0_71, %c0_72, %c0_73], %101 {strides = array<i32>} : memref<1x16x16x128xf32, #tpu.memory_space<vmem>>, vector<1x16x16x128xf32>,
    %102 = vector.shape_cast %97 : vector<256x128xf32> to vector<16x16x128xf32>
    %c0_74 = arith.constant 0 : index
    %c0_75 = arith.constant 0 : index
    %c0_76 = arith.constant 0 : index
    %c0_77 = arith.constant 0 : index
    %103 = vector.load %arg5[%c0_74, %c0_75, %c0_76, %c0_77] : memref<1x16x16x128xf32, #tpu.memory_space<vmem>>, vector<1x16x16x128xf32>
    %104 = vector.shape_cast %103 : vector<1x16x16x128xf32> to vector<16x16x128xf32>
    %105 = vector.shape_cast %102 : vector<16x16x128xf32> to vector<1x16x16x128xf32>
    tpu.vector_store %arg5[%c0_74, %c0_75, %c0_76, %c0_77], %105 {strides = array<i32>} : memref<1x16x16x128xf32, #tpu.memory_space<vmem>>, vector<1x16x16x128xf32>,
    %cst_78 = arith.constant dense<0.000000e+00> : vector<128xf32>
    %106 = vector.multi_reduction <add>, %93, %cst_78 [0] : vector<256x128xf32> to vector<128xf32>
    %107 = vector.shape_cast %106 : vector<128xf32> to vector<1x128xf32>
    %108 = arith.mulf %93, %93 : vector<256x128xf32>
    %cst_79 = arith.constant dense<0.000000e+00> : vector<128xf32>
    %109 = vector.multi_reduction <add>, %108, %cst_79 [0] : vector<256x128xf32> to vector<128xf32>
    %110 = vector.shape_cast %109 : vector<128xf32> to vector<1x128xf32>
    %111 = tpu.concatenate %107, %110 in 0 : vector<1x128xf32>, vector<1x128xf32> -> vector<2x128xf32>
    %cst_80 = arith.constant dense<0.000000e+00> : vector<128xf32>
    %112 = vector.multi_reduction <add>, %97, %cst_80 [0] : vector<256x128xf32> to vector<128xf32>
    %113 = vector.shape_cast %112 : vector<128xf32> to vector<1x128xf32>
    %114 = arith.mulf %97, %97 : vector<256x128xf32>
    %cst_81 = arith.constant dense<0.000000e+00> : vector<128xf32>
    %115 = vector.multi_reduction <add>, %114, %cst_81 [0] : vector<256x128xf32> to vector<128xf32>
    %116 = vector.shape_cast %115 : vector<128xf32> to vector<1x128xf32>
    %117 = tpu.concatenate %113, %116 in 0 : vector<1x128xf32>, vector<1x128xf32> -> vector<2x128xf32>
    %118 = tpu.concatenate %111, %117 in 0 : vector<2x128xf32>, vector<2x128xf32> -> vector<4x128xf32>
    %c0_82 = arith.constant 0 : index
    %c0_83 = arith.constant 0 : index
    %c0_84 = arith.constant 0 : index
    %119 = vector.load %arg6[%c0_82, %c0_83, %c0_84] : memref<1x4x128xf32, #tpu.memory_space<vmem>>, vector<1x4x128xf32>
    %120 = vector.shape_cast %119 : vector<1x4x128xf32> to vector<4x128xf32>
    %121 = vector.shape_cast %118 : vector<4x128xf32> to vector<1x4x128xf32>
    tpu.vector_store %arg6[%c0_82, %c0_83, %c0_84], %121 {strides = array<i32>} : memref<1x4x128xf32, #tpu.memory_space<vmem>>, vector<1x4x128xf32>,
    return
  }
  func.func @transform_0(%arg0: i32) -> (i32, i32, i32, i32) {
    %c0_i32 = arith.constant 0 : i32
    %c0_i32_0 = arith.constant 0 : i32
    %c0_i32_1 = arith.constant 0 : i32
    %c0_i32_2 = arith.constant 0 : i32
    return %arg0, %c0_i32, %c0_i32_0, %c0_i32_1 : i32, i32, i32, i32
  }
  func.func @transform_1(%arg0: i32) -> (i32, i32, i32) {
    %c0_i32 = arith.constant 0 : i32
    %c0_i32_0 = arith.constant 0 : i32
    %c0_i32_1 = arith.constant 0 : i32
    %c0_i32_2 = arith.constant 0 : i32
    return %c0_i32, %c0_i32_0, %c0_i32_1 : i32, i32, i32
  }
  func.func @transform_2(%arg0: i32) -> (i32, i32, i32) {
    %c0_i32 = arith.constant 0 : i32
    %c0_i32_0 = arith.constant 0 : i32
    %c0_i32_1 = arith.constant 0 : i32
    %c0_i32_2 = arith.constant 0 : i32
    return %c0_i32, %c0_i32_0, %c0_i32_1 : i32, i32, i32
  }
  func.func @transform_3(%arg0: i32) -> (i32, i32, i32, i32) {
    %c0_i32 = arith.constant 0 : i32
    %c0_i32_0 = arith.constant 0 : i32
    %c0_i32_1 = arith.constant 0 : i32
    %c0_i32_2 = arith.constant 0 : i32
    return %arg0, %c0_i32, %c0_i32_0, %c0_i32_1 : i32, i32, i32, i32
  }
  func.func @transform_4(%arg0: i32) -> (i32, i32, i32, i32) {
    %c0_i32 = arith.constant 0 : i32
    %c0_i32_0 = arith.constant 0 : i32
    %c0_i32_1 = arith.constant 0 : i32
    %c0_i32_2 = arith.constant 0 : i32
    return %arg0, %c0_i32, %c0_i32_0, %c0_i32_1 : i32, i32, i32, i32
  }
  func.func @transform_5(%arg0: i32) -> (i32, i32, i32) {
    %c0_i32 = arith.constant 0 : i32
    %c0_i32_0 = arith.constant 0 : i32
    %c0_i32_1 = arith.constant 0 : i32
    return %arg0, %c0_i32, %c0_i32_0 : i32, i32, i32
  }
}

</mosaic_0001>

<bundles_post_ra>
// kernel: tpu_custom_call.1
= control target key start
LH: loop header
LB: loop body
LE: loop exit
PB: predicated region body
PF: predicated region fallthrough
CT: control target
= control target key end

     0   :  { %11 = vsyncpa [#allocation3], 0  ;;  %s6928_s0 = inlined_call_operand.hbm [shape: f32[2,16,16,128], index: 0, kind: input, shape index: {}]   ;;  %s6929_s1 = inlined_call_operand.hbm [shape: f32[9,128,128], index: 1, kind: input, shape index: {}]   ;;  %s6930_s2 = inlined_call_operand.hbm [shape: f32[9,128,128], index: 2, kind: input, shape index: {}]   ;;  %s6931_s3 = inlined_call_operand.hbm [shape: f32[2,16,16,128], index: 3, kind: output, shape index: {0}]   ;;  %s6932_s4 = inlined_call_operand.hbm [shape: f32[2,16,16,128], index: 4, kind: output, shape index: {1}]   ;;  %s6933_s5 = inlined_call_operand.hbm [shape: f32[2,4,128], index: 5, kind: output, shape index: {2}]  }
   0x1   :  { %13 = vsyncpa [#allocation3 + $0x1], 0 }
   0x2   :  { %14 = vsyncpa [#allocation6], 0 }
   0x3   :  { %15 = vsyncpa [#allocation4], 0 }
   0x4   :  { %17 = vsyncpa [#allocation4 + $0x1], 0 }
   0x5   :  { %18 = vsyncpa [#allocation10], 0 }
   0x6   :  { %20 = vsyncpa [#allocation10 + $0x1], 0  ;;  %s4621_s18 = smov 0   ;;  %s4623_s19 = smov 0  }
   0x7   :  { %s4625_s20 = smov 0   ;;  %s4627_s21 = smov 0  }
   0x8 LB: > { %s4642_s22 = sadd.s32 4294967295, %s4582_s21   ;;  %s6934_s23 = sadd.s32 4294967294, %s4582_s21   ;;  %s4582_s21 = sphi %s4627_s21, %s7680_s21   ;;  %s4578_s20 = sphi %s4625_s20, %s7679_s20   ;;  %s4574_s19 = sphi %s4623_s19, %s7678_s19   ;;  %s4570_s18 = sphi %s4621_s18, %s7677_s18  }
   0x9   : > { %p46_p0 = scmp.ne.s32.totalorder %s4574_s19, %s4570_s18  ;;  %p47_p1 = scmp.eq.s32.totalorder %s4642_s22, 0 }
   0xa   : > { %p112_p2 = scmp.eq.s32.totalorder %s4642_s22, 1  ;;  %p118_p3 = scmp.eq.s32.totalorder %s6934_s23, 1 }
   0xb   : > { %p4653_p4 = por %p47_p1, %p46_p0  ;;  %p4037_p5 = scmp.ge.s32.totalorder %s4582_s21, 1 }
   0xc   : > { %p4658_p6 = por %p118_p3, %p46_p0  ;;  %p177_p7 = scmp.lt.s32.totalorder %s4582_s21, 3 }
   0xd   : > { %s188_s28 = sshll.u32 %s6929_s1, 4  ;;  %s4584_s30 = smov [#allocation5]   ;;  %s189_s28 = int_to_ptr.hbm [resolvable:$true] %s188_s28 }
   0xe   : > { %p4666_p8 = pnand %p4037_p5, %p177_p7  ;;  %s190_s6 = sshll.u32 %s4584_s30, 4  ;;  %s191_s6 = int_to_ptr.vmem [resolvable:$true] %s190_s6 }
   0xf   : > { %s202_s9 = sshll.u32 %s6930_s2, 4  ;;  %s6935_s10 = smov 128   ;;  %s203_s9 = int_to_ptr.hbm [resolvable:$true] %s202_s9 }
  0x10   : > { %p4296_p9 = pneg %p4666_p8  ;;  %s4586_s11 = smov 8  }
  0x11   : > { %s4587_s12 = smov [#allocation7]   ;;  %s4685_s14 = sadd.s32 1, %s4582_s21  }
  0x12   : > { %p4297_p10 = pnand %p4296_p9, %p47_p1  ;;  %s204_s13 = sshll.u32 %s4587_s12, 4  ;;  %s205_s13 = int_to_ptr.vmem [resolvable:$true] %s204_s13 }
  0x13   : > { %s33_s15 = sadd.s32 1, %s4578_s20  ;;  %s30_s16 = ssub.s32 %s4582_s21, %s4685_s14 }
  0x14   : > { %4299 = dma.hbm_to_vmem [thread:$0]  (!%p4297_p10), %s189_s28, 18432, %s191_s6, [#allocation6], %s6935_s10, %s6935_s10, %s4586_s11  }
  0x15   : > { %4302 = dma.hbm_to_vmem [thread:$0]  (!%p4297_p10), %s203_s9, 18432, %s205_s13, [#allocation6], %s6935_s10, %s6935_s10, %s4586_s11  }
  0x16   : > { %p40_p12 = scmp.ne.s32.totalorder %s4578_s20, %s4574_s19  ;;  %p31_p13 = scmp.eq.s32.totalorder %s30_s16, 0 }
  0x17   : > { %p41_p0 = scmp.eq.s32.totalorder %s4582_s21, 0  ;;  %p4319_p5 = scmp.lt.s32.totalorder %s4582_s21, 2 }
  0x18   : > { %p4695_p3 = por %p112_p2, %p40_p12  ;;  %s218_s27 = sand.u32 1, %s4578_s20  }
  0x19   : > { %s4701_s26 = scalar_select %p31_p13, %s4578_s20, %s33_s15  }
  0x1a   : > { %p42_p7 = por %p41_p0, %p40_p12  ;;  %s4041_s28 = sshll.u32 %s218_s27, 8 }
  0x1b   : > { %s4245_s30 = sshll.u32 %s4582_s21, 8  ;;  %s222_s9 = scalar_lea.vmem [#allocation2], %s4041_s28 }
  0x1c   : > { %s227_s8 = scalar_lea.hbm %s6928_s0, %s4245_s30  ;;  %s230_s12 = sshll.u32 %s222_s9, 4  ;;  %s231_s12 = int_to_ptr.vmem [resolvable:$true] %s230_s12 }
  0x1d   : > { %s228_s13 = sshll.u32 %s227_s8, 4  ;;  %p4708_p2 = pnand %p4319_p5, %p42_p7  ;;  %s229_s13 = int_to_ptr.hbm [resolvable:$true] %s228_s13 }
  0x1e   : > { %s219_s15 = scalar_lea.sflag [#allocation3], %s218_s27  ;;  %s4422_s23 = sshra.s32 %s229_s13, 4  ;;  %s4423_s23 = int_to_ptr.hbm [resolvable:$true] %s4422_s23 }
  0x1f   : > { %s4424_s10 = scalar_lea.hbm %s4423_s23, 256  ;;  %p4426_p10 = pneg %p4708_p2 }
  0x20   : > { %p4425_p9 = scmp.ne.s32.totalorder %s4423_s23, %s4424_s10  ;;  %s4429_s6 = scalar_lea.hbm %s6928_s0, 512 }
  0x21   : > { %p4430_p0 = scmp.lt.s32.totalorder %s4423_s23, %s6928_s0  ;;  %p4431_p5 = scmp.lt.s32.totalorder %s4429_s6, %s4424_s10 }
  0x22   : > { %p4427_p12 = pnand %p4426_p10, %p4425_p9 }
  0x23   : > { %p4432_p7 = por %p4431_p5, %p4430_p0 }
  0x24   : > { %p4428_p13 = pneg %p4427_p12 }
  0x26   : > { %p4433_p11 = pnand %p4432_p7, %p4428_p13 }
  0x28   : > { %4436 = shalt.err (!%p4433_p11)
}
  0x29   : > { %s7142_s27 = smov 128   ;;  %242 = sbr.rel (%p4666_p8) target bundleno = 1408 (0x580), region = 32 }
  0x2a   : > { %4306 = dma.hbm_to_vmem [thread:$0]  (!%p4708_p2), %s229_s13, 4096, %s231_s12, %s219_s15, %s7142_s27, %s7142_s27, %s4586_s11  }
  0x2e   : > { %s4728_s9 = sand.u32 1, %s4574_s19  }
  0x2f   : > { %s4731_s23 = sshll.u32 %s4728_s9, 8  ;;  %s245_s10 = scalar_lea.sflag [#allocation3], %s4728_s9 }
  0x30   : > { %s4735_s30 = scalar_lea.vmem [#allocation2], %s4731_s23 }
  0x31   : > { %4553 = dma.done.wait (%p4653_p4), %s245_s10, 4096  }
  0x32   : > { %4555 = vsyncadd (%p4653_p4), %s245_s10, 4294963200 }
  0x33   : > { %4557 = dma.done.wait (%p47_p1), [#allocation6], 36864  }
  0x34   : > { %4559 = vsyncadd (%p47_p1), [#allocation6], 4294930432  ;;  %v677_v0 = vld [vmem:[#allocation5 + $0xf8] sm:$0xff]  ;;  %v676_v2 = vld [vmem:[#allocation5 + $0xf0] sm:$0xff]  ;;  %vm360_vm0 = vcmask 1040384   ;;  %vm552_vm1 = vcmask 1046528  }
  0x35   : > { %v504_v1 = vld [vmem:[#allocation5 + $0x78] sm:$0xff]  ;;  %678 = vmatpush.msra.mxu0 %v677_v0  ;;  %4248 = vmatpush.msra.mxu2 %v677_v0  ;;  %v503_v3 = vld [vmem:[#allocation5 + $0x70] sm:$0xff]  ;;  %v675_v4 = vld [vmem:[#allocation5 + $0xe8] sm:$0xff]  ;;  %v6936_v39 = vmov 0.0   ;;  %vm1147_vm3 = vcmask 1045504   ;;  %s6650_s24 = scalar_lea.vmem [#allocation8], %s4731_s23 }
  0x36   : > { %4264 = vmatpush.msra.mxu3 %v504_v1  ;;  %791 = vmatpush.msra.mxu1 %v504_v1  ;;  %v502_v5 = vld [vmem:[#allocation5 + $0x68] sm:$0xff]  ;;  %v674_v6 = vld [vmem:[#allocation5 + $0xe0] sm:$0xff]  ;;  %v673_v8 = vld [vmem:[#allocation5 + $0xd8] sm:$0xff]  ;;  %v4760_v40 = vrot.slane %v6936_v39, 1  ;;  %s6656_s29 = scalar_lea.vmem [#allocation9], %s4731_s23  ;;  %s4246_s11 = sshll.u32 %s4642_s22, 8 }
  0x37   : > { %679 = vmatpush.msra.mxu0 %v676_v2  ;;  %4249 = vmatpush.msra.mxu2 %v676_v2  ;;  %v501_v7 = vld [vmem:[#allocation5 + $0x60] sm:$0xff]  ;;  %v500_v9 = vld [vmem:[#allocation5 + $0x58] sm:$0xff]  ;;  %v672_v10 = vld [vmem:[#allocation5 + $0xd0] sm:$0xff]  ;;  %s3829_s12 = sand.u32 1, %s4642_s22   ;;  %s3863_s15 = scalar_lea.hbm %s6932_s4, %s4246_s11 }
  0x38   : > { %4265 = vmatpush.msra.mxu3 %v503_v3  ;;  %792 = vmatpush.msra.mxu1 %v503_v3  ;;  %v499_v11 = vld [vmem:[#allocation5 + $0x50] sm:$0xff]  ;;  %v671_v12 = vld [vmem:[#allocation5 + $0xc8] sm:$0xff]  ;;  %v670_v14 = vld [vmem:[#allocation5 + $0xc0] sm:$0xff]  ;;  %7143 = vst [vmem:[#allocation16_spill] sm:$0xff] %v4760_v40  ;;  %s3846_s7 = scalar_lea.hbm %s6931_s3, %s4246_s11  ;;  %s3864_s8 = sshll.u32 %s6656_s29, 4  ;;  %s6848_s8 = int_to_ptr.vmem [resolvable:$true] %s3864_s8 }
  0x39   : > { %680 = vmatpush.msra.mxu0 %v675_v4  ;;  %4250 = vmatpush.msra.mxu2 %v675_v4  ;;  %v498_v13 = vld [vmem:[#allocation5 + $0x48] sm:$0xff]  ;;  %v497_v15 = vld [vmem:[#allocation5 + $0x40] sm:$0xff]  ;;  %v669_v16 = vld [vmem:[#allocation5 + $0xb8] sm:$0xff]  ;;  %s3866_s27 = sshll.u32 %s3863_s15, 4  ;;  %s3847_s23 = sshll.u32 %s6650_s24, 4  ;;  %s6850_s27 = int_to_ptr.hbm [resolvable:$true] %s3866_s27  ;;  %s6853_s23 = int_to_ptr.vmem [resolvable:$true] %s3847_s23 }
  0x3a   : > { %4266 = vmatpush.msra.mxu3 %v502_v5  ;;  %793 = vmatpush.msra.mxu1 %v502_v5  ;;  %v496_v17 = vld [vmem:[#allocation5 + $0x38] sm:$0xff]  ;;  %v668_v18 = vld [vmem:[#allocation5 + $0xb0] sm:$0xff]  ;;  %v667_v22 = vld [vmem:[#allocation5 + $0xa8] sm:$0xff]  ;;  %s3849_s10 = sshll.u32 %s3846_s7, 4  ;;  %s4466_s11 = sshra.s32 %s6850_s27, 4  ;;  %s6855_s10 = int_to_ptr.hbm [resolvable:$true] %s3849_s10  ;;  %s4467_s11 = int_to_ptr.hbm [resolvable:$true] %s4466_s11 }
  0x3b   : > { %681 = vmatpush.msra.mxu0 %v674_v6  ;;  %4251 = vmatpush.msra.mxu2 %v674_v6  ;;  %v310_v19 = vld [vmem:[%s4735_s30 + $0x70] sm:$0xff]  ;;  %v311_v20 = vld [vmem:[%s4735_s30 + $0x78] sm:$0xff]  ;;  %v494_v23 = vld [vmem:[#allocation5 + $0x28] sm:$0xff]  ;;  %s4472_s15 = scalar_lea.hbm %s6932_s4, 512  ;;  %p4473_p11 = scmp.lt.s32.totalorder %s4467_s11, %s6932_s4 }
  0x3c   : > { %4267 = vmatpush.msra.mxu3 %v501_v7  ;;  %794 = vmatpush.msra.mxu1 %v501_v7  ;;  %v495_v21 = vld [vmem:[#allocation5 + $0x30] sm:$0xff]  ;;  %v4747_v24 = vrot.slane %v310_v19, 7  ;;  %v383_v25 = vrot.slane %v311_v20, 7  ;;  %v666_v26 = vld [vmem:[#allocation5 + $0xa0] sm:$0xff]  ;;  %v665_v28 = vld [vmem:[#allocation5 + $0x98] sm:$0xff] }
  0x3d   : > { %682 = vmatpush.msra.mxu0 %v673_v8  ;;  %4252 = vmatpush.msra.mxu2 %v673_v8  ;;  %v493_v27 = vld [vmem:[#allocation5 + $0x20] sm:$0xff]  ;;  %v492_v29 = vld [vmem:[#allocation5 + $0x18] sm:$0xff]  ;;  %v664_v32 = vld [vmem:[#allocation5 + $0x90] sm:$0xff] }
  0x3e   : > { %4268 = vmatpush.msra.mxu3 %v500_v9  ;;  %795 = vmatpush.msra.mxu1 %v500_v9  ;;  %v4751_v30 = vsel %vm360_vm0, %v4747_v24, %v383_v25  ;;  %v4755_v31 = vsel %vm360_vm0, 0.0, %v4747_v24  ;;  %v491_v33 = vld [vmem:[#allocation5 + $0x10] sm:$0xff]  ;;  %v663_v34 = vld [vmem:[#allocation5 + $0x88] sm:$0xff]  ;;  %v662_v38 = vld [vmem:[#allocation5 + $0x80] sm:$0xff]  ;;  %v4771_v46 = vsel %vm360_vm0, %v383_v25, 0.0 }
  0x3f   : > { %683 = vmatpush.msra.mxu0 %v672_v10  ;;  %4253 = vmatpush.msra.mxu2 %v672_v10  ;;  %v590_v35 = vrot.slane %v4755_v31, 1  ;;  %v591_v36 = vrot.slane %v4751_v30, 1  ;;  %v490_v37 = vld [vmem:[#allocation5 + $0x8] sm:$0xff]  ;;  %v489_v41 = vld [vmem:[#allocation5] sm:$0xff]  ;;  %vm4766_vm2 = vmneg %vm360_vm0  ;;  %v593_v53 = vrot.slane %v4771_v46, 1 }
  0x40   : > { %4269 = vmatpush.msra.mxu3 %v499_v11  ;;  %796 = vmatpush.msra.mxu1 %v499_v11  ;;  %v520_v44 = vld [vmem:[#allocation7 + $0x78] sm:$0xff]  ;;  %v296_v47 = vld [vmem:[%s4735_s30] sm:$0xff]  ;;  %v4775_v48 = vld [vmem:[%s4735_s30 + $0x8] sm:$0xff] }
  0x41   : > { %684 = vmatpush.msra.mxu0 %v671_v12  ;;  %4254 = vmatpush.msra.mxu2 %v671_v12  ;;  %v4763_v42 = vsel %vm552_vm1, %v590_v35, %v591_v36  ;;  %v920_v45 = vld [vmem:[#allocation7 + $0xf8] sm:$0xff]  ;;  %v312_v50 = vld [vmem:[%s4735_s30 + $0x80] sm:$0xff]  ;;  %v4780_v51 = vld [vmem:[%s4735_s30 + $0x88] sm:$0xff]  ;;  %v4787_v56 = vrot.slane %v296_v47, 7  ;;  %v362_v57 = vrot.slane %v4775_v48, 7  ;;  %v4795_v1 = vsel %vm552_vm1, %v591_v36, %v593_v53 }
  0x42   : > { %4270 = vmatpush.msra.mxu3 %v498_v13  ;;  %797 = vmatpush.msra.mxu1 %v498_v13  ;;  %7144 = vst [vmem:[#allocation17_spill] sm:$0xff] %v4763_v42  ;;  %v1272_v49 = vld [vmem:[#allocation5 + $0x178] sm:$0xff]  ;;  %v519_v52 = vld [vmem:[#allocation7 + $0x70] sm:$0xff]  ;;  %v4790_v58 = vrot.slane %v312_v50, 7  ;;  %v386_v59 = vrot.slane %v4780_v51, 7  ;;  %v518_v60 = vld [vmem:[#allocation7 + $0x68] sm:$0xff] }
  0x43   : > { %685 = vmatpush.msra.mxu0 %v670_v14  ;;  %4255 = vmatpush.msra.mxu2 %v670_v14  ;;  %v1434_v54 = vld [vmem:[#allocation7 + $0x178] sm:$0xff]  ;;  %v919_v55 = vld [vmem:[#allocation7 + $0xf0] sm:$0xff]  ;;  %v918_v63 = vld [vmem:[#allocation7 + $0xe8] sm:$0xff]  ;;  %7148 = vst [vmem:[#allocation19_spill] sm:$0xff] %v4795_v1  ;;  %v4799_v2 = vsel %vm360_vm0, %v4787_v56, %v362_v57  ;;  %v4803_v3 = vsel %vm360_vm0, 0.0, %v4787_v56 }
  0x44   : > { %4271 = vmatpush.msra.mxu3 %v497_v15  ;;  %798 = vmatpush.msra.mxu1 %v497_v15  ;;  %7147 = vst [vmem:[#allocation18_spill] sm:$0xff] %v4790_v58  ;;  %v1271_v61 = vld [vmem:[#allocation5 + $0x170] sm:$0xff]  ;;  %v517_v0 = vld [vmem:[#allocation7 + $0x60] sm:$0xff]  ;;  %v4807_v4 = vsel %vm360_vm0, %v4790_v58, %v386_v59  ;;  %v4811_v5 = vsel %vm360_vm0, 0.0, %v4790_v58  ;;  %v1432_v6 = vld [vmem:[#allocation7 + $0x168] sm:$0xff]  ;;  %v555_v10 = vrot.slane %v4803_v3, 1 }
  0x45   : > { %686 = vmatpush.msra.mxu0 %v669_v16  ;;  %4256 = vmatpush.msra.mxu2 %v669_v16  ;;  %v1433_v62 = vld [vmem:[#allocation7 + $0x170] sm:$0xff]  ;;  %v917_v7 = vld [vmem:[#allocation7 + $0xe0] sm:$0xff]  ;;  %v1270_v8 = vld [vmem:[#allocation5 + $0x168] sm:$0xff]  ;;  %v556_v11 = vrot.slane %v4799_v2, 1  ;;  %v595_v13 = vrot.slane %v4811_v5, 1  ;;  %v596_v14 = vrot.slane %v4807_v4, 1 }
  0x46   : > { %4272 = vmatpush.msra.mxu3 %v496_v17  ;;  %799 = vmatpush.msra.mxu1 %v496_v17  ;;  %v516_v9 = vld [vmem:[#allocation7 + $0x58] sm:$0xff]  ;;  %v1431_v15 = vld [vmem:[#allocation7 + $0x160] sm:$0xff]  ;;  %v515_v17 = vld [vmem:[#allocation7 + $0x50] sm:$0xff]  ;;  %v4831_v25 = vsel %vm360_vm0, %v386_v59, 0.0 }
  0x47   : > { %687 = vmatpush.msra.mxu0 %v668_v18  ;;  %4257 = vmatpush.msra.mxu2 %v668_v18  ;;  %v916_v12 = vld [vmem:[#allocation7 + $0xd8] sm:$0xff]  ;;  %v1269_v16 = vld [vmem:[#allocation5 + $0x160] sm:$0xff]  ;;  %v915_v18 = vld [vmem:[#allocation7 + $0xd0] sm:$0xff]  ;;  %7150 = vst [vmem:[#allocation21_spill] sm:$0xff] %v4831_v25  ;;  %v598_v36 = vrot.slane %v4831_v25, 1 }
  0x48   : > { %4273 = vmatpush.msra.mxu3 %v495_v21  ;;  %800 = vmatpush.msra.mxu1 %v495_v21  ;;  %v1430_v19 = vld [vmem:[#allocation7 + $0x158] sm:$0xff]  ;;  %v4822_v21 = vsel %vm552_vm1, %v555_v10, %v556_v11  ;;  %v914_v35 = vld [vmem:[#allocation7 + $0xc8] sm:$0xff]  ;;  %v913_v59 = vld [vmem:[#allocation7 + $0xc0] sm:$0xff] }
  0x49   : > { %688 = vmatpush.msra.mxu0 %v667_v22  ;;  %4258 = vmatpush.msra.mxu2 %v667_v22  ;;  %v1268_v20 = vld [vmem:[#allocation5 + $0x158] sm:$0xff]  ;;  %v4825_v22 = vsel %vm552_vm1, %v595_v13, %v596_v14  ;;  %v4855_v48 = vsel %vm552_vm1, %v596_v14, %v598_v36  ;;  %v316_v10 = vld [vmem:[%s4735_s30 + $0xa0] sm:$0xff] }
  0x4a   : > { %4274 = vmatpush.msra.mxu3 %v494_v23  ;;  %801 = vmatpush.msra.mxu1 %v494_v23  ;;  %7149 = vst [vmem:[#allocation20_spill] sm:$0xff] %v4825_v22  ;;  %v4828_v23 = vsel %vm360_vm0, %v362_v57, 0.0  ;;  %v1428_v57 = vld [vmem:[#allocation7 + $0x148] sm:$0xff]  ;;  %v512_v13 = vld [vmem:[#allocation7 + $0x38] sm:$0xff]  ;;  %v1427_v14 = vld [vmem:[#allocation7 + $0x140] sm:$0xff] }
  0x4b   : > { %689 = vmatpush.msra.mxu0 %v666_v26  ;;  %4259 = vmatpush.msra.mxu2 %v666_v26  ;;  %v298_v26 = vld [vmem:[%s4735_s30 + $0x10] sm:$0xff]  ;;  %7152 = vst [vmem:[#allocation23_spill] sm:$0xff] %v4855_v48 }
  0x4c   : > { %4275 = vmatpush.msra.mxu3 %v493_v27  ;;  %802 = vmatpush.msra.mxu1 %v493_v27  ;;  %v299_v27 = vld [vmem:[%s4735_s30 + $0x18] sm:$0xff] }
  0x4d   : > { %690 = vmatpush.msra.mxu0 %v665_v28  ;;  %4260 = vmatpush.msra.mxu2 %v665_v28  ;;  %v314_v28 = vld [vmem:[%s4735_s30 + $0x90] sm:$0xff] }
  0x4e   : > { %4276 = vmatpush.msra.mxu3 %v492_v29  ;;  %803 = vmatpush.msra.mxu1 %v492_v29  ;;  %v315_v29 = vld [vmem:[%s4735_s30 + $0x98] sm:$0xff] }
  0x4f   : > { %691 = vmatpush.msra.mxu0 %v664_v32  ;;  %4261 = vmatpush.msra.mxu2 %v664_v32  ;;  %v558_v32 = vrot.slane %v4828_v23, 1 }
  0x50   : > { %4277 = vmatpush.msra.mxu3 %v491_v33  ;;  %804 = vmatpush.msra.mxu1 %v491_v33  ;;  %v514_v33 = vld [vmem:[#allocation7 + $0x48] sm:$0xff] }
  0x51   : > { %692 = vmatpush.msra.mxu0 %v663_v34  ;;  %4262 = vmatpush.msra.mxu2 %v663_v34  ;;  %v1429_v34 = vld [vmem:[#allocation7 + $0x150] sm:$0xff]  ;;  %v4852_v47 = vsel %vm552_vm1, %v556_v11, %v558_v32  ;;  %v317_v11 = vld [vmem:[%s4735_s30 + $0xa8] sm:$0xff] }
  0x52   : > { %4278 = vmatpush.msra.mxu3 %v490_v37  ;;  %805 = vmatpush.msra.mxu1 %v490_v37  ;;  %v4844_v37 = vrot.slane %v298_v26, 7  ;;  %v392_v26 = vrot.slane %v317_v11, 7 }
  0x53   : > { %693 = vmatpush.msra.mxu0 %v662_v38  ;;  %4263 = vmatpush.msra.mxu2 %v662_v38  ;;  %v365_v38 = vrot.slane %v299_v27, 7 }
  0x54   : > { %4279 = vmatpush.msra.mxu3 %v489_v41  ;;  %694 = vmatmul.f32.vlgmr.msra.gmra.mxu0 %v4760_v40  ;;  %v4863_v50 = vsel %vm360_vm0, 0.0, %v4844_v37 }
  0x55   : > { %742 = vmatmul.f32.vlgmr.msra.gmra.mxu2 %v4763_v42  ;;  %4066 = vmatmul.msk.f32.vlgmr.msra.gmra.mxu3 %vm4766_vm2, %v4747_v24  ;;  %v560_v53 = vrot.slane %v4863_v50, 1 }
  0x56   : > { %1034 = vmatpush.msrb.mxu3 %v520_v44  ;;  %921 = vmatpush.msrb.mxu2 %v920_v45  ;;  %v4846_v44 = vrot.slane %v314_v28, 7  ;;  %v389_v45 = vrot.slane %v315_v29, 7 }
  0x57   : > { %806 = vmatpush.msra.mxu1 %v489_v41  ;;  %1273 = vmatpush.msrb.mxu0 %v1272_v49  ;;  %v1267_v41 = vld [vmem:[#allocation5 + $0x150] sm:$0xff]  ;;  %v4859_v49 = vsel %vm360_vm0, %v4844_v37, %v365_v38 }
  0x58   : > { %807 = vmatmul.f32.vlgmr.msra.gmra.mxu1 %v6936_v39  ;;  %1035 = vmatpush.msrb.mxu3 %v519_v52  ;;  %7151 = vst [vmem:[#allocation22_spill] sm:$0xff] %v4846_v44  ;;  %v4867_v51 = vsel %vm360_vm0, %v4846_v44, %v389_v45  ;;  %v4871_v52 = vsel %vm360_vm0, 0.0, %v4846_v44 }
  0x59   : > { %1435 = vmatpush.msrb.mxu1 %v1434_v54  ;;  %922 = vmatpush.msrb.mxu2 %v919_v55  ;;  %7153 = vst [vmem:[#allocation24_spill] sm:$0xff] %v4867_v51  ;;  %v561_v54 = vrot.slane %v4859_v49, 1  ;;  %v513_v55 = vld [vmem:[#allocation7 + $0x40] sm:$0xff] }
  0x5a   : > { %1036 = vmatpush.msrb.mxu3 %v518_v60  ;;  %1274 = vmatpush.msrb.mxu0 %v1271_v61  ;;  %7154 = vst [vmem:[#allocation25_spill] sm:$0xff] %v4871_v52  ;;  %v600_v60 = vrot.slane %v4871_v52, 1  ;;  %v601_v61 = vrot.slane %v4867_v51, 1  ;;  %v309_v52 = vld [vmem:[%s4735_s30 + $0x68] sm:$0xff] }
  0x5b   : > { %1436 = vmatpush.msrb.mxu1 %v1433_v62  ;;  %923 = vmatpush.msrb.mxu2 %v918_v63  ;;  %v1266_v62 = vld [vmem:[#allocation5 + $0x148] sm:$0xff]  ;;  %v4882_v63 = vsel %vm552_vm1, %v560_v53, %v561_v54  ;;  %v380_v25 = vrot.slane %v309_v52, 7 }
  0x5c   : > { %697 = vmatmul.f32.gmra.mxu0 %v4760_v40  ;;  %1037 = vmatpush.msrb.mxu3 %v517_v0  ;;  %7155 = vst [vmem:[#allocation26_spill] sm:$0xff] %v4882_v63  ;;  %v4885_v0 = vsel %vm552_vm1, %v600_v60, %v601_v61 }
  0x5d   : > { %745 = vmatmul.f32.gmra.mxu2 %v4795_v1  ;;  %858 = vmatmul.f32.gmra.mxu3 %v4751_v30  ;;  %7156 = vst [vmem:[#allocation27_spill] sm:$0xff] %v4885_v0 }
  0x5e   : > { %1437 = vmatpush.msrb.mxu1 %v1432_v6  ;;  %924 = vmatpush.msrb.mxu2 %v917_v7  ;;  %v4888_v6 = vsel %vm360_vm0, %v365_v38, 0.0  ;;  %v4891_v7 = vsel %vm360_vm0, %v389_v45, 0.0  ;;  %v511_v38 = vld [vmem:[#allocation7 + $0x30] sm:$0xff] }
  0x5f   : > { %1275 = vmatpush.msrb.mxu0 %v1270_v8  ;;  %1038 = vmatpush.msrb.mxu3 %v516_v9  ;;  %7157 = vst [vmem:[#allocation28_spill] sm:$0xff] %v4891_v7  ;;  %v300_v8 = vld [vmem:[%s4735_s30 + $0x20] sm:$0xff]  ;;  %v301_v9 = vld [vmem:[%s4735_s30 + $0x28] sm:$0xff]  ;;  %v911_v45 = vld [vmem:[#allocation7 + $0xb0] sm:$0xff] }
  0x60   : > { %810 = vmatmul.f32.gmra.mxu1 %v6936_v39  ;;  %925 = vmatpush.msrb.mxu2 %v916_v12  ;;  %v563_v12 = vrot.slane %v4888_v6, 1 }
  0x61   : > { %1438 = vmatpush.msrb.mxu1 %v1431_v15  ;;  %1276 = vmatpush.msrb.mxu0 %v1269_v16  ;;  %v912_v15 = vld [vmem:[#allocation7 + $0xb8] sm:$0xff]  ;;  %v603_v16 = vrot.slane %v4891_v7, 1 }
  0x62   : > { %1039 = vmatpush.msrb.mxu3 %v515_v17  ;;  %926 = vmatpush.msrb.mxu2 %v915_v18  ;;  %v4904_v17 = vrot.slane %v300_v8, 7  ;;  %v368_v18 = vrot.slane %v301_v9, 7  ;;  %v4912_v27 = vsel %vm552_vm1, %v561_v54, %v563_v12  ;;  %v303_v8 = vld [vmem:[%s4735_s30 + $0x38] sm:$0xff]  ;;  %v318_v9 = vld [vmem:[%s4735_s30 + $0xb0] sm:$0xff]  ;;  %v510_v12 = vld [vmem:[#allocation7 + $0x28] sm:$0xff] }
  0x63   : > { %1439 = vmatpush.msrb.mxu1 %v1430_v19  ;;  %1277 = vmatpush.msrb.mxu0 %v1268_v20  ;;  %v1265_v19 = vld [vmem:[#allocation5 + $0x140] sm:$0xff]  ;;  %v4906_v20 = vrot.slane %v316_v10, 7  ;;  %7159 = vst [vmem:[#allocation30_spill] sm:$0xff] %v4912_v27  ;;  %v4915_v28 = vsel %vm552_vm1, %v601_v61, %v603_v16  ;;  %v4951_v61 = vsel %vm360_vm0, %v392_v26, 0.0  ;;  %v319_v10 = vld [vmem:[%s4735_s30 + $0xb8] sm:$0xff] }
  0x64   : > { %700 = vmatmul.f32.gmra.mxu0 %v4822_v21  ;;  %1040 = vmatpush.msrb.mxu3 %v514_v33  ;;  %7160 = vst [vmem:[#allocation31_spill] sm:$0xff] %v4915_v28  ;;  %v4919_v29 = vsel %vm360_vm0, %v4904_v17, %v368_v18  ;;  %v4923_v32 = vsel %vm360_vm0, 0.0, %v4904_v17  ;;  %v4948_v60 = vsel %vm360_vm0, %v368_v18, 0.0  ;;  %v371_v18 = vrot.slane %v303_v8, 7  ;;  %v509_v8 = vld [vmem:[#allocation7 + $0x20] sm:$0xff] }
  0x65   : > { %748 = vmatmul.f32.gmra.mxu2 %v4825_v22  ;;  %4068 = vmatmul.msk.f32.gmra.mxu3 %vm4766_vm2, %v4790_v58  ;;  %7158 = vst [vmem:[#allocation29_spill] sm:$0xff] %v4906_v20  ;;  %v4927_v33 = vsel %vm360_vm0, %v4906_v20, %v392_v26  ;;  %v566_v36 = vrot.slane %v4919_v29, 1  ;;  %v568_v11 = vrot.slane %v4948_v60, 1  ;;  %v4966_v26 = vrot.slane %v318_v9, 7  ;;  %v1424_v9 = vld [vmem:[#allocation7 + $0x128] sm:$0xff] }
  0x66   : > { %1440 = vmatpush.msrb.mxu1 %v1429_v34  ;;  %927 = vmatpush.msrb.mxu2 %v914_v35  ;;  %7161 = vst [vmem:[#allocation32_spill] sm:$0xff] %v4927_v33  ;;  %v4931_v34 = vsel %vm360_vm0, 0.0, %v4906_v20  ;;  %v565_v35 = vrot.slane %v4923_v32, 1  ;;  %v606_v54 = vrot.slane %v4927_v33, 1 }
  0x67   : > { %1278 = vmatpush.msrb.mxu0 %v1267_v41  ;;  %1041 = vmatpush.msrb.mxu3 %v513_v55  ;;  %7162 = vst [vmem:[#allocation33_spill] sm:$0xff] %v4931_v34  ;;  %v1426_v41 = vld [vmem:[#allocation7 + $0x138] sm:$0xff]  ;;  %v605_v53 = vrot.slane %v4931_v34, 1  ;;  %v306_v34 = vld [vmem:[%s4735_s30 + $0x50] sm:$0xff] }
  0x68   : > { %4052 = vmatmul.msk.f32.gmra.mxu1 %vm4766_vm2, %v4787_v56  ;;  %928 = vmatpush.msrb.mxu2 %v913_v59  ;;  %v1264_v55 = vld [vmem:[#allocation5 + $0x138] sm:$0xff]  ;;  %7165 = vst [vmem:[#allocation36_spill] sm:$0xff] %v4951_v61 }
  0x69   : > { %1441 = vmatpush.msrb.mxu1 %v1428_v57  ;;  %1279 = vmatpush.msrb.mxu0 %v1266_v62  ;;  %v4942_v57 = vsel %vm552_vm1, %v565_v35, %v566_v36  ;;  %v4945_v59 = vsel %vm552_vm1, %v605_v53, %v606_v54  ;;  %v302_v62 = vld [vmem:[%s4735_s30 + $0x30] sm:$0xff]  ;;  %7166 = vst [vmem:[#allocation37_spill] sm:$0xff] %v4966_v26  ;;  %v395_v35 = vrot.slane %v319_v10, 7  ;;  %v909_v10 = vld [vmem:[#allocation7 + $0xa0] sm:$0xff] }
  0x6a   : > { %1042 = vmatpush.msrb.mxu3 %v512_v13  ;;  %929 = vmatpush.msrb.mxu2 %v912_v15  ;;  %7163 = vst [vmem:[#allocation34_spill] sm:$0xff] %v4942_v57  ;;  %v1425_v13 = vld [vmem:[#allocation7 + $0x130] sm:$0xff]  ;;  %v608_v15 = vrot.slane %v4951_v61, 1  ;;  %v4964_v16 = vrot.slane %v302_v62, 7  ;;  %v4991_v62 = vsel %vm360_vm0, 0.0, %v4966_v26 }
  0x6b   : > { %1442 = vmatpush.msrb.mxu1 %v1427_v14  ;;  %1280 = vmatpush.msrb.mxu0 %v1265_v19  ;;  %7164 = vst [vmem:[#allocation35_spill] sm:$0xff] %v4945_v59  ;;  %v910_v14 = vld [vmem:[#allocation7 + $0xa8] sm:$0xff]  ;;  %v1263_v19 = vld [vmem:[#allocation5 + $0x130] sm:$0xff]  ;;  %v5011_v39 = vsel %vm360_vm0, %v395_v35, 0.0 }
  0x6c   : > { %703 = vmatmul.f32.gmra.mxu0 %v4852_v47  ;;  %1043 = vmatpush.msrb.mxu3 %v511_v38  ;;  %v4972_v38 = vsel %vm552_vm1, %v566_v36, %v568_v11  ;;  %v4983_v53 = vsel %vm360_vm0, 0.0, %v4964_v16  ;;  %7170 = vst [vmem:[#allocation41_spill] sm:$0xff] %v4991_v62  ;;  %v610_v11 = vrot.slane %v4991_v62, 1  ;;  %v304_v62 = vld [vmem:[%s4735_s30 + $0x40] sm:$0xff] }
  0x6d   : > { %751 = vmatmul.f32.gmra.mxu2 %v4855_v48  ;;  %864 = vmatmul.f32.gmra.mxu3 %v4807_v4  ;;  %7167 = vst [vmem:[#allocation38_spill] sm:$0xff] %v4972_v38  ;;  %v570_v36 = vrot.slane %v4983_v53, 1 }
  0x6e   : > { %1443 = vmatpush.msrb.mxu1 %v1426_v41  ;;  %930 = vmatpush.msrb.mxu2 %v911_v45  ;;  %v4975_v41 = vsel %vm552_vm1, %v606_v54, %v608_v15  ;;  %v4979_v45 = vsel %vm360_vm0, %v4964_v16, %v371_v18  ;;  %7173 = vst [vmem:[#allocation44_spill] sm:$0xff] %v5011_v39 }
  0x6f   : > { %1281 = vmatpush.msrb.mxu0 %v1264_v55  ;;  %1044 = vmatpush.msrb.mxu3 %v510_v12  ;;  %7168 = vst [vmem:[#allocation39_spill] sm:$0xff] %v4975_v41  ;;  %v4987_v55 = vsel %vm360_vm0, %v4966_v26, %v395_v35  ;;  %v571_v54 = vrot.slane %v4979_v45, 1  ;;  %v613_v35 = vrot.slane %v5011_v39, 1 }
  0x70   : > { %816 = vmatmul.f32.gmra.mxu1 %v4799_v2  ;;  %931 = vmatpush.msrb.mxu2 %v910_v14  ;;  %7169 = vst [vmem:[#allocation40_spill] sm:$0xff] %v4987_v55  ;;  %v611_v12 = vrot.slane %v4987_v55, 1 }
  0x71   : > { %1444 = vmatpush.msrb.mxu1 %v1425_v13  ;;  %1282 = vmatpush.msrb.mxu0 %v1263_v19  ;;  %v1262_v13 = vld [vmem:[#allocation5 + $0x128] sm:$0xff]  ;;  %v5002_v14 = vsel %vm552_vm1, %v570_v36, %v571_v54  ;;  %v5008_v19 = vsel %vm360_vm0, %v371_v18, 0.0  ;;  %v1423_v18 = vld [vmem:[#allocation7 + $0x120] sm:$0xff] }
  0x72   : > { %1045 = vmatpush.msrb.mxu3 %v509_v8  ;;  %932 = vmatpush.msrb.mxu2 %v909_v10  ;;  %7171 = vst [vmem:[#allocation42_spill] sm:$0xff] %v5002_v14  ;;  %v5005_v15 = vsel %vm552_vm1, %v610_v11, %v611_v12  ;;  %v305_v8 = vld [vmem:[%s4735_s30 + $0x48] sm:$0xff]  ;;  %v573_v36 = vrot.slane %v5008_v19, 1  ;;  %v508_v11 = vld [vmem:[#allocation7 + $0x18] sm:$0xff]  ;;  %v5035_v39 = vsel %vm552_vm1, %v611_v12, %v613_v35 }
  0x73   : > { %1445 = vmatpush.msrb.mxu1 %v1424_v9  ;;  %1283 = vmatpush.msrb.mxu0 %v1262_v13  ;;  %7172 = vst [vmem:[#allocation43_spill] sm:$0xff] %v5005_v15  ;;  %v320_v9 = vld [vmem:[%s4735_s30 + $0xc0] sm:$0xff]  ;;  %v321_v10 = vld [vmem:[%s4735_s30 + $0xc8] sm:$0xff]  ;;  %v908_v13 = vld [vmem:[#allocation7 + $0x98] sm:$0xff]  ;;  %v374_v61 = vrot.slane %v305_v8, 7 }
  0x74   : > { %706 = vmatmul.f32.gmra.mxu0 %v4882_v63  ;;  %1046 = vmatpush.msrb.mxu3 %v508_v11  ;;  %7176 = vst [vmem:[#allocation47_spill] sm:$0xff] %v5035_v39  ;;  %v907_v11 = vld [vmem:[#allocation7 + $0x90] sm:$0xff]  ;;  %v1260_v35 = vld [vmem:[#allocation5 + $0x118] sm:$0xff] }
  0x75   : > { %754 = vmatmul.f32.gmra.mxu2 %v4885_v0  ;;  %4070 = vmatmul.msk.f32.gmra.mxu3 %vm4766_vm2, %v4846_v44  ;;  %v1259_v44 = vld [vmem:[#allocation5 + $0x110] sm:$0xff] }
  0x76   : > { %1446 = vmatpush.msrb.mxu1 %v1423_v18  ;;  %933 = vmatpush.msrb.mxu2 %v908_v13 }
  0x78   : > { %4054 = vmatmul.msk.f32.gmra.mxu1 %vm4766_vm2, %v4844_v37  ;;  %934 = vmatpush.msrb.mxu2 %v907_v11  ;;  %v323_v11 = vld [vmem:[%s4735_s30 + $0xd8] sm:$0xff] }
  0x7c   : > { %709 = vmatmul.f32.gmra.mxu0 %v4912_v27 }
  0x7d   : > { %757 = vmatmul.f32.gmra.mxu2 %v4915_v28  ;;  %870 = vmatmul.f32.gmra.mxu3 %v4867_v51  ;;  %v5084_v28 = vrot.slane %v306_v34, 7 }
  0x80   : > { %822 = vmatmul.f32.gmra.mxu1 %v4859_v49 }
  0x84   : > { %712 = vmatmul.f32.gmra.mxu0 %v4942_v57 }
  0x85   : > { %760 = vmatmul.f32.gmra.mxu2 %v4945_v59  ;;  %4072 = vmatmul.msk.f32.gmra.mxu3 %vm4766_vm2, %v4906_v20  ;;  %v1261_v20 = vld [vmem:[#allocation5 + $0x120] sm:$0xff]  ;;  %v5026_v59 = vrot.slane %v320_v9, 7 }
  0x86   : > { %1284 = vmatpush.msrb.mxu0 %v1261_v20 }
  0x87   : > { %7174 = vst [vmem:[#allocation45_spill] sm:$0xff] %v5026_v59  ;;  %v5051_v9 = vsel %vm360_vm0, 0.0, %v5026_v59 }
  0x88   : > { %4056 = vmatmul.msk.f32.gmra.mxu1 %vm4766_vm2, %v4904_v17  ;;  %7178 = vst [vmem:[#allocation49_spill] sm:$0xff] %v5051_v9  ;;  %v615_v18 = vrot.slane %v5051_v9, 1  ;;  %1285 = vmatpush.msrb.mxu0 %v1260_v35  ;;  %v906_v35 = vld [vmem:[#allocation7 + $0x88] sm:$0xff] }
  0x89   : > { %935 = vmatpush.msrb.mxu2 %v906_v35 }
  0x8a   : > { %1286 = vmatpush.msrb.mxu0 %v1259_v44 }
  0x8c   : > { %715 = vmatmul.f32.gmra.mxu0 %v4972_v38 }
  0x8d   : > { %763 = vmatmul.f32.gmra.mxu2 %v4975_v41  ;;  %876 = vmatmul.f32.gmra.mxu3 %v4927_v33  ;;  %v5024_v41 = vrot.slane %v304_v62, 7  ;;  %v5068_v33 = vsel %vm360_vm0, %v374_v61, 0.0 }
  0x8f   : > { %v5039_v62 = vsel %vm360_vm0, %v5024_v41, %v374_v61  ;;  %v5043_v8 = vsel %vm360_vm0, 0.0, %v5024_v41  ;;  %v1421_v61 = vld [vmem:[#allocation7 + $0x110] sm:$0xff] }
  0x90   : > { %828 = vmatmul.f32.gmra.mxu1 %v4919_v29  ;;  %v576_v12 = vrot.slane %v5039_v62, 1 }
  0x94   : > { %718 = vmatmul.f32.gmra.mxu0 %v5002_v14 }
  0x95   : > { %766 = vmatmul.f32.gmra.mxu2 %v5005_v15  ;;  %4074 = vmatmul.msk.f32.gmra.mxu3 %vm4766_vm2, %v4966_v26  ;;  %v398_v15 = vrot.slane %v321_v10, 7  ;;  %v5032_v26 = vsel %vm552_vm1, %v571_v54, %v573_v36  ;;  %v575_v54 = vrot.slane %v5043_v8, 1  ;;  %v507_v10 = vld [vmem:[#allocation7 + $0x10] sm:$0xff]  ;;  %v1422_v36 = vld [vmem:[#allocation7 + $0x118] sm:$0xff] }
  0x96   : > { %7175 = vst [vmem:[#allocation46_spill] sm:$0xff] %v5032_v26  ;;  %1047 = vmatpush.msrb.mxu3 %v507_v10  ;;  %1447 = vmatpush.msrb.mxu1 %v1422_v36  ;;  %v307_v10 = vld [vmem:[%s4735_s30 + $0x58] sm:$0xff]  ;;  %v322_v36 = vld [vmem:[%s4735_s30 + $0xd0] sm:$0xff] }
  0x97   : > { %v5047_v20 = vsel %vm360_vm0, %v5026_v59, %v398_v15  ;;  %v5071_v9 = vsel %vm360_vm0, %v398_v15, 0.0  ;;  %v377_v7 = vrot.slane %v307_v10, 7  ;;  %v5086_v0 = vrot.slane %v322_v36, 7 }
  0x98   : > { %4058 = vmatmul.msk.f32.gmra.mxu1 %vm4766_vm2, %v4964_v16  ;;  %7177 = vst [vmem:[#allocation48_spill] sm:$0xff] %v5047_v20  ;;  %v616_v13 = vrot.slane %v5047_v20, 1  ;;  %v618_v15 = vrot.slane %v5071_v9, 1  ;;  %v5103_v10 = vsel %vm360_vm0, 0.0, %v5084_v28 }
  0x99   : > { %7181 = vst [vmem:[#allocation52_spill] sm:$0xff] %v5071_v9  ;;  %1448 = vmatpush.msrb.mxu1 %v1421_v61  ;;  %v5099_v34 = vsel %vm360_vm0, %v5084_v28, %v377_v7  ;;  %v5111_v36 = vsel %vm360_vm0, 0.0, %v5086_v0 }
  0x9a   : > { %7182 = vst [vmem:[#allocation53_spill] sm:$0xff] %v5086_v0  ;;  %v5095_v9 = vsel %vm552_vm1, %v616_v13, %v618_v15  ;;  %v620_v61 = vrot.slane %v5111_v36, 1  ;;  %v1258_v15 = vld [vmem:[#allocation5 + $0x108] sm:$0xff] }
  0x9b   : > { %7184 = vst [vmem:[#allocation55_spill] sm:$0xff] %v5095_v9  ;;  %1287 = vmatpush.msrb.mxu0 %v1258_v15  ;;  %v325_v15 = vld [vmem:[%s4735_s30 + $0xe8] sm:$0xff] }
  0x9c   : > { %721 = vmatmul.f32.gmra.mxu0 %v5032_v26  ;;  %7186 = vst [vmem:[#allocation57_spill] sm:$0xff] %v5111_v36  ;;  %v5128_v36 = vsel %vm360_vm0, %v377_v7, 0.0  ;;  %v1419_v7 = vld [vmem:[#allocation7 + $0x100] sm:$0xff]  ;;  %v404_v22 = vrot.slane %v325_v15, 7 }
  0x9d   : > { %769 = vmatmul.f32.gmra.mxu2 %v5035_v39  ;;  %882 = vmatmul.f32.gmra.mxu3 %v4987_v55  ;;  %v5062_v39 = vsel %vm552_vm1, %v575_v54, %v576_v12  ;;  %v5065_v55 = vsel %vm552_vm1, %v615_v18, %v616_v13  ;;  %v578_v54 = vrot.slane %v5068_v33, 1  ;;  %v506_v18 = vld [vmem:[#allocation7 + $0x8] sm:$0xff]  ;;  %v581_v13 = vrot.slane %v5099_v34, 1 }
  0x9e   : > { %7179 = vst [vmem:[#allocation50_spill] sm:$0xff] %v5062_v39  ;;  %1048 = vmatpush.msrb.mxu3 %v506_v18  ;;  %v905_v18 = vld [vmem:[#allocation7 + $0x80] sm:$0xff] }
  0x9f   : > { %7180 = vst [vmem:[#allocation51_spill] sm:$0xff] %v5065_v55  ;;  %936 = vmatpush.msrb.mxu2 %v905_v18  ;;  %v324_v18 = vld [vmem:[%s4735_s30 + $0xe0] sm:$0xff] }
  0xa0   : > { %834 = vmatmul.f32.gmra.mxu1 %v4979_v45  ;;  %v5146_v58 = vrot.slane %v324_v18, 7 }
  0xa2   : > { %7190 = vst [vmem:[#allocation61_spill] sm:$0xff] %v5146_v58  ;;  %v5167_v18 = vsel %vm360_vm0, %v5146_v58, %v404_v22  ;;  %v5171_v15 = vsel %vm360_vm0, 0.0, %v5146_v58 }
  0xa3   : > { %7193 = vst [vmem:[#allocation64_spill] sm:$0xff] %v5167_v18 }
  0xa4   : > { %724 = vmatmul.f32.gmra.mxu0 %v5062_v39 }
  0xa5   : > { %772 = vmatmul.f32.gmra.mxu2 %v5065_v55  ;;  %4076 = vmatmul.msk.f32.gmra.mxu3 %vm4766_vm2, %v5026_v59  ;;  %v401_v55 = vrot.slane %v323_v11, 7  ;;  %v5092_v59 = vsel %vm552_vm1, %v576_v12, %v578_v54  ;;  %v580_v12 = vrot.slane %v5103_v10, 1  ;;  %v505_v11 = vld [vmem:[#allocation7] sm:$0xff]  ;;  %v1420_v54 = vld [vmem:[#allocation7 + $0x108] sm:$0xff] }
  0xa6   : > { %7183 = vst [vmem:[#allocation54_spill] sm:$0xff] %v5092_v59  ;;  %1049 = vmatpush.msrb.mxu3 %v505_v11  ;;  %1449 = vmatpush.msrb.mxu1 %v1420_v54  ;;  %v308_v54 = vld [vmem:[%s4735_s30 + $0x60] sm:$0xff] }
  0xa7   : > { %v5107_v44 = vsel %vm360_vm0, %v5086_v0, %v401_v55  ;;  %v5131_v11 = vsel %vm360_vm0, %v401_v55, 0.0  ;;  %v5144_v48 = vrot.slane %v308_v54, 7 }
  0xa8   : > { %4060 = vmatmul.msk.f32.gmra.mxu1 %vm4766_vm2, %v5024_v41  ;;  %7185 = vst [vmem:[#allocation56_spill] sm:$0xff] %v5107_v44  ;;  %v621_v35 = vrot.slane %v5107_v44, 1  ;;  %v623_v55 = vrot.slane %v5131_v11, 1 }
  0xa9   : > { %7189 = vst [vmem:[#allocation60_spill] sm:$0xff] %v5131_v11  ;;  %1450 = vmatpush.msrb.mxu1 %v1419_v7  ;;  %v5159_v54 = vsel %vm360_vm0, %v5144_v48, %v380_v25  ;;  %v5163_v52 = vsel %vm360_vm0, 0.0, %v5144_v48  ;;  %v1929_v7 = vld [vmem:[#allocation5 + $0x278] sm:$0xff]  ;;  %v5188_v11 = vsel %vm360_vm0, %v380_v25, 0.0 }
  0xaa   : > { %v5125_v51 = vsel %vm552_vm1, %v620_v61, %v621_v35  ;;  %v1758_v61 = vld [vmem:[#allocation7 + $0x1f8] sm:$0xff] }
  0xab   : > { %7188 = vst [vmem:[#allocation59_spill] sm:$0xff] %v5125_v51  ;;  %1759 = vmatpush.msra.mxu3 %v1758_v61  ;;  %v625_v61 = vrot.slane %v5171_v15, 1 }
  0xac   : > { %727 = vmatmul.f32.gmra.mxu0 %v5092_v59 }
  0xad   : > { %775 = vmatmul.f32.gmra.mxu2 %v5095_v9  ;;  %888 = vmatmul.f32.gmra.mxu3 %v5047_v20  ;;  %v5122_v9 = vsel %vm552_vm1, %v580_v12, %v581_v13  ;;  %v1257_v20 = vld [vmem:[#allocation5 + $0x100] sm:$0xff]  ;;  %v583_v12 = vrot.slane %v5128_v36, 1 }
  0xae   : > { %7187 = vst [vmem:[#allocation58_spill] sm:$0xff] %v5122_v9  ;;  %1288 = vmatpush.msrb.mxu0 %v1257_v20  ;;  %v1596_v20 = vld [vmem:[#allocation5 + $0x1f8] sm:$0xff] }
  0xaf   : > { %1597 = vmatpush.msra.mxu2 %v1596_v20  ;;  %v626_v20 = vrot.slane %v5167_v18, 1 }
  0xb0   : > { %840 = vmatmul.f32.gmra.mxu1 %v5039_v62  ;;  %1930 = vmatpush.msra.mxu0 %v1929_v7  ;;  %v1595_v7 = vld [vmem:[#allocation5 + $0x1f0] sm:$0xff] }
  0xb1   : > { %1598 = vmatpush.msra.mxu2 %v1595_v7 }
  0xb4   : > { %730 = vmatmul.f32.gmra.mxu0 %v5122_v9 }
  0xb5   : > { %778 = vmatmul.f32.gmra.mxu2 %v5125_v51  ;;  %4078 = vmatmul.msk.f32.gmra.mxu3 %vm4766_vm2, %v5086_v0  ;;  %v5152_v0 = vsel %vm552_vm1, %v581_v13, %v583_v12  ;;  %v5155_v51 = vsel %vm552_vm1, %v621_v35, %v623_v55  ;;  %v585_v13 = vrot.slane %v5163_v52, 1  ;;  %v586_v35 = vrot.slane %v5159_v54, 1  ;;  %v2091_v12 = vld [vmem:[#allocation7 + $0x278] sm:$0xff] }
  0xb6   : > { %7191 = vst [vmem:[#allocation62_spill] sm:$0xff] %v5152_v0  ;;  %2092 = vmatpush.msra.mxu1 %v2091_v12  ;;  %v1757_v12 = vld [vmem:[#allocation7 + $0x1f0] sm:$0xff] }
  0xb7   : > { %7192 = vst [vmem:[#allocation63_spill] sm:$0xff] %v5155_v51  ;;  %v5182_v55 = vsel %vm552_vm1, %v585_v13, %v586_v35  ;;  %v588_v13 = vrot.slane %v5188_v11, 1  ;;  %1760 = vmatpush.msra.mxu3 %v1757_v12  ;;  %v7199_v12 = vmov 0.0  }
  0xb8   : > { %4062 = vmatmul.msk.f32.gmra.mxu1 %vm4766_vm2, %v5084_v28  ;;  %7194 = vst [vmem:[#allocation65_spill] sm:$0xff] %v5182_v55  ;;  %v5214_v7 = vrot.slane %v7199_v12, 2 }
  0xba   : > { %7200 = vst [vmem:[#allocation70_spill] sm:$0xff] %v5214_v7 }
  0xbc   : > { %733 = vmatmul.f32.gmra.mxu0 %v5152_v0 }
  0xbd   : > { %781 = vmatmul.f32.gmra.mxu2 %v5155_v51  ;;  %894 = vmatmul.f32.gmra.mxu3 %v5107_v44  ;;  %v5185_v51 = vsel %vm552_vm1, %v625_v61, %v626_v20  ;;  %v5191_v44 = vsel %vm360_vm0, %v404_v22, 0.0  ;;  %v5204_v22 = vsel %vm552_vm1, %v586_v35, %v588_v13  ;;  %v1756_v13 = vld [vmem:[#allocation7 + $0x1e8] sm:$0xff] }
  0xbe   : > { %7195 = vst [vmem:[#allocation66_spill] sm:$0xff] %v5185_v51  ;;  %v628_v61 = vrot.slane %v5191_v44, 1  ;;  %1761 = vmatpush.msra.mxu3 %v1756_v13  ;;  %v1151_v13 = vrot.slane %v4799_v2, 2 }
  0xbf   : > { %7196 = vst [vmem:[#allocation67_spill] sm:$0xff] %v5191_v44  ;;  %v1928_v44 = vld [vmem:[#allocation5 + $0x270] sm:$0xff] }
  0xc0   : > { %846 = vmatmul.f32.gmra.mxu1 %v5099_v34  ;;  %7197 = vst [vmem:[#allocation68_spill] sm:$0xff] %v5204_v22  ;;  %v5207_v25 = vsel %vm552_vm1, %v626_v20, %v628_v61  ;;  %1931 = vmatpush.msra.mxu0 %v1928_v44  ;;  %v1594_v61 = vld [vmem:[#allocation5 + $0x1e8] sm:$0xff] }
  0xc1   : > { %7198 = vst [vmem:[#allocation69_spill] sm:$0xff] %v5207_v25  ;;  %1599 = vmatpush.msra.mxu2 %v1594_v61  ;;  %v2089_v61 = vld [vmem:[#allocation7 + $0x268] sm:$0xff] }
  0xc4   : > { %736 = vmatmul.f32.gmra.mxu0 %v5182_v55 }
  0xc5   : > { %784 = vmatmul.f32.gmra.mxu2 %v5185_v51  ;;  %4080 = vmatmul.msk.f32.gmra.mxu3 %vm4766_vm2, %v5146_v58  ;;  %v2090_v58 = vld [vmem:[#allocation7 + $0x270] sm:$0xff] }
  0xc6   : > { %2093 = vmatpush.msra.mxu1 %v2090_v58 }
  0xc8   : > { %4064 = vmatmul.msk.f32.gmra.mxu1 %vm4766_vm2, %v5144_v48 }
  0xc9   : > { %2094 = vmatpush.msra.mxu1 %v2089_v61  ;;  %v1755_v61 = vld [vmem:[#allocation7 + $0x1e0] sm:$0xff] }
  0xca   : > { %1762 = vmatpush.msra.mxu3 %v1755_v61  ;;  %v1155_v61 = vrot.slane %v4863_v50, 2 }
  0xcc   : > { %739 = vmatmul.f32.gmra.mxu0 %v5204_v22 }
  0xcd   : > { %787 = vmatmul.f32.gmra.mxu2 %v5207_v25  ;;  %900 = vmatmul.f32.gmra.mxu3 %v5167_v18  ;;  %v1927_v18 = vld [vmem:[#allocation5 + $0x268] sm:$0xff] }
  0xce   : > { %1932 = vmatpush.msra.mxu0 %v1927_v18  ;;  %v1153_v18 = vrot.slane %v4828_v23, 2 }
  0xd0   : > { %852 = vmatmul.f32.gmra.mxu1 %v5159_v54 }
  0xd1   : > { %v5216_v35 = vpop.f32.mrf.mxu0 }
  0xd2   : > { %7201 = vst [vmem:[#allocation71_spill] sm:$0xff] %v5216_v35 }
  0xd4   : > { %1289 = vmatmul.f32.vlgmr.msrb.gmra.mxu0 %v5214_v7 }
  0xd5   : > { %937 = vmatmul.f32.vlgmr.msrb.gmra.mxu2 %v4760_v40  ;;  %1050 = vmatmul.f32.vlgmr.msrb.gmra.mxu3 %v7199_v12  ;;  %v5221_v20 = vpop.f32.mrf.mxu1 }
  0xd6   : > { %7202 = vst [vmem:[#allocation72_spill] sm:$0xff] %v5221_v20  ;;  %v1150_v20 = vrot.slane %v4803_v3, 2 }
  0xd8   : > { %v743_v58 = vpop.f32.mrf.mxu2  ;;  %v856_v44 = vpop.f32.mrf.mxu3  ;;  %1451 = vmatmul.f32.vlgmr.msrb.gmra.mxu1 %v5214_v7 }
  0xd9   : > { %v5224_v25 = vadd.f32 %v856_v44, %v743_v58  ;;  %v5226_v51 = vpop.f32.mrf.mxu0 }
  0xdb   : > { %7203 = vst [vmem:[#allocation73_spill] sm:$0xff] %v5224_v25 }
  0xdc   : > { %1292 = vmatmul.f32.gmra.mxu0 %v5214_v7 }
  0xdd   : > { %940 = vmatmul.f32.gmra.mxu2 %v4760_v40  ;;  %1053 = vmatmul.f32.gmra.mxu3 %v7199_v12  ;;  %v5231_v35 = vpop.f32.mrf.mxu1  ;;  %v5241_v12 = vsel %vm1147_vm3, %v1150_v20, %v1151_v13 }
  0xde   : > { %7206 = vst [vmem:[#allocation76_spill] sm:$0xff] %v5241_v12 }
  0xe0   : > { %v746_v58 = vpop.f32.mrf.mxu2  ;;  %v859_v44 = vpop.f32.mrf.mxu3  ;;  %1454 = vmatmul.f32.gmra.mxu1 %v5214_v7 }
  0xe1   : > { %v5236_v25 = vadd.f32 %v859_v44, %v746_v58  ;;  %v5238_v40 = vpop.f32.mrf.mxu0  ;;  %v1593_v58 = vld [vmem:[#allocation5 + $0x1e0] sm:$0xff] }
  0xe2   : > { %7205 = vst [vmem:[#allocation75_spill] sm:$0xff] %v5238_v40  ;;  %1600 = vmatpush.msra.mxu2 %v1593_v58  ;;  %v5257_v40 = vsel %vm1147_vm3, %v1151_v13, %v1153_v18  ;;  %v1156_v58 = vrot.slane %v4859_v49, 2 }
  0xe3   : > { %7204 = vst [vmem:[#allocation74_spill] sm:$0xff] %v5236_v25 }
  0xe4   : > { %1295 = vmatmul.f32.gmra.mxu0 %v5241_v12  ;;  %7209 = vst [vmem:[#allocation79_spill] sm:$0xff] %v5257_v40 }
  0xe5   : > { %943 = vmatmul.f32.gmra.mxu2 %v4822_v21  ;;  %4082 = vmatmul.msk.f32.gmra.mxu3 %vm4766_vm2, %v4787_v56  ;;  %v5248_v3 = vpop.f32.mrf.mxu1 }
  0xe8   : > { %v749_v44 = vpop.f32.mrf.mxu2  ;;  %v862_v7 = vpop.f32.mrf.mxu3  ;;  %1457 = vmatmul.f32.gmra.mxu1 %v5241_v12  ;;  %v2088_v12 = vld [vmem:[#allocation7 + $0x260] sm:$0xff] }
  0xe9   : > { %v5252_v20 = vadd.f32 %v862_v7, %v749_v44  ;;  %v5254_v25 = vpop.f32.mrf.mxu0  ;;  %v1926_v7 = vld [vmem:[#allocation5 + $0x260] sm:$0xff]  ;;  %2095 = vmatpush.msra.mxu1 %v2088_v12  ;;  %v1158_v12 = vrot.slane %v4888_v6, 2 }
  0xea   : > { %7208 = vst [vmem:[#allocation78_spill] sm:$0xff] %v5254_v25  ;;  %1933 = vmatpush.msra.mxu0 %v1926_v7  ;;  %v5272_v25 = vsel %vm1147_vm3, %v1155_v61, %v1156_v58  ;;  %v1754_v7 = vld [vmem:[#allocation7 + $0x1d8] sm:$0xff] }
  0xeb   : > { %7207 = vst [vmem:[#allocation77_spill] sm:$0xff] %v5252_v20  ;;  %1763 = vmatpush.msra.mxu3 %v1754_v7  ;;  %v1160_v7 = vrot.slane %v4923_v32, 2 }
  0xec   : > { %1298 = vmatmul.f32.gmra.mxu0 %v5257_v40  ;;  %7213 = vst [vmem:[#allocation83_spill] sm:$0xff] %v5272_v25 }
  0xed   : > { %946 = vmatmul.f32.gmra.mxu2 %v4852_v47  ;;  %1059 = vmatmul.f32.gmra.mxu3 %v4799_v2  ;;  %v5262_v23 = vpop.f32.mrf.mxu1 }
  0xee   : > { %7210 = vst [vmem:[#allocation80_spill] sm:$0xff] %v5262_v23  ;;  %v7282_v23 = vld [vmem:[#allocation31_spill] sm:$0xff] }
  0xf0   : > { %v752_v44 = vpop.f32.mrf.mxu2  ;;  %v865_v20 = vpop.f32.mrf.mxu3  ;;  %1460 = vmatmul.f32.gmra.mxu1 %v5257_v40 }
  0xf1   : > { %v5267_v13 = vadd.f32 %v865_v20, %v752_v44  ;;  %v5269_v18 = vpop.f32.mrf.mxu0  ;;  %v1592_v20 = vld [vmem:[#allocation5 + $0x1d8] sm:$0xff] }
  0xf2   : > { %7212 = vst [vmem:[#allocation82_spill] sm:$0xff] %v5269_v18  ;;  %1601 = vmatpush.msra.mxu2 %v1592_v20  ;;  %v5288_v18 = vsel %vm1147_vm3, %v1156_v58, %v1158_v12  ;;  %v1161_v20 = vrot.slane %v4919_v29, 2 }
  0xf3   : > { %7211 = vst [vmem:[#allocation81_spill] sm:$0xff] %v5267_v13 }
  0xf4   : > { %1301 = vmatmul.f32.gmra.mxu0 %v5272_v25  ;;  %7217 = vst [vmem:[#allocation87_spill] sm:$0xff] %v5288_v18 }
  0xf5   : > { %949 = vmatmul.f32.gmra.mxu2 %v4882_v63  ;;  %4084 = vmatmul.msk.f32.gmra.mxu3 %vm4766_vm2, %v4844_v37  ;;  %v5279_v50 = vpop.f32.mrf.mxu1 }
  0xf6   : > { %7214 = vst [vmem:[#allocation84_spill] sm:$0xff] %v5279_v50  ;;  %v7277_v50 = vld [vmem:[#allocation22_spill] sm:$0xff] }
  0xf8   : > { %v755_v44 = vpop.f32.mrf.mxu2  ;;  %v868_v13 = vpop.f32.mrf.mxu3  ;;  %1463 = vmatmul.f32.gmra.mxu1 %v5272_v25  ;;  %v2087_v25 = vld [vmem:[#allocation7 + $0x258] sm:$0xff] }
  0xf9   : > { %v5283_v61 = vadd.f32 %v868_v13, %v755_v44  ;;  %v5285_v40 = vpop.f32.mrf.mxu0  ;;  %v1925_v13 = vld [vmem:[#allocation5 + $0x258] sm:$0xff]  ;;  %2096 = vmatpush.msra.mxu1 %v2087_v25  ;;  %v1163_v25 = vrot.slane %v4948_v60, 2 }
  0xfa   : > { %7216 = vst [vmem:[#allocation86_spill] sm:$0xff] %v5285_v40  ;;  %1934 = vmatpush.msra.mxu0 %v1925_v13  ;;  %v5303_v40 = vsel %vm1147_vm3, %v1160_v7, %v1161_v20  ;;  %v1753_v13 = vld [vmem:[#allocation7 + $0x1d0] sm:$0xff] }
  0xfb   : > { %7215 = vst [vmem:[#allocation85_spill] sm:$0xff] %v5283_v61  ;;  %1764 = vmatpush.msra.mxu3 %v1753_v13  ;;  %v1165_v13 = vrot.slane %v4983_v53, 2  ;;  %v1168_v53 = vrot.slane %v5008_v19, 2 }
  0xfc   : > { %1304 = vmatmul.f32.gmra.mxu0 %v5288_v18  ;;  %7221 = vst [vmem:[#allocation91_spill] sm:$0xff] %v5303_v40 }
  0xfd   : > { %952 = vmatmul.f32.gmra.mxu2 %v4912_v27  ;;  %1065 = vmatmul.f32.gmra.mxu3 %v4859_v49  ;;  %v5293_v6 = vpop.f32.mrf.mxu1 }
  0xfe   : > { %7218 = vst [vmem:[#allocation88_spill] sm:$0xff] %v5293_v6 }
 0x100   : > { %v758_v44 = vpop.f32.mrf.mxu2  ;;  %v871_v61 = vpop.f32.mrf.mxu3  ;;  %1466 = vmatmul.f32.gmra.mxu1 %v5288_v18 }
 0x101   : > { %v5298_v58 = vadd.f32 %v871_v61, %v758_v44  ;;  %v5300_v12 = vpop.f32.mrf.mxu0  ;;  %v1591_v61 = vld [vmem:[#allocation5 + $0x1d0] sm:$0xff] }
 0x102   : > { %7220 = vst [vmem:[#allocation90_spill] sm:$0xff] %v5300_v12  ;;  %1602 = vmatpush.msra.mxu2 %v1591_v61  ;;  %v5319_v12 = vsel %vm1147_vm3, %v1161_v20, %v1163_v25  ;;  %v1166_v61 = vrot.slane %v4979_v45, 2 }
 0x103   : > { %7219 = vst [vmem:[#allocation89_spill] sm:$0xff] %v5298_v58 }
 0x104   : > { %1307 = vmatmul.f32.gmra.mxu0 %v5303_v40  ;;  %7225 = vst [vmem:[#allocation95_spill] sm:$0xff] %v5319_v12 }
 0x105   : > { %955 = vmatmul.f32.gmra.mxu2 %v4942_v57  ;;  %4086 = vmatmul.msk.f32.gmra.mxu3 %vm4766_vm2, %v4904_v17  ;;  %v5310_v32 = vpop.f32.mrf.mxu1 }
 0x106   : > { %7222 = vst [vmem:[#allocation92_spill] sm:$0xff] %v5310_v32 }
 0x108   : > { %v761_v44 = vpop.f32.mrf.mxu2  ;;  %v874_v58 = vpop.f32.mrf.mxu3  ;;  %1469 = vmatmul.f32.gmra.mxu1 %v5303_v40  ;;  %v2086_v40 = vld [vmem:[#allocation7 + $0x250] sm:$0xff] }
 0x109   : > { %v5314_v7 = vadd.f32 %v874_v58, %v761_v44  ;;  %v5316_v18 = vpop.f32.mrf.mxu0  ;;  %v1924_v58 = vld [vmem:[#allocation5 + $0x250] sm:$0xff]  ;;  %2097 = vmatpush.msra.mxu1 %v2086_v40 }
 0x10a   : > { %7224 = vst [vmem:[#allocation94_spill] sm:$0xff] %v5316_v18  ;;  %1935 = vmatpush.msra.mxu0 %v1924_v58  ;;  %v5334_v18 = vsel %vm1147_vm3, %v1165_v13, %v1166_v61  ;;  %v1752_v58 = vld [vmem:[#allocation7 + $0x1c8] sm:$0xff] }
 0x10b   : > { %7223 = vst [vmem:[#allocation93_spill] sm:$0xff] %v5314_v7  ;;  %1765 = vmatpush.msra.mxu3 %v1752_v58  ;;  %v1170_v58 = vrot.slane %v5043_v8, 2 }
 0x10c   : > { %1310 = vmatmul.f32.gmra.mxu0 %v5319_v12  ;;  %7229 = vst [vmem:[#allocation99_spill] sm:$0xff] %v5334_v18 }
 0x10d   : > { %958 = vmatmul.f32.gmra.mxu2 %v4972_v38  ;;  %1071 = vmatmul.f32.gmra.mxu3 %v4919_v29  ;;  %v5324_v60 = vpop.f32.mrf.mxu1 }
 0x10e   : > { %7226 = vst [vmem:[#allocation96_spill] sm:$0xff] %v5324_v60  ;;  %v7272_v60 = vld [vmem:[#allocation24_spill] sm:$0xff] }
 0x10f   : > { %v1196_v32 = vrot.slane %v7272_v60, 2 }
 0x110   : > { %v764_v44 = vpop.f32.mrf.mxu2  ;;  %v877_v7 = vpop.f32.mrf.mxu3  ;;  %1472 = vmatmul.f32.gmra.mxu1 %v5319_v12 }
 0x111   : > { %v5329_v20 = vadd.f32 %v877_v7, %v764_v44  ;;  %v5331_v25 = vpop.f32.mrf.mxu0  ;;  %v1590_v7 = vld [vmem:[#allocation5 + $0x1c8] sm:$0xff] }
 0x112   : > { %7228 = vst [vmem:[#allocation98_spill] sm:$0xff] %v5331_v25  ;;  %1603 = vmatpush.msra.mxu2 %v1590_v7  ;;  %v5350_v25 = vsel %vm1147_vm3, %v1166_v61, %v1168_v53  ;;  %v1171_v7 = vrot.slane %v5039_v62, 2 }
 0x113   : > { %7227 = vst [vmem:[#allocation97_spill] sm:$0xff] %v5329_v20 }
 0x114   : > { %1313 = vmatmul.f32.gmra.mxu0 %v5334_v18  ;;  %7233 = vst [vmem:[#allocation103_spill] sm:$0xff] %v5350_v25 }
 0x115   : > { %961 = vmatmul.f32.gmra.mxu2 %v5002_v14  ;;  %4088 = vmatmul.msk.f32.gmra.mxu3 %vm4766_vm2, %v4964_v16  ;;  %v5341_v40 = vpop.f32.mrf.mxu1 }
 0x116   : > { %7230 = vst [vmem:[#allocation100_spill] sm:$0xff] %v5341_v40  ;;  %v7270_v40 = vld [vmem:[#allocation23_spill] sm:$0xff] }
 0x118   : > { %v767_v44 = vpop.f32.mrf.mxu2  ;;  %v880_v20 = vpop.f32.mrf.mxu3  ;;  %1475 = vmatmul.f32.gmra.mxu1 %v5334_v18  ;;  %v2085_v18 = vld [vmem:[#allocation7 + $0x248] sm:$0xff] }
 0x119   : > { %v5345_v13 = vadd.f32 %v880_v20, %v767_v44  ;;  %v5347_v12 = vpop.f32.mrf.mxu0  ;;  %v1923_v20 = vld [vmem:[#allocation5 + $0x248] sm:$0xff]  ;;  %2098 = vmatpush.msra.mxu1 %v2085_v18  ;;  %v1173_v18 = vrot.slane %v5068_v33, 2 }
 0x11a   : > { %7232 = vst [vmem:[#allocation102_spill] sm:$0xff] %v5347_v12  ;;  %1936 = vmatpush.msra.mxu0 %v1923_v20  ;;  %v5365_v12 = vsel %vm1147_vm3, %v1170_v58, %v1171_v7  ;;  %v1751_v20 = vld [vmem:[#allocation7 + $0x1c0] sm:$0xff] }
 0x11b   : > { %7231 = vst [vmem:[#allocation101_spill] sm:$0xff] %v5345_v13  ;;  %1766 = vmatpush.msra.mxu3 %v1751_v20  ;;  %v1175_v20 = vrot.slane %v5103_v10, 2 }
 0x11c   : > { %1316 = vmatmul.f32.gmra.mxu0 %v5350_v25  ;;  %7237 = vst [vmem:[#allocation107_spill] sm:$0xff] %v5365_v12 }
 0x11d   : > { %964 = vmatmul.f32.gmra.mxu2 %v5032_v26  ;;  %1077 = vmatmul.f32.gmra.mxu3 %v4979_v45  ;;  %v5355_v19 = vpop.f32.mrf.mxu1 }
 0x11e   : > { %7234 = vst [vmem:[#allocation104_spill] sm:$0xff] %v5355_v19 }
 0x120   : > { %v770_v44 = vpop.f32.mrf.mxu2  ;;  %v883_v13 = vpop.f32.mrf.mxu3  ;;  %1478 = vmatmul.f32.gmra.mxu1 %v5350_v25 }
 0x121   : > { %v5360_v61 = vadd.f32 %v883_v13, %v770_v44  ;;  %v5362_v53 = vpop.f32.mrf.mxu0  ;;  %v1589_v13 = vld [vmem:[#allocation5 + $0x1c0] sm:$0xff] }
 0x122   : > { %7236 = vst [vmem:[#allocation106_spill] sm:$0xff] %v5362_v53  ;;  %1604 = vmatpush.msra.mxu2 %v1589_v13  ;;  %v5381_v53 = vsel %vm1147_vm3, %v1171_v7, %v1173_v18  ;;  %v1176_v13 = vrot.slane %v5099_v34, 2 }
 0x123   : > { %7235 = vst [vmem:[#allocation105_spill] sm:$0xff] %v5360_v61 }
 0x124   : > { %1319 = vmatmul.f32.gmra.mxu0 %v5365_v12  ;;  %7241 = vst [vmem:[#allocation111_spill] sm:$0xff] %v5381_v53 }
 0x125   : > { %967 = vmatmul.f32.gmra.mxu2 %v5062_v39  ;;  %4090 = vmatmul.msk.f32.gmra.mxu3 %vm4766_vm2, %v5024_v41  ;;  %v5372_v8 = vpop.f32.mrf.mxu1 }
 0x126   : > { %7238 = vst [vmem:[#allocation108_spill] sm:$0xff] %v5372_v8 }
 0x128   : > { %v773_v44 = vpop.f32.mrf.mxu2  ;;  %v886_v61 = vpop.f32.mrf.mxu3  ;;  %1481 = vmatmul.f32.gmra.mxu1 %v5365_v12  ;;  %v2084_v12 = vld [vmem:[#allocation7 + $0x240] sm:$0xff] }
 0x129   : > { %v5376_v58 = vadd.f32 %v886_v61, %v773_v44  ;;  %v5378_v25 = vpop.f32.mrf.mxu0  ;;  %v1922_v61 = vld [vmem:[#allocation5 + $0x240] sm:$0xff]  ;;  %2099 = vmatpush.msra.mxu1 %v2084_v12  ;;  %v1178_v12 = vrot.slane %v5128_v36, 2 }
 0x12a   : > { %7240 = vst [vmem:[#allocation110_spill] sm:$0xff] %v5378_v25  ;;  %1937 = vmatpush.msra.mxu0 %v1922_v61  ;;  %v5396_v25 = vsel %vm1147_vm3, %v1175_v20, %v1176_v13  ;;  %v1750_v61 = vld [vmem:[#allocation7 + $0x1b8] sm:$0xff] }
 0x12b   : > { %7239 = vst [vmem:[#allocation109_spill] sm:$0xff] %v5376_v58  ;;  %1767 = vmatpush.msra.mxu3 %v1750_v61  ;;  %v1180_v61 = vrot.slane %v5163_v52, 2 }
 0x12c   : > { %1322 = vmatmul.f32.gmra.mxu0 %v5381_v53  ;;  %7245 = vst [vmem:[#allocation115_spill] sm:$0xff] %v5396_v25 }
 0x12d   : > { %970 = vmatmul.f32.gmra.mxu2 %v5092_v59  ;;  %1083 = vmatmul.f32.gmra.mxu3 %v5039_v62  ;;  %v5386_v33 = vpop.f32.mrf.mxu1 }
 0x12e   : > { %7242 = vst [vmem:[#allocation112_spill] sm:$0xff] %v5386_v33 }
 0x130   : > { %v776_v44 = vpop.f32.mrf.mxu2  ;;  %v889_v58 = vpop.f32.mrf.mxu3  ;;  %1484 = vmatmul.f32.gmra.mxu1 %v5381_v53 }
 0x131   : > { %v5391_v7 = vadd.f32 %v889_v58, %v776_v44  ;;  %v5393_v18 = vpop.f32.mrf.mxu0  ;;  %v1588_v58 = vld [vmem:[#allocation5 + $0x1b8] sm:$0xff] }
 0x132   : > { %7244 = vst [vmem:[#allocation114_spill] sm:$0xff] %v5393_v18  ;;  %1605 = vmatpush.msra.mxu2 %v1588_v58  ;;  %v5412_v18 = vsel %vm1147_vm3, %v1176_v13, %v1178_v12  ;;  %v1181_v58 = vrot.slane %v5159_v54, 2 }
 0x133   : > { %7243 = vst [vmem:[#allocation113_spill] sm:$0xff] %v5391_v7 }
 0x134   : > { %1325 = vmatmul.f32.gmra.mxu0 %v5396_v25  ;;  %7249 = vst [vmem:[#allocation119_spill] sm:$0xff] %v5412_v18 }
 0x135   : > { %973 = vmatmul.f32.gmra.mxu2 %v5122_v9  ;;  %4092 = vmatmul.msk.f32.gmra.mxu3 %vm4766_vm2, %v5084_v28  ;;  %v5403_v10 = vpop.f32.mrf.mxu1 }
 0x136   : > { %7246 = vst [vmem:[#allocation116_spill] sm:$0xff] %v5403_v10  ;;  %v7265_v10 = vld [vmem:[#allocation18_spill] sm:$0xff] }
 0x138   : > { %v779_v44 = vpop.f32.mrf.mxu2  ;;  %v892_v7 = vpop.f32.mrf.mxu3  ;;  %1487 = vmatmul.f32.gmra.mxu1 %v5396_v25  ;;  %v2083_v25 = vld [vmem:[#allocation7 + $0x238] sm:$0xff] }
 0x139   : > { %v5407_v20 = vadd.f32 %v892_v7, %v779_v44  ;;  %v5409_v53 = vpop.f32.mrf.mxu0  ;;  %v1921_v7 = vld [vmem:[#allocation5 + $0x238] sm:$0xff]  ;;  %2100 = vmatpush.msra.mxu1 %v2083_v25  ;;  %v1183_v25 = vrot.slane %v5188_v11, 2 }
 0x13a   : > { %7248 = vst [vmem:[#allocation118_spill] sm:$0xff] %v5409_v53  ;;  %1938 = vmatpush.msra.mxu0 %v1921_v7  ;;  %v5427_v53 = vsel %vm1147_vm3, %v1180_v61, %v1181_v58  ;;  %v1749_v7 = vld [vmem:[#allocation7 + $0x1b0] sm:$0xff] }
 0x13b   : > { %7247 = vst [vmem:[#allocation117_spill] sm:$0xff] %v5407_v20  ;;  %1768 = vmatpush.msra.mxu3 %v1749_v7  ;;  %v1185_v7 = vrot.slane %v4755_v31, 2 }
 0x13c   : > { %1328 = vmatmul.f32.gmra.mxu0 %v5412_v18  ;;  %7253 = vst [vmem:[#allocation123_spill] sm:$0xff] %v5427_v53 }
 0x13d   : > { %976 = vmatmul.f32.gmra.mxu2 %v5152_v0  ;;  %1089 = vmatmul.f32.gmra.mxu3 %v5099_v34  ;;  %v5417_v36 = vpop.f32.mrf.mxu1 }
 0x13e   : > { %7250 = vst [vmem:[#allocation120_spill] sm:$0xff] %v5417_v36 }
 0x140   : > { %v782_v44 = vpop.f32.mrf.mxu2  ;;  %v895_v20 = vpop.f32.mrf.mxu3  ;;  %1490 = vmatmul.f32.gmra.mxu1 %v5412_v18 }
 0x141   : > { %v5422_v13 = vadd.f32 %v895_v20, %v782_v44  ;;  %v5424_v12 = vpop.f32.mrf.mxu0  ;;  %v1587_v20 = vld [vmem:[#allocation5 + $0x1b0] sm:$0xff] }
 0x142   : > { %7252 = vst [vmem:[#allocation122_spill] sm:$0xff] %v5424_v12  ;;  %1606 = vmatpush.msra.mxu2 %v1587_v20  ;;  %v5443_v12 = vsel %vm1147_vm3, %v1181_v58, %v1183_v25  ;;  %v1186_v20 = vrot.slane %v4751_v30, 2 }
 0x143   : > { %7251 = vst [vmem:[#allocation121_spill] sm:$0xff] %v5422_v13 }
 0x144   : > { %1331 = vmatmul.f32.gmra.mxu0 %v5427_v53  ;;  %7257 = vst [vmem:[#allocation127_spill] sm:$0xff] %v5443_v12 }
 0x145   : > { %979 = vmatmul.f32.gmra.mxu2 %v5182_v55  ;;  %4094 = vmatmul.msk.f32.gmra.mxu3 %vm4766_vm2, %v5144_v48  ;;  %v5434_v52 = vpop.f32.mrf.mxu1 }
 0x146   : > { %7254 = vst [vmem:[#allocation124_spill] sm:$0xff] %v5434_v52 }
 0x148   : > { %v785_v44 = vpop.f32.mrf.mxu2  ;;  %v898_v13 = vpop.f32.mrf.mxu3  ;;  %1493 = vmatmul.f32.gmra.mxu1 %v5427_v53  ;;  %v2082_v53 = vld [vmem:[#allocation7 + $0x230] sm:$0xff] }
 0x149   : > { %v5438_v61 = vadd.f32 %v898_v13, %v785_v44  ;;  %v5440_v18 = vpop.f32.mrf.mxu0  ;;  %v1920_v13 = vld [vmem:[#allocation5 + $0x230] sm:$0xff]  ;;  %2101 = vmatpush.msra.mxu1 %v2082_v53  ;;  %v1188_v53 = vrot.slane %v4771_v46, 2 }
 0x14a   : > { %7256 = vst [vmem:[#allocation126_spill] sm:$0xff] %v5440_v18  ;;  %1939 = vmatpush.msra.mxu0 %v1920_v13  ;;  %v5458_v18 = vsel %vm1147_vm3, %v1185_v7, %v1186_v20  ;;  %v1748_v13 = vld [vmem:[#allocation7 + $0x1a8] sm:$0xff] }
 0x14b   : > { %7255 = vst [vmem:[#allocation125_spill] sm:$0xff] %v5438_v61  ;;  %1769 = vmatpush.msra.mxu3 %v1748_v13  ;;  %v1191_v13 = vrot.slane %v4807_v4, 2 }
 0x14c   : > { %1334 = vmatmul.f32.gmra.mxu0 %v5443_v12  ;;  %7260 = vst [vmem:[#allocation130_spill] sm:$0xff] %v5458_v18 }
 0x14d   : > { %982 = vmatmul.f32.gmra.mxu2 %v5204_v22  ;;  %1095 = vmatmul.f32.gmra.mxu3 %v5159_v54  ;;  %v5448_v11 = vpop.f32.mrf.mxu1 }
 0x14e   : > { %7258 = vst [vmem:[#allocation128_spill] sm:$0xff] %v5448_v11  ;;  %v5470_v11 = vsel %vm1147_vm3, %v1186_v20, %v1188_v53 }
 0x14f   : > { %7261 = vst [vmem:[#allocation131_spill] sm:$0xff] %v5470_v11 }
 0x150   : > { %v788_v44 = vpop.f32.mrf.mxu2  ;;  %v901_v61 = vpop.f32.mrf.mxu3  ;;  %1496 = vmatmul.f32.gmra.mxu1 %v5443_v12  ;;  %v1586_v12 = vld [vmem:[#allocation5 + $0x1a8] sm:$0xff] }
 0x151   : > { %v5453_v58 = vadd.f32 %v901_v61, %v788_v44  ;;  %v5455_v25 = vpop.f32.mrf.mxu0  ;;  %1607 = vmatpush.msra.mxu2 %v1586_v12  ;;  %v1190_v12 = vrot.slane %v4811_v5, 2  ;;  %v7264_v5 = vld [vmem:[#allocation20_spill] sm:$0xff] }
 0x153   : > { %7259 = vst [vmem:[#allocation129_spill] sm:$0xff] %v5453_v58 }
 0x154   : > { %1337 = vmatmul.f32.gmra.mxu0 %v5458_v18 }
 0x155   : > { %985 = vmatmul.f32.gmra.mxu2 %v4763_v42  ;;  %4096 = vmatmul.msk.f32.gmra.mxu3 %vm4766_vm2, %v4747_v24  ;;  %v1452_v31 = vpop.f32.mrf.mxu1 }
 0x158   : > { %v938_v61 = vpop.f32.mrf.mxu2  ;;  %v1051_v44 = vpop.f32.mrf.mxu3  ;;  %1499 = vmatmul.f32.gmra.mxu1 %v5458_v18  ;;  %v2081_v18 = vld [vmem:[#allocation7 + $0x228] sm:$0xff] }
 0x159   : > { %v1052_v7 = vadd.f32 %v1051_v44, %v938_v61  ;;  %v5467_v58 = vpop.f32.mrf.mxu0  ;;  %v1919_v61 = vld [vmem:[#allocation5 + $0x228] sm:$0xff]  ;;  %2102 = vmatpush.msra.mxu1 %v2081_v18 }
 0x15a   : > { %1940 = vmatpush.msra.mxu0 %v1919_v61  ;;  %v7266_v61 = vld [vmem:[#allocation21_spill] sm:$0xff] }
 0x15b   : > { %v5472_v52 = vadd.f32 %v1452_v31, %v1052_v7  ;;  %v5483_v7 = vsel %vm1147_vm3, %v1190_v12, %v1191_v13  ;;  %v1193_v33 = vrot.slane %v7266_v61, 2  ;;  %v7271_v61 = vld [vmem:[#allocation25_spill] sm:$0xff] }
 0x15c   : > { %1340 = vmatmul.f32.gmra.mxu0 %v5470_v11  ;;  %7263 = vst [vmem:[#allocation133_spill] sm:$0xff] %v5483_v7 }
 0x15d   : > { %988 = vmatmul.f32.gmra.mxu2 %v4795_v1  ;;  %1101 = vmatmul.f32.gmra.mxu3 %v4751_v30  ;;  %v1455_v46 = vpop.f32.mrf.mxu1  ;;  %v5497_v8 = vsel %vm1147_vm3, %v1191_v13, %v1193_v33 }
 0x15e   : > { %7268 = vst [vmem:[#allocation21_spill] sm:$0xff] %v5497_v8 }
 0x160   : > { %v941_v44 = vpop.f32.mrf.mxu2  ;;  %v1054_v20 = vpop.f32.mrf.mxu3  ;;  %1502 = vmatmul.f32.gmra.mxu1 %v5470_v11  ;;  %v1747_v11 = vld [vmem:[#allocation7 + $0x1a0] sm:$0xff] }
 0x161   : > { %v1055_v31 = vadd.f32 %v1054_v20, %v941_v44  ;;  %v5480_v53 = vpop.f32.mrf.mxu0  ;;  %v1585_v44 = vld [vmem:[#allocation5 + $0x1a0] sm:$0xff]  ;;  %1770 = vmatpush.msra.mxu3 %v1747_v11 }
 0x162   : > { %7262 = vst [vmem:[#allocation132_spill] sm:$0xff] %v5480_v53  ;;  %1608 = vmatpush.msra.mxu2 %v1585_v44  ;;  %v1195_v44 = vrot.slane %v7271_v61, 2  ;;  %v7276_v61 = vld [vmem:[#allocation27_spill] sm:$0xff] }
 0x163   : > { %v5485_v36 = vadd.f32 %v1455_v46, %v1055_v31 }
 0x164   : > { %1343 = vmatmul.f32.gmra.mxu0 %v5483_v7 }
 0x165   : > { %991 = vmatmul.f32.gmra.mxu2 %v7264_v5  ;;  %4098 = vmatmul.msk.f32.gmra.mxu3 %vm4766_vm2, %v7265_v10  ;;  %v1458_v18 = vpop.f32.mrf.mxu1 }
 0x168   : > { %v944_v20 = vpop.f32.mrf.mxu2  ;;  %v1057_v12 = vpop.f32.mrf.mxu3  ;;  %1505 = vmatmul.f32.gmra.mxu1 %v5483_v7  ;;  %v2080_v7 = vld [vmem:[#allocation7 + $0x220] sm:$0xff] }
 0x169   : > { %v1058_v46 = vadd.f32 %v1057_v12, %v944_v20  ;;  %v5494_v31 = vpop.f32.mrf.mxu0  ;;  %v1918_v20 = vld [vmem:[#allocation5 + $0x220] sm:$0xff]  ;;  %2103 = vmatpush.msra.mxu1 %v2080_v7 }
 0x16a   : > { %7267 = vst [vmem:[#allocation18_spill] sm:$0xff] %v5494_v31  ;;  %1941 = vmatpush.msra.mxu0 %v1918_v20  ;;  %v7278_v20 = vld [vmem:[#allocation28_spill] sm:$0xff] }
 0x16b   : > { %v5499_v19 = vadd.f32 %v1458_v18, %v1058_v46  ;;  %v5510_v46 = vsel %vm1147_vm3, %v1195_v44, %v1196_v32  ;;  %v1198_v31 = vrot.slane %v7278_v20, 2  ;;  %v7283_v20 = vld [vmem:[#allocation33_spill] sm:$0xff] }
 0x16c   : > { %1346 = vmatmul.f32.gmra.mxu0 %v5497_v8  ;;  %7274 = vst [vmem:[#allocation135_spill] sm:$0xff] %v5510_v46 }
 0x16d   : > { %7269 = vst [vmem:[#allocation134_spill] sm:$0xff] %v5499_v19  ;;  %994 = vmatmul.f32.gmra.mxu2 %v7270_v40  ;;  %1107 = vmatmul.f32.gmra.mxu3 %v4807_v4  ;;  %v1461_v11 = vpop.f32.mrf.mxu1  ;;  %v7284_v19 = vld [vmem:[#allocation32_spill] sm:$0xff] }
 0x16e   : > { %v1201_v53 = vrot.slane %v7284_v19, 2 }
 0x170   : > { %v947_v12 = vpop.f32.mrf.mxu2  ;;  %v1060_v33 = vpop.f32.mrf.mxu3  ;;  %1508 = vmatmul.f32.gmra.mxu1 %v5497_v8  ;;  %v1746_v8 = vld [vmem:[#allocation7 + $0x198] sm:$0xff] }
 0x171   : > { %v1061_v13 = vadd.f32 %v1060_v33, %v947_v12  ;;  %v5507_v18 = vpop.f32.mrf.mxu0  ;;  %v1584_v12 = vld [vmem:[#allocation5 + $0x198] sm:$0xff]  ;;  %1771 = vmatpush.msra.mxu3 %v1746_v8 }
 0x172   : > { %7273 = vst [vmem:[#allocation25_spill] sm:$0xff] %v5507_v18  ;;  %1609 = vmatpush.msra.mxu2 %v1584_v12  ;;  %v5524_v18 = vsel %vm1147_vm3, %v1196_v32, %v1198_v31  ;;  %v1200_v12 = vrot.slane %v7283_v20, 2  ;;  %v7288_v20 = vld [vmem:[#allocation35_spill] sm:$0xff] }
 0x173   : > { %v5512_v6 = vadd.f32 %v1461_v11, %v1061_v13  ;;  %7280 = vst [vmem:[#allocation28_spill] sm:$0xff] %v5524_v18 }
 0x174   : > { %1349 = vmatmul.f32.gmra.mxu0 %v5510_v46 }
 0x175   : > { %7275 = vst [vmem:[#allocation136_spill] sm:$0xff] %v5512_v6  ;;  %997 = vmatmul.f32.gmra.mxu2 %v7276_v61  ;;  %4100 = vmatmul.msk.f32.gmra.mxu3 %vm4766_vm2, %v7277_v50  ;;  %v1464_v7 = vpop.f32.mrf.mxu1 }
 0x178   : > { %v950_v33 = vpop.f32.mrf.mxu2  ;;  %v1063_v44 = vpop.f32.mrf.mxu3  ;;  %1511 = vmatmul.f32.gmra.mxu1 %v5510_v46  ;;  %v2079_v46 = vld [vmem:[#allocation7 + $0x218] sm:$0xff] }
 0x179   : > { %v1064_v11 = vadd.f32 %v1063_v44, %v950_v33  ;;  %v5521_v13 = vpop.f32.mrf.mxu0  ;;  %v1917_v33 = vld [vmem:[#allocation5 + $0x218] sm:$0xff]  ;;  %2104 = vmatpush.msra.mxu1 %v2079_v46 }
 0x17a   : > { %7279 = vst [vmem:[#allocation22_spill] sm:$0xff] %v5521_v13  ;;  %1942 = vmatpush.msra.mxu0 %v1917_v33  ;;  %v7290_v33 = vld [vmem:[#allocation36_spill] sm:$0xff] }
 0x17b   : > { %v5526_v6 = vadd.f32 %v1464_v7, %v1064_v11  ;;  %v5537_v11 = vsel %vm1147_vm3, %v1200_v12, %v1201_v53 }
 0x17c   : > { %1352 = vmatmul.f32.gmra.mxu0 %v5524_v18  ;;  %7286 = vst [vmem:[#allocation138_spill] sm:$0xff] %v5537_v11 }
 0x17d   : > { %7281 = vst [vmem:[#allocation137_spill] sm:$0xff] %v5526_v6  ;;  %1000 = vmatmul.f32.gmra.mxu2 %v7282_v23  ;;  %1113 = vmatmul.f32.gmra.mxu3 %v7272_v60  ;;  %v1467_v8 = vpop.f32.mrf.mxu1  ;;  %v7289_v6 = vld [vmem:[#allocation29_spill] sm:$0xff]  ;;  %v1203_v60 = vrot.slane %v7290_v33, 2 }
 0x17e   : > { %v7295_v33 = vld [vmem:[#allocation41_spill] sm:$0xff] }
 0x180   : > { %v953_v44 = vpop.f32.mrf.mxu2  ;;  %v1066_v32 = vpop.f32.mrf.mxu3  ;;  %1514 = vmatmul.f32.gmra.mxu1 %v5524_v18  ;;  %v1745_v18 = vld [vmem:[#allocation7 + $0x190] sm:$0xff] }
 0x181   : > { %v1067_v31 = vadd.f32 %v1066_v32, %v953_v44  ;;  %v5534_v7 = vpop.f32.mrf.mxu0  ;;  %v1583_v44 = vld [vmem:[#allocation5 + $0x190] sm:$0xff]  ;;  %1772 = vmatpush.msra.mxu3 %v1745_v18 }
 0x182   : > { %7285 = vst [vmem:[#allocation33_spill] sm:$0xff] %v5534_v7  ;;  %1610 = vmatpush.msra.mxu2 %v1583_v44  ;;  %v5551_v7 = vsel %vm1147_vm3, %v1201_v53, %v1203_v60  ;;  %v1205_v44 = vrot.slane %v7295_v33, 2  ;;  %v7300_v33 = vld [vmem:[#allocation43_spill] sm:$0xff] }
 0x183   : > { %v5539_v13 = vadd.f32 %v1467_v8, %v1067_v31  ;;  %7292 = vst [vmem:[#allocation140_spill] sm:$0xff] %v5551_v7 }
 0x184   : > { %1355 = vmatmul.f32.gmra.mxu0 %v5537_v11 }
 0x185   : > { %7287 = vst [vmem:[#allocation139_spill] sm:$0xff] %v5539_v13  ;;  %1003 = vmatmul.f32.gmra.mxu2 %v7288_v20  ;;  %4102 = vmatmul.msk.f32.gmra.mxu3 %vm4766_vm2, %v7289_v6  ;;  %v1470_v46 = vpop.f32.mrf.mxu1  ;;  %v7294_v6 = vld [vmem:[#allocation39_spill] sm:$0xff]  ;;  %v7296_v20 = vld [vmem:[#allocation40_spill] sm:$0xff] }
 0x186   : > { %v1206_v23 = vrot.slane %v7296_v20, 2 }
 0x188   : > { %v956_v32 = vpop.f32.mrf.mxu2  ;;  %v1069_v12 = vpop.f32.mrf.mxu3  ;;  %1517 = vmatmul.f32.gmra.mxu1 %v5537_v11  ;;  %v2078_v11 = vld [vmem:[#allocation7 + $0x210] sm:$0xff] }
 0x189   : > { %v1070_v8 = vadd.f32 %v1069_v12, %v956_v32  ;;  %v5548_v31 = vpop.f32.mrf.mxu0  ;;  %v1916_v32 = vld [vmem:[#allocation5 + $0x210] sm:$0xff]  ;;  %2105 = vmatpush.msra.mxu1 %v2078_v11 }
 0x18a   : > { %7291 = vst [vmem:[#allocation36_spill] sm:$0xff] %v5548_v31  ;;  %1943 = vmatpush.msra.mxu0 %v1916_v32  ;;  %v7302_v32 = vld [vmem:[#allocation44_spill] sm:$0xff] }
 0x18b   : > { %v5553_v13 = vadd.f32 %v1470_v46, %v1070_v8  ;;  %v5564_v8 = vsel %vm1147_vm3, %v1205_v44, %v1206_v23 }
 0x18c   : > { %1358 = vmatmul.f32.gmra.mxu0 %v5551_v7  ;;  %7298 = vst [vmem:[#allocation142_spill] sm:$0xff] %v5564_v8 }
 0x18d   : > { %7293 = vst [vmem:[#allocation141_spill] sm:$0xff] %v5553_v13  ;;  %1006 = vmatmul.f32.gmra.mxu2 %v7294_v6  ;;  %1119 = vmatmul.f32.gmra.mxu3 %v7284_v19  ;;  %v1473_v18 = vpop.f32.mrf.mxu1  ;;  %v7301_v13 = vld [vmem:[#allocation37_spill] sm:$0xff]  ;;  %v1208_v19 = vrot.slane %v7302_v32, 2 }
 0x18e   : > { %v7307_v32 = vld [vmem:[#allocation49_spill] sm:$0xff] }
 0x190   : > { %v959_v12 = vpop.f32.mrf.mxu2  ;;  %v1072_v60 = vpop.f32.mrf.mxu3  ;;  %1520 = vmatmul.f32.gmra.mxu1 %v5551_v7  ;;  %v1744_v7 = vld [vmem:[#allocation7 + $0x188] sm:$0xff] }
 0x191   : > { %v1073_v53 = vadd.f32 %v1072_v60, %v959_v12  ;;  %v5561_v46 = vpop.f32.mrf.mxu0  ;;  %v1582_v12 = vld [vmem:[#allocation5 + $0x188] sm:$0xff]  ;;  %1773 = vmatpush.msra.mxu3 %v1744_v7 }
 0x192   : > { %7297 = vst [vmem:[#allocation41_spill] sm:$0xff] %v5561_v46  ;;  %1611 = vmatpush.msra.mxu2 %v1582_v12  ;;  %v5578_v46 = vsel %vm1147_vm3, %v1206_v23, %v1208_v19  ;;  %v1210_v12 = vrot.slane %v7307_v32, 2  ;;  %v7312_v32 = vld [vmem:[#allocation51_spill] sm:$0xff] }
 0x193   : > { %v5566_v31 = vadd.f32 %v1473_v18, %v1073_v53  ;;  %7304 = vst [vmem:[#allocation144_spill] sm:$0xff] %v5578_v46 }
 0x194   : > { %1361 = vmatmul.f32.gmra.mxu0 %v5564_v8 }
 0x195   : > { %7299 = vst [vmem:[#allocation143_spill] sm:$0xff] %v5566_v31  ;;  %1009 = vmatmul.f32.gmra.mxu2 %v7300_v33  ;;  %4104 = vmatmul.msk.f32.gmra.mxu3 %vm4766_vm2, %v7301_v13  ;;  %v1476_v11 = vpop.f32.mrf.mxu1  ;;  %v7306_v13 = vld [vmem:[#allocation47_spill] sm:$0xff]  ;;  %v7308_v33 = vld [vmem:[#allocation48_spill] sm:$0xff] }
 0x196   : > { %v1211_v6 = vrot.slane %v7308_v33, 2 }
 0x198   : > { %v962_v60 = vpop.f32.mrf.mxu2  ;;  %v1075_v44 = vpop.f32.mrf.mxu3  ;;  %1523 = vmatmul.f32.gmra.mxu1 %v5564_v8  ;;  %v2077_v8 = vld [vmem:[#allocation7 + $0x208] sm:$0xff] }
 0x199   : > { %v1076_v18 = vadd.f32 %v1075_v44, %v962_v60  ;;  %v5575_v53 = vpop.f32.mrf.mxu0  ;;  %v1915_v60 = vld [vmem:[#allocation5 + $0x208] sm:$0xff]  ;;  %2106 = vmatpush.msra.mxu1 %v2077_v8 }
 0x19a   : > { %7303 = vst [vmem:[#allocation44_spill] sm:$0xff] %v5575_v53  ;;  %1944 = vmatpush.msra.mxu0 %v1915_v60  ;;  %v7314_v60 = vld [vmem:[#allocation52_spill] sm:$0xff] }
 0x19b   : > { %v5580_v31 = vadd.f32 %v1476_v11, %v1076_v18  ;;  %v5591_v18 = vsel %vm1147_vm3, %v1210_v12, %v1211_v6 }
 0x19c   : > { %1364 = vmatmul.f32.gmra.mxu0 %v5578_v46  ;;  %7310 = vst [vmem:[#allocation146_spill] sm:$0xff] %v5591_v18 }
 0x19d   : > { %7305 = vst [vmem:[#allocation145_spill] sm:$0xff] %v5580_v31  ;;  %1012 = vmatmul.f32.gmra.mxu2 %v7306_v13  ;;  %1125 = vmatmul.f32.gmra.mxu3 %v7296_v20  ;;  %v1479_v7 = vpop.f32.mrf.mxu1  ;;  %v7313_v31 = vld [vmem:[#allocation45_spill] sm:$0xff]  ;;  %v1213_v20 = vrot.slane %v7314_v60, 2 }
 0x19e   : > { %v7319_v60 = vld [vmem:[#allocation57_spill] sm:$0xff] }
 0x1a0   : > { %v965_v44 = vpop.f32.mrf.mxu2  ;;  %v1078_v23 = vpop.f32.mrf.mxu3  ;;  %1526 = vmatmul.f32.gmra.mxu1 %v5578_v46  ;;  %v1743_v46 = vld [vmem:[#allocation7 + $0x180] sm:$0xff] }
 0x1a1   : > { %v1079_v19 = vadd.f32 %v1078_v23, %v965_v44  ;;  %v5588_v11 = vpop.f32.mrf.mxu0  ;;  %v1581_v44 = vld [vmem:[#allocation5 + $0x180] sm:$0xff]  ;;  %1774 = vmatpush.msra.mxu3 %v1743_v46 }
 0x1a2   : > { %7309 = vst [vmem:[#allocation49_spill] sm:$0xff] %v5588_v11  ;;  %1612 = vmatpush.msra.mxu2 %v1581_v44  ;;  %v5605_v11 = vsel %vm1147_vm3, %v1211_v6, %v1213_v20  ;;  %v1215_v44 = vrot.slane %v7319_v60, 2  ;;  %v7324_v60 = vld [vmem:[#allocation59_spill] sm:$0xff] }
 0x1a3   : > { %v5593_v53 = vadd.f32 %v1479_v7, %v1079_v19  ;;  %7316 = vst [vmem:[#allocation148_spill] sm:$0xff] %v5605_v11 }
 0x1a4   : > { %1367 = vmatmul.f32.gmra.mxu0 %v5591_v18 }
 0x1a5   : > { %7311 = vst [vmem:[#allocation147_spill] sm:$0xff] %v5593_v53  ;;  %1015 = vmatmul.f32.gmra.mxu2 %v7312_v32  ;;  %4106 = vmatmul.msk.f32.gmra.mxu3 %vm4766_vm2, %v7313_v31  ;;  %v1482_v8 = vpop.f32.mrf.mxu1  ;;  %v7318_v31 = vld [vmem:[#allocation55_spill] sm:$0xff]  ;;  %v7320_v32 = vld [vmem:[#allocation56_spill] sm:$0xff] }
 0x1a6   : > { %v1216_v13 = vrot.slane %v7320_v32, 2 }
 0x1a8   : > { %v968_v23 = vpop.f32.mrf.mxu2  ;;  %v1081_v12 = vpop.f32.mrf.mxu3  ;;  %1529 = vmatmul.f32.gmra.mxu1 %v5591_v18  ;;  %v2076_v18 = vld [vmem:[#allocation7 + $0x200] sm:$0xff] }
 0x1a9   : > { %v1082_v7 = vadd.f32 %v1081_v12, %v968_v23  ;;  %v5602_v19 = vpop.f32.mrf.mxu0  ;;  %v1914_v23 = vld [vmem:[#allocation5 + $0x200] sm:$0xff]  ;;  %2107 = vmatpush.msra.mxu1 %v2076_v18 }
 0x1aa   : > { %7315 = vst [vmem:[#allocation52_spill] sm:$0xff] %v5602_v19  ;;  %1945 = vmatpush.msra.mxu0 %v1914_v23  ;;  %v7326_v23 = vld [vmem:[#allocation60_spill] sm:$0xff] }
 0x1ab   : > { %v5607_v53 = vadd.f32 %v1482_v8, %v1082_v7  ;;  %v5618_v7 = vsel %vm1147_vm3, %v1215_v44, %v1216_v13 }
 0x1ac   : > { %1370 = vmatmul.f32.gmra.mxu0 %v5605_v11  ;;  %7322 = vst [vmem:[#allocation150_spill] sm:$0xff] %v5618_v7 }
 0x1ad   : > { %7317 = vst [vmem:[#allocation149_spill] sm:$0xff] %v5607_v53  ;;  %1018 = vmatmul.f32.gmra.mxu2 %v7318_v31  ;;  %1131 = vmatmul.f32.gmra.mxu3 %v7308_v33  ;;  %v1485_v46 = vpop.f32.mrf.mxu1  ;;  %v7325_v53 = vld [vmem:[#allocation53_spill] sm:$0xff]  ;;  %v1218_v33 = vrot.slane %v7326_v23, 2  ;;  %v1220_v23 = vrot.slane %v5171_v15, 2  ;;  %v7335_v15 = vld [vmem:[#allocation66_spill] sm:$0xff] }
 0x1b0   : > { %v971_v12 = vpop.f32.mrf.mxu2  ;;  %v1084_v6 = vpop.f32.mrf.mxu3  ;;  %1532 = vmatmul.f32.gmra.mxu1 %v5605_v11  ;;  %v2422_v11 = vld [vmem:[#allocation7 + $0x2f8] sm:$0xff] }
 0x1b1   : > { %v1085_v20 = vadd.f32 %v1084_v6, %v971_v12  ;;  %v5615_v8 = vpop.f32.mrf.mxu0  ;;  %v2260_v12 = vld [vmem:[#allocation5 + $0x2f8] sm:$0xff]  ;;  %2423 = vmatpush.msrb.mxu3 %v2422_v11 }
 0x1b2   : > { %7321 = vst [vmem:[#allocation57_spill] sm:$0xff] %v5615_v8  ;;  %2261 = vmatpush.msrb.mxu2 %v2260_v12  ;;  %v5632_v8 = vsel %vm1147_vm3, %v1216_v13, %v1218_v33  ;;  %v7331_v12 = vld [vmem:[#allocation64_spill] sm:$0xff] }
 0x1b3   : > { %v5620_v19 = vadd.f32 %v1485_v46, %v1085_v20  ;;  %7328 = vst [vmem:[#allocation152_spill] sm:$0xff] %v5632_v8 }
 0x1b4   : > { %1373 = vmatmul.f32.gmra.mxu0 %v5618_v7 }
 0x1b5   : > { %7323 = vst [vmem:[#allocation151_spill] sm:$0xff] %v5620_v19  ;;  %1021 = vmatmul.f32.gmra.mxu2 %v7324_v60  ;;  %4108 = vmatmul.msk.f32.gmra.mxu3 %vm4766_vm2, %v7325_v53  ;;  %v1488_v18 = vpop.f32.mrf.mxu1  ;;  %v7330_v53 = vld [vmem:[#allocation63_spill] sm:$0xff]  ;;  %v1221_v60 = vrot.slane %v7331_v12, 2 }
 0x1b8   : > { %v974_v6 = vpop.f32.mrf.mxu2  ;;  %v1087_v44 = vpop.f32.mrf.mxu3  ;;  %1535 = vmatmul.f32.gmra.mxu1 %v5618_v7  ;;  %v2746_v7 = vld [vmem:[#allocation7 + $0x378] sm:$0xff] }
 0x1b9   : > { %v1088_v46 = vadd.f32 %v1087_v44, %v974_v6  ;;  %v5629_v20 = vpop.f32.mrf.mxu0  ;;  %v2584_v6 = vld [vmem:[#allocation5 + $0x378] sm:$0xff]  ;;  %2747 = vmatpush.msrb.mxu1 %v2746_v7 }
 0x1ba   : > { %7327 = vst [vmem:[#allocation60_spill] sm:$0xff] %v5629_v20  ;;  %2585 = vmatpush.msrb.mxu0 %v2584_v6  ;;  %v7337_v6 = vld [vmem:[#allocation67_spill] sm:$0xff] }
 0x1bb   : > { %v5634_v19 = vadd.f32 %v1488_v18, %v1088_v46  ;;  %v5645_v46 = vsel %vm1147_vm3, %v1220_v23, %v1221_v60 }
 0x1bc   : > { %1376 = vmatmul.f32.gmra.mxu0 %v5632_v8  ;;  %7333 = vst [vmem:[#allocation155_spill] sm:$0xff] %v5645_v46 }
 0x1bd   : > { %7329 = vst [vmem:[#allocation153_spill] sm:$0xff] %v5634_v19  ;;  %1024 = vmatmul.f32.gmra.mxu2 %v7330_v53  ;;  %1137 = vmatmul.f32.gmra.mxu3 %v7320_v32  ;;  %v1491_v11 = vpop.f32.mrf.mxu1  ;;  %v7336_v19 = vld [vmem:[#allocation61_spill] sm:$0xff]  ;;  %v1223_v32 = vrot.slane %v7337_v6, 2 }
 0x1be   : > { %v2745_v6 = vld [vmem:[#allocation7 + $0x370] sm:$0xff] }
 0x1bf   : > { %2748 = vmatpush.msrb.mxu1 %v2745_v6  ;;  %v2258_v6 = vld [vmem:[#allocation5 + $0x2e8] sm:$0xff] }
 0x1c0   : > { %v977_v44 = vpop.f32.mrf.mxu2  ;;  %v1090_v13 = vpop.f32.mrf.mxu3  ;;  %1538 = vmatmul.f32.gmra.mxu1 %v5632_v8  ;;  %v2421_v8 = vld [vmem:[#allocation7 + $0x2f0] sm:$0xff] }
 0x1c1   : > { %v1091_v33 = vadd.f32 %v1090_v13, %v977_v44  ;;  %v5642_v18 = vpop.f32.mrf.mxu0  ;;  %v2259_v44 = vld [vmem:[#allocation5 + $0x2f0] sm:$0xff]  ;;  %2424 = vmatpush.msrb.mxu3 %v2421_v8 }
 0x1c2   : > { %7332 = vst [vmem:[#allocation154_spill] sm:$0xff] %v5642_v18  ;;  %2262 = vmatpush.msrb.mxu2 %v2259_v44  ;;  %v5659_v18 = vsel %vm1147_vm3, %v1221_v60, %v1223_v32  ;;  %v2583_v44 = vld [vmem:[#allocation5 + $0x370] sm:$0xff] }
 0x1c3   : > { %v5647_v20 = vadd.f32 %v1491_v11, %v1091_v33  ;;  %7338 = vst [vmem:[#allocation67_spill] sm:$0xff] %v5659_v18  ;;  %2586 = vmatpush.msrb.mxu0 %v2583_v44 }
 0x1c4   : > { %1379 = vmatmul.f32.gmra.mxu0 %v5645_v46  ;;  %2263 = vmatpush.msrb.mxu2 %v2258_v6 }
 0x1c5   : > { %7334 = vst [vmem:[#allocation156_spill] sm:$0xff] %v5647_v20  ;;  %1027 = vmatmul.f32.gmra.mxu2 %v7335_v15  ;;  %4110 = vmatmul.msk.f32.gmra.mxu3 %vm4766_vm2, %v7336_v19  ;;  %v1494_v7 = vpop.f32.mrf.mxu1  ;;  %v7339_v19 = vld [vmem:[#allocation69_spill] sm:$0xff] }
 0x1c8   : > { %v980_v13 = vpop.f32.mrf.mxu2  ;;  %v1093_v23 = vpop.f32.mrf.mxu3  ;;  %1541 = vmatmul.f32.gmra.mxu1 %v5645_v46 }
 0x1c9   : > { %v1094_v11 = vadd.f32 %v1093_v23, %v980_v13  ;;  %v5656_v33 = vpop.f32.mrf.mxu0 }
 0x1cb   : > { %v5661_v20 = vadd.f32 %v1494_v7, %v1094_v11  ;;  %v2420_v11 = vld [vmem:[#allocation7 + $0x2e8] sm:$0xff] }
 0x1cc   : > { %1382 = vmatmul.f32.gmra.mxu0 %v5659_v18  ;;  %2425 = vmatpush.msrb.mxu3 %v2420_v11 }
 0x1cd   : > { %1030 = vmatmul.f32.gmra.mxu2 %v7339_v19  ;;  %1143 = vmatmul.f32.gmra.mxu3 %v7331_v12  ;;  %v1497_v8 = vpop.f32.mrf.mxu1 }
 0x1d0   : > { %v983_v46 = vpop.f32.mrf.mxu2  ;;  %v1096_v13 = vpop.f32.mrf.mxu3  ;;  %1544 = vmatmul.f32.gmra.mxu1 %v5659_v18  ;;  %v2744_v18 = vld [vmem:[#allocation7 + $0x368] sm:$0xff] }
 0x1d1   : > { %v1097_v23 = vadd.f32 %v1096_v13, %v983_v46  ;;  %v5667_v32 = vpop.f32.mrf.mxu0  ;;  %2749 = vmatpush.msrb.mxu1 %v2744_v18  ;;  %v2419_v18 = vld [vmem:[#allocation7 + $0x2e0] sm:$0xff] }
 0x1d2   : > { %7340 = vst [vmem:[#allocation157_spill] sm:$0xff] %v5667_v32  ;;  %v2582_v32 = vld [vmem:[#allocation5 + $0x368] sm:$0xff]  ;;  %2426 = vmatpush.msrb.mxu3 %v2419_v18 }
 0x1d3   : > { %v5669_v60 = vadd.f32 %v1497_v8, %v1097_v23  ;;  %2587 = vmatpush.msrb.mxu0 %v2582_v32  ;;  %v2257_v32 = vld [vmem:[#allocation5 + $0x2e0] sm:$0xff] }
 0x1d4   : > { %1946 = vmatmul.f32.vlgmr.msra.gmra.mxu0 %v4822_v21  ;;  %2264 = vmatpush.msrb.mxu2 %v2257_v32 }
 0x1d5   : > { %4112 = vmatmul.msk.f32.vlgmr.msra.gmra.mxu2 %vm4766_vm2, %v4787_v56  ;;  %4144 = vmatmul.msk.f32.vlgmr.msra.gmra.mxu3 %vm4766_vm2, %v4787_v56  ;;  %v1500_v7 = vpop.f32.mrf.mxu1 }
 0x1d8   : > { %v986_v46 = vpop.f32.mrf.mxu2  ;;  %v1099_v44 = vpop.f32.mrf.mxu3  ;;  %2108 = vmatmul.f32.vlgmr.msra.gmra.mxu1 %v4822_v21 }
 0x1d9   : > { %v1100_v8 = vadd.f32 %v1099_v44, %v986_v46  ;;  %v5679_v13 = vpop.f32.mrf.mxu0 }
 0x1db   : > { %v5681_v23 = vadd.f32 %v1500_v7, %v1100_v8 }
 0x1dc   : > { %1949 = vmatmul.f32.gmra.mxu0 %v4852_v47 }
 0x1dd   : > { %1616 = vmatmul.f32.gmra.mxu2 %v4799_v2  ;;  %1778 = vmatmul.f32.gmra.mxu3 %v4799_v2  ;;  %v1503_v56 = vpop.f32.mrf.mxu1 }
 0x1e0   : > { %v989_v11 = vpop.f32.mrf.mxu2  ;;  %v1102_v6 = vpop.f32.mrf.mxu3  ;;  %2111 = vmatmul.f32.gmra.mxu1 %v4852_v47 }
 0x1e1   : > { %v1103_v21 = vadd.f32 %v1102_v6, %v989_v11  ;;  %v5687_v46 = vpop.f32.mrf.mxu0 }
 0x1e2   : > { %7341 = vst [vmem:[#allocation158_spill] sm:$0xff] %v5687_v46  ;;  %v2581_v46 = vld [vmem:[#allocation5 + $0x360] sm:$0xff] }
 0x1e3   : > { %v5689_v7 = vadd.f32 %v1503_v56, %v1103_v21  ;;  %v2743_v21 = vld [vmem:[#allocation7 + $0x360] sm:$0xff]  ;;  %2588 = vmatpush.msrb.mxu0 %v2581_v46 }
 0x1e4   : > { %1952 = vmatmul.f32.gmra.mxu0 %v4882_v63  ;;  %2750 = vmatpush.msrb.mxu1 %v2743_v21  ;;  %v2256_v21 = vld [vmem:[#allocation5 + $0x2d8] sm:$0xff] }
 0x1e5   : > { %4114 = vmatmul.msk.f32.gmra.mxu2 %vm4766_vm2, %v4844_v37  ;;  %4146 = vmatmul.msk.f32.gmra.mxu3 %vm4766_vm2, %v4844_v37  ;;  %v1506_v2 = vpop.f32.mrf.mxu1 }
 0x1e6   : > { %2265 = vmatpush.msrb.mxu2 %v2256_v21 }
 0x1e8   : > { %v992_v47 = vpop.f32.mrf.mxu2  ;;  %v1105_v44 = vpop.f32.mrf.mxu3  ;;  %2114 = vmatmul.f32.gmra.mxu1 %v4882_v63 }
 0x1e9   : > { %v1106_v8 = vadd.f32 %v1105_v44, %v992_v47  ;;  %v5699_v56 = vpop.f32.mrf.mxu0 }
 0x1eb   : > { %v5701_v11 = vadd.f32 %v1506_v2, %v1106_v8  ;;  %v2418_v8 = vld [vmem:[#allocation7 + $0x2d8] sm:$0xff] }
 0x1ec   : > { %1955 = vmatmul.f32.gmra.mxu0 %v4912_v27  ;;  %2427 = vmatpush.msrb.mxu3 %v2418_v8 }
 0x1ed   : > { %1622 = vmatmul.f32.gmra.mxu2 %v4859_v49  ;;  %1784 = vmatmul.f32.gmra.mxu3 %v4859_v49  ;;  %v1509_v6 = vpop.f32.mrf.mxu1 }
 0x1f0   : > { %v995_v18 = vpop.f32.mrf.mxu2  ;;  %v1108_v32 = vpop.f32.mrf.mxu3  ;;  %2117 = vmatmul.f32.gmra.mxu1 %v4912_v27 }
 0x1f1   : > { %v1109_v47 = vadd.f32 %v1108_v32, %v995_v18  ;;  %v5707_v44 = vpop.f32.mrf.mxu0 }
 0x1f2   : > { %7342 = vst [vmem:[#allocation159_spill] sm:$0xff] %v5707_v44  ;;  %v2742_v44 = vld [vmem:[#allocation7 + $0x358] sm:$0xff] }
 0x1f3   : > { %v5709_v2 = vadd.f32 %v1509_v6, %v1109_v47  ;;  %2751 = vmatpush.msrb.mxu1 %v2742_v44 }
 0x1f4   : > { %1958 = vmatmul.f32.gmra.mxu0 %v4942_v57 }
 0x1f5   : > { %7343 = vst [vmem:[#allocation160_spill] sm:$0xff] %v5709_v2  ;;  %4116 = vmatmul.msk.f32.gmra.mxu2 %vm4766_vm2, %v4904_v17  ;;  %4148 = vmatmul.msk.f32.gmra.mxu3 %vm4766_vm2, %v4904_v17  ;;  %v1512_v46 = vpop.f32.mrf.mxu1  ;;  %v2580_v2 = vld [vmem:[#allocation5 + $0x358] sm:$0xff] }
 0x1f6   : > { %2589 = vmatpush.msrb.mxu0 %v2580_v2  ;;  %v2417_v2 = vld [vmem:[#allocation7 + $0x2d0] sm:$0xff] }
 0x1f7   : > { %2428 = vmatpush.msrb.mxu3 %v2417_v2 }
 0x1f8   : > { %v998_v18 = vpop.f32.mrf.mxu2  ;;  %v1111_v32 = vpop.f32.mrf.mxu3  ;;  %2120 = vmatmul.f32.gmra.mxu1 %v4942_v57 }
 0x1f9   : > { %v1112_v6 = vadd.f32 %v1111_v32, %v998_v18  ;;  %v5719_v47 = vpop.f32.mrf.mxu0 }
 0x1fb   : > { %v5721_v27 = vadd.f32 %v1512_v46, %v1112_v6  ;;  %v2255_v6 = vld [vmem:[#allocation5 + $0x2d0] sm:$0xff] }
 0x1fc   : > { %1961 = vmatmul.f32.gmra.mxu0 %v4972_v38  ;;  %2266 = vmatpush.msrb.mxu2 %v2255_v6 }
 0x1fd   : > { %1628 = vmatmul.f32.gmra.mxu2 %v4919_v29  ;;  %1790 = vmatmul.f32.gmra.mxu3 %v4919_v29  ;;  %v1515_v63 = vpop.f32.mrf.mxu1 }
 0x200   : > { %v1001_v8 = vpop.f32.mrf.mxu2  ;;  %v1114_v21 = vpop.f32.mrf.mxu3  ;;  %2123 = vmatmul.f32.gmra.mxu1 %v4972_v38 }
 0x201   : > { %v1115_v18 = vadd.f32 %v1114_v21, %v1001_v8  ;;  %v5727_v32 = vpop.f32.mrf.mxu0 }
 0x202   : > { %7344 = vst [vmem:[#allocation161_spill] sm:$0xff] %v5727_v32  ;;  %v2741_v32 = vld [vmem:[#allocation7 + $0x350] sm:$0xff] }
 0x203   : > { %v5729_v46 = vadd.f32 %v1515_v63, %v1115_v18  ;;  %2752 = vmatpush.msrb.mxu1 %v2741_v32 }
 0x204   : > { %1964 = vmatmul.f32.gmra.mxu0 %v5002_v14 }
 0x205   : > { %7345 = vst [vmem:[#allocation162_spill] sm:$0xff] %v5729_v46  ;;  %4118 = vmatmul.msk.f32.gmra.mxu2 %vm4766_vm2, %v4964_v16  ;;  %4150 = vmatmul.msk.f32.gmra.mxu3 %vm4766_vm2, %v4964_v16  ;;  %v1518_v44 = vpop.f32.mrf.mxu1  ;;  %v2579_v46 = vld [vmem:[#allocation5 + $0x350] sm:$0xff] }
 0x206   : > { %2590 = vmatpush.msrb.mxu0 %v2579_v46  ;;  %v2416_v46 = vld [vmem:[#allocation7 + $0x2c8] sm:$0xff] }
 0x207   : > { %2429 = vmatpush.msrb.mxu3 %v2416_v46 }
 0x208   : > { %v1004_v8 = vpop.f32.mrf.mxu2  ;;  %v1117_v21 = vpop.f32.mrf.mxu3  ;;  %2126 = vmatmul.f32.gmra.mxu1 %v5002_v14 }
 0x209   : > { %v1118_v63 = vadd.f32 %v1117_v21, %v1004_v8  ;;  %v5739_v18 = vpop.f32.mrf.mxu0 }
 0x20b   : > { %v5741_v38 = vadd.f32 %v1518_v44, %v1118_v63  ;;  %v2254_v63 = vld [vmem:[#allocation5 + $0x2c8] sm:$0xff] }
 0x20c   : > { %1967 = vmatmul.f32.gmra.mxu0 %v5032_v26  ;;  %2267 = vmatpush.msrb.mxu2 %v2254_v63 }
 0x20d   : > { %1634 = vmatmul.f32.gmra.mxu2 %v4979_v45  ;;  %1796 = vmatmul.f32.gmra.mxu3 %v4979_v45  ;;  %v1521_v57 = vpop.f32.mrf.mxu1 }
 0x210   : > { %v1007_v2 = vpop.f32.mrf.mxu2  ;;  %v1120_v6 = vpop.f32.mrf.mxu3  ;;  %2129 = vmatmul.f32.gmra.mxu1 %v5032_v26 }
 0x211   : > { %v1121_v8 = vadd.f32 %v1120_v6, %v1007_v2  ;;  %v5747_v21 = vpop.f32.mrf.mxu0 }
 0x212   : > { %7346 = vst [vmem:[#allocation163_spill] sm:$0xff] %v5747_v21  ;;  %v2740_v21 = vld [vmem:[#allocation7 + $0x348] sm:$0xff] }
 0x213   : > { %v5749_v44 = vadd.f32 %v1521_v57, %v1121_v8  ;;  %2753 = vmatpush.msrb.mxu1 %v2740_v21 }
 0x214   : > { %1970 = vmatmul.f32.gmra.mxu0 %v5062_v39 }
 0x215   : > { %7347 = vst [vmem:[#allocation164_spill] sm:$0xff] %v5749_v44  ;;  %4120 = vmatmul.msk.f32.gmra.mxu2 %vm4766_vm2, %v5024_v41  ;;  %4152 = vmatmul.msk.f32.gmra.mxu3 %vm4766_vm2, %v5024_v41  ;;  %v1524_v32 = vpop.f32.mrf.mxu1  ;;  %v2578_v44 = vld [vmem:[#allocation5 + $0x348] sm:$0xff] }
 0x216   : > { %2591 = vmatpush.msrb.mxu0 %v2578_v44  ;;  %v2415_v44 = vld [vmem:[#allocation7 + $0x2c0] sm:$0xff] }
 0x217   : > { %2430 = vmatpush.msrb.mxu3 %v2415_v44 }
 0x218   : > { %v1010_v2 = vpop.f32.mrf.mxu2  ;;  %v1123_v6 = vpop.f32.mrf.mxu3  ;;  %2132 = vmatmul.f32.gmra.mxu1 %v5062_v39 }
 0x219   : > { %v1124_v57 = vadd.f32 %v1123_v6, %v1010_v2  ;;  %v5759_v8 = vpop.f32.mrf.mxu0 }
 0x21b   : > { %v5761_v26 = vadd.f32 %v1524_v32, %v1124_v57  ;;  %v2253_v57 = vld [vmem:[#allocation5 + $0x2c0] sm:$0xff] }
 0x21c   : > { %1973 = vmatmul.f32.gmra.mxu0 %v5092_v59  ;;  %2268 = vmatpush.msrb.mxu2 %v2253_v57 }
 0x21d   : > { %1640 = vmatmul.f32.gmra.mxu2 %v5039_v62  ;;  %1802 = vmatmul.f32.gmra.mxu3 %v5039_v62  ;;  %v1527_v14 = vpop.f32.mrf.mxu1 }
 0x220   : > { %v1013_v46 = vpop.f32.mrf.mxu2  ;;  %v1126_v63 = vpop.f32.mrf.mxu3  ;;  %2135 = vmatmul.f32.gmra.mxu1 %v5092_v59 }
 0x221   : > { %v1127_v2 = vadd.f32 %v1126_v63, %v1013_v46  ;;  %v5767_v6 = vpop.f32.mrf.mxu0 }
 0x222   : > { %7348 = vst [vmem:[#allocation165_spill] sm:$0xff] %v5767_v6  ;;  %v2739_v6 = vld [vmem:[#allocation7 + $0x340] sm:$0xff] }
 0x223   : > { %v5769_v32 = vadd.f32 %v1527_v14, %v1127_v2  ;;  %2754 = vmatpush.msrb.mxu1 %v2739_v6 }
 0x224   : > { %1976 = vmatmul.f32.gmra.mxu0 %v5122_v9 }
 0x225   : > { %7349 = vst [vmem:[#allocation166_spill] sm:$0xff] %v5769_v32  ;;  %4122 = vmatmul.msk.f32.gmra.mxu2 %vm4766_vm2, %v5084_v28  ;;  %4154 = vmatmul.msk.f32.gmra.mxu3 %vm4766_vm2, %v5084_v28  ;;  %v1530_v21 = vpop.f32.mrf.mxu1  ;;  %v2577_v32 = vld [vmem:[#allocation5 + $0x340] sm:$0xff] }
 0x226   : > { %2592 = vmatpush.msrb.mxu0 %v2577_v32  ;;  %v2414_v32 = vld [vmem:[#allocation7 + $0x2b8] sm:$0xff] }
 0x227   : > { %2431 = vmatpush.msrb.mxu3 %v2414_v32 }
 0x228   : > { %v1016_v46 = vpop.f32.mrf.mxu2  ;;  %v1129_v63 = vpop.f32.mrf.mxu3  ;;  %2138 = vmatmul.f32.gmra.mxu1 %v5122_v9 }
 0x229   : > { %v1130_v14 = vadd.f32 %v1129_v63, %v1016_v46  ;;  %v5779_v2 = vpop.f32.mrf.mxu0 }
 0x22b   : > { %v5781_v59 = vadd.f32 %v1530_v21, %v1130_v14  ;;  %v2252_v14 = vld [vmem:[#allocation5 + $0x2b8] sm:$0xff] }
 0x22c   : > { %1979 = vmatmul.f32.gmra.mxu0 %v5152_v0  ;;  %2269 = vmatpush.msrb.mxu2 %v2252_v14 }
 0x22d   : > { %1646 = vmatmul.f32.gmra.mxu2 %v5099_v34  ;;  %1808 = vmatmul.f32.gmra.mxu3 %v5099_v34  ;;  %v1533_v39 = vpop.f32.mrf.mxu1 }
 0x230   : > { %v1019_v44 = vpop.f32.mrf.mxu2  ;;  %v1132_v57 = vpop.f32.mrf.mxu3  ;;  %2141 = vmatmul.f32.gmra.mxu1 %v5152_v0 }
 0x231   : > { %v1133_v46 = vadd.f32 %v1132_v57, %v1019_v44  ;;  %v5787_v63 = vpop.f32.mrf.mxu0 }
 0x232   : > { %7350 = vst [vmem:[#allocation167_spill] sm:$0xff] %v5787_v63  ;;  %v2738_v63 = vld [vmem:[#allocation7 + $0x338] sm:$0xff] }
 0x233   : > { %v5789_v21 = vadd.f32 %v1533_v39, %v1133_v46  ;;  %2755 = vmatpush.msrb.mxu1 %v2738_v63 }
 0x234   : > { %1982 = vmatmul.f32.gmra.mxu0 %v5182_v55 }
 0x235   : > { %7351 = vst [vmem:[#allocation168_spill] sm:$0xff] %v5789_v21  ;;  %4124 = vmatmul.msk.f32.gmra.mxu2 %vm4766_vm2, %v5144_v48  ;;  %4156 = vmatmul.msk.f32.gmra.mxu3 %vm4766_vm2, %v5144_v48  ;;  %v1536_v6 = vpop.f32.mrf.mxu1  ;;  %v2576_v21 = vld [vmem:[#allocation5 + $0x338] sm:$0xff] }
 0x236   : > { %2593 = vmatpush.msrb.mxu0 %v2576_v21  ;;  %v2413_v21 = vld [vmem:[#allocation7 + $0x2b0] sm:$0xff] }
 0x237   : > { %2432 = vmatpush.msrb.mxu3 %v2413_v21 }
 0x238   : > { %v1022_v44 = vpop.f32.mrf.mxu2  ;;  %v1135_v57 = vpop.f32.mrf.mxu3  ;;  %2144 = vmatmul.f32.gmra.mxu1 %v5182_v55 }
 0x239   : > { %v1136_v39 = vadd.f32 %v1135_v57, %v1022_v44  ;;  %v5799_v46 = vpop.f32.mrf.mxu0 }
 0x23b   : > { %v5801_v0 = vadd.f32 %v1536_v6, %v1136_v39  ;;  %v2251_v39 = vld [vmem:[#allocation5 + $0x2b0] sm:$0xff] }
 0x23c   : > { %1985 = vmatmul.f32.gmra.mxu0 %v5204_v22  ;;  %2270 = vmatpush.msrb.mxu2 %v2251_v39 }
 0x23d   : > { %1652 = vmatmul.f32.gmra.mxu2 %v5159_v54  ;;  %1814 = vmatmul.f32.gmra.mxu3 %v5159_v54  ;;  %v1539_v9 = vpop.f32.mrf.mxu1 }
 0x240   : > { %v1025_v32 = vpop.f32.mrf.mxu2  ;;  %v1138_v14 = vpop.f32.mrf.mxu3  ;;  %2147 = vmatmul.f32.gmra.mxu1 %v5204_v22 }
 0x241   : > { %v1139_v44 = vadd.f32 %v1138_v14, %v1025_v32  ;;  %v5807_v57 = vpop.f32.mrf.mxu0 }
 0x242   : > { %7352 = vst [vmem:[#allocation169_spill] sm:$0xff] %v5807_v57  ;;  %v2737_v57 = vld [vmem:[#allocation7 + $0x330] sm:$0xff] }
 0x243   : > { %v5809_v6 = vadd.f32 %v1539_v9, %v1139_v44  ;;  %2756 = vmatpush.msrb.mxu1 %v2737_v57 }
 0x244   : > { %1988 = vmatmul.f32.gmra.mxu0 %v4763_v42 }
 0x245   : > { %7353 = vst [vmem:[#allocation170_spill] sm:$0xff] %v5809_v6  ;;  %4126 = vmatmul.msk.f32.gmra.mxu2 %vm4766_vm2, %v4747_v24  ;;  %4158 = vmatmul.msk.f32.gmra.mxu3 %vm4766_vm2, %v4747_v24  ;;  %v1542_v63 = vpop.f32.mrf.mxu1  ;;  %v2575_v6 = vld [vmem:[#allocation5 + $0x330] sm:$0xff] }
 0x246   : > { %2594 = vmatpush.msrb.mxu0 %v2575_v6  ;;  %v2412_v6 = vld [vmem:[#allocation7 + $0x2a8] sm:$0xff] }
 0x247   : > { %2433 = vmatpush.msrb.mxu3 %v2412_v6  ;;  %v812_v6 = vadd.f32 %v5231_v35, %v5226_v51 }
 0x248   : > { %v1028_v32 = vpop.f32.mrf.mxu2  ;;  %v1141_v14 = vpop.f32.mrf.mxu3  ;;  %2150 = vmatmul.f32.gmra.mxu1 %v4763_v42 }
 0x249   : > { %v1142_v9 = vadd.f32 %v1141_v14, %v1028_v32  ;;  %v5819_v44 = vpop.f32.mrf.mxu0 }
 0x24a   : > { %7354 = vst [vmem:[#allocation171_spill] sm:$0xff] %v5819_v44 }
 0x24b   : > { %v5821_v22 = vadd.f32 %v1542_v63, %v1142_v9  ;;  %v7357_v63 = vld [vmem:[#allocation71_spill] sm:$0xff]  ;;  %v7358_v9 = vld [vmem:[#allocation72_spill] sm:$0xff] }
 0x24c   : > { %1991 = vmatmul.f32.gmra.mxu0 %v4795_v1  ;;  %v809_v44 = vadd.f32 %v7358_v9, %v7357_v63 }
 0x24d   : > { %7355 = vst [vmem:[#allocation172_spill] sm:$0xff] %v5821_v22  ;;  %1658 = vmatmul.f32.gmra.mxu2 %v4751_v30  ;;  %1820 = vmatmul.f32.gmra.mxu3 %v4751_v30  ;;  %v1545_v55 = vpop.f32.mrf.mxu1 }
 0x250   : > { %v1031_v21 = vpop.f32.mrf.mxu2  ;;  %v1144_v39 = vpop.f32.mrf.mxu3  ;;  %2153 = vmatmul.f32.gmra.mxu1 %v4795_v1  ;;  %v2250_v1 = vld [vmem:[#allocation5 + $0x2a8] sm:$0xff] }
 0x251   : > { %v1145_v32 = vadd.f32 %v1144_v39, %v1031_v21  ;;  %v1947_v14 = vpop.f32.mrf.mxu0  ;;  %2271 = vmatpush.msrb.mxu2 %v2250_v1 }
 0x253   : > { %v5827_v42 = vadd.f32 %v1545_v55, %v1145_v32  ;;  %v1386_v55 = vadd.f32 %v5455_v25, %v809_v44  ;;  %v2736_v25 = vld [vmem:[#allocation7 + $0x328] sm:$0xff] }
 0x254   : > { %1994 = vmatmul.f32.gmra.mxu0 %v7264_v5  ;;  %v2574_v44 = vld [vmem:[#allocation5 + $0x328] sm:$0xff]  ;;  %2757 = vmatpush.msrb.mxu1 %v2736_v25 }
 0x255   : > { %7356 = vst [vmem:[#allocation173_spill] sm:$0xff] %v5827_v42  ;;  %4128 = vmatmul.msk.f32.gmra.mxu2 %vm4766_vm2, %v7265_v10  ;;  %4160 = vmatmul.msk.f32.gmra.mxu3 %vm4766_vm2, %v7265_v10  ;;  %v2109_v57 = vpop.f32.mrf.mxu1 }
 0x256   : > { %2595 = vmatpush.msrb.mxu0 %v2574_v44 }
 0x258   : > { %v1614_v21 = vpop.f32.mrf.mxu2  ;;  %v1776_v39 = vpop.f32.mrf.mxu3  ;;  %2156 = vmatmul.f32.gmra.mxu1 %v7264_v5  ;;  %v7367_v5 = vld [vmem:[#allocation80_spill] sm:$0xff] }
 0x259   : > { %v1710_v32 = vadd.f32 %v1614_v21, %v1386_v55  ;;  %v1872_v63 = vadd.f32 %v1776_v39, %v5472_v52  ;;  %v1950_v9 = vpop.f32.mrf.mxu0  ;;  %v1387_v52 = vadd.f32 %v5467_v58, %v812_v6  ;;  %v2249_v6 = vld [vmem:[#allocation5 + $0x2a0] sm:$0xff] }
 0x25a   : > { %2272 = vmatpush.msrb.mxu2 %v2249_v6  ;;  %v7368_v6 = vld [vmem:[#allocation24_spill] sm:$0xff] }
 0x25b   : > { %v5841_v42 = vadd.f32 %v1947_v14, %v1710_v32  ;;  %v5843_v22 = vadd.f32 %v2109_v57, %v1872_v63  ;;  %v7360_v32 = vld [vmem:[#allocation75_spill] sm:$0xff] }
 0x25c   : > { %1997 = vmatmul.f32.gmra.mxu0 %v7270_v40  ;;  %v815_v63 = vadd.f32 %v5248_v3, %v7360_v32  ;;  %v7365_v32 = vld [vmem:[#allocation31_spill] sm:$0xff] }
 0x25d   : > { %1664 = vmatmul.f32.gmra.mxu2 %v4807_v4  ;;  %1826 = vmatmul.f32.gmra.mxu3 %v4807_v4  ;;  %v2112_v1 = vpop.f32.mrf.mxu1 }
 0x260   : > { %v1617_v14 = vpop.f32.mrf.mxu2  ;;  %v1779_v55 = vpop.f32.mrf.mxu3  ;;  %2159 = vmatmul.f32.gmra.mxu1 %v7270_v40  ;;  %v7366_v40 = vld [vmem:[#allocation78_spill] sm:$0xff] }
 0x261   : > { %v1711_v57 = vadd.f32 %v1617_v14, %v1387_v52  ;;  %v1873_v21 = vadd.f32 %v1779_v55, %v5485_v36  ;;  %v1953_v39 = vpop.f32.mrf.mxu0  ;;  %v2411_v36 = vld [vmem:[#allocation7 + $0x2a0] sm:$0xff]  ;;  %v7362_v52 = vld [vmem:[#allocation134_spill] sm:$0xff] }
 0x262   : > { %2434 = vmatpush.msrb.mxu3 %v2411_v36  ;;  %v818_v36 = vadd.f32 %v7367_v5, %v7366_v40 }
 0x263   : > { %v5853_v51 = vadd.f32 %v1950_v9, %v1711_v57  ;;  %v5855_v35 = vadd.f32 %v2112_v1, %v1873_v21  ;;  %v7361_v9 = vld [vmem:[#allocation132_spill] sm:$0xff] }
 0x264   : > { %2000 = vmatmul.f32.gmra.mxu0 %v7276_v61  ;;  %v1388_v1 = vadd.f32 %v7361_v9, %v815_v63  ;;  %v2735_v9 = vld [vmem:[#allocation7 + $0x320] sm:$0xff] }
 0x265   : > { %7359 = vst [vmem:[#allocation71_spill] sm:$0xff] %v5855_v35  ;;  %4130 = vmatmul.msk.f32.gmra.mxu2 %vm4766_vm2, %v7277_v50  ;;  %4162 = vmatmul.msk.f32.gmra.mxu3 %vm4766_vm2, %v7277_v50  ;;  %v2115_v58 = vpop.f32.mrf.mxu1  ;;  %v7375_v35 = vld [vmem:[#allocation84_spill] sm:$0xff] }
 0x266   : > { %2758 = vmatpush.msrb.mxu1 %v2735_v9 }
 0x268   : > { %v1620_v25 = vpop.f32.mrf.mxu2  ;;  %v1782_v44 = vpop.f32.mrf.mxu3  ;;  %2162 = vmatmul.f32.gmra.mxu1 %v7276_v61  ;;  %v2573_v61 = vld [vmem:[#allocation5 + $0x320] sm:$0xff] }
 0x269   : > { %v1712_v3 = vadd.f32 %v1620_v25, %v1388_v1  ;;  %v1874_v14 = vadd.f32 %v1782_v44, %v7362_v52  ;;  %v1956_v55 = vpop.f32.mrf.mxu0  ;;  %2596 = vmatpush.msrb.mxu0 %v2573_v61  ;;  %v7369_v1 = vld [vmem:[#allocation18_spill] sm:$0xff]  ;;  %v7376_v61 = vld [vmem:[#allocation29_spill] sm:$0xff] }
 0x26a   : > { %v1389_v25 = vadd.f32 %v7369_v1, %v818_v36  ;;  %v2410_v1 = vld [vmem:[#allocation7 + $0x298] sm:$0xff] }
 0x26b   : > { %v5869_v57 = vadd.f32 %v1953_v39, %v1712_v3  ;;  %v5871_v21 = vadd.f32 %v2115_v58, %v1874_v14  ;;  %v7370_v3 = vld [vmem:[#allocation136_spill] sm:$0xff]  ;;  %2435 = vmatpush.msrb.mxu3 %v2410_v1 }
 0x26c   : > { %2003 = vmatmul.f32.gmra.mxu0 %v7365_v32 }
 0x26d   : > { %7363 = vst [vmem:[#allocation72_spill] sm:$0xff] %v5869_v57  ;;  %1670 = vmatmul.f32.gmra.mxu2 %v7368_v6  ;;  %1832 = vmatmul.f32.gmra.mxu3 %v7368_v6  ;;  %v2118_v63 = vpop.f32.mrf.mxu1  ;;  %v7374_v57 = vld [vmem:[#allocation82_spill] sm:$0xff] }
 0x26e   : > { %7364 = vst [vmem:[#allocation75_spill] sm:$0xff] %v5871_v21  ;;  %v7373_v21 = vld [vmem:[#allocation35_spill] sm:$0xff]  ;;  %v821_v9 = vadd.f32 %v7375_v35, %v7374_v57  ;;  %v7378_v57 = vld [vmem:[#allocation137_spill] sm:$0xff] }
 0x270   : > { %v1623_v39 = vpop.f32.mrf.mxu2  ;;  %v1785_v44 = vpop.f32.mrf.mxu3  ;;  %2165 = vmatmul.f32.gmra.mxu1 %v7365_v32 }
 0x271   : > { %v1713_v58 = vadd.f32 %v1623_v39, %v1389_v25  ;;  %v1875_v52 = vadd.f32 %v1785_v44, %v7370_v3  ;;  %v1959_v14 = vpop.f32.mrf.mxu0  ;;  %v2248_v25 = vld [vmem:[#allocation5 + $0x298] sm:$0xff] }
 0x272   : > { %2273 = vmatpush.msrb.mxu2 %v2248_v25  ;;  %v7384_v25 = vld [vmem:[#allocation32_spill] sm:$0xff] }
 0x273   : > { %v5881_v40 = vadd.f32 %v1956_v55, %v1713_v58  ;;  %v5883_v5 = vadd.f32 %v2118_v63, %v1875_v52  ;;  %v7377_v55 = vld [vmem:[#allocation25_spill] sm:$0xff] }
 0x274   : > { %2006 = vmatmul.f32.gmra.mxu0 %v7373_v21  ;;  %v1390_v63 = vadd.f32 %v7377_v55, %v821_v9  ;;  %v2734_v55 = vld [vmem:[#allocation7 + $0x318] sm:$0xff] }
 0x275   : > { %7371 = vst [vmem:[#allocation132_spill] sm:$0xff] %v5881_v40  ;;  %4132 = vmatmul.msk.f32.gmra.mxu2 %vm4766_vm2, %v7376_v61  ;;  %4164 = vmatmul.msk.f32.gmra.mxu3 %vm4766_vm2, %v7376_v61  ;;  %v2121_v36 = vpop.f32.mrf.mxu1  ;;  %v7382_v40 = vld [vmem:[#allocation86_spill] sm:$0xff]  ;;  %v7383_v61 = vld [vmem:[#allocation88_spill] sm:$0xff] }
 0x276   : > { %7372 = vst [vmem:[#allocation134_spill] sm:$0xff] %v5883_v5  ;;  %v7381_v5 = vld [vmem:[#allocation39_spill] sm:$0xff]  ;;  %v824_v1 = vadd.f32 %v7383_v61, %v7382_v40  ;;  %2759 = vmatpush.msrb.mxu1 %v2734_v55 }
 0x278   : > { %v1626_v39 = vpop.f32.mrf.mxu2  ;;  %v1788_v44 = vpop.f32.mrf.mxu3  ;;  %2168 = vmatmul.f32.gmra.mxu1 %v7373_v21  ;;  %v2572_v21 = vld [vmem:[#allocation5 + $0x318] sm:$0xff] }
 0x279   : > { %v1714_v35 = vadd.f32 %v1626_v39, %v1390_v63  ;;  %v1876_v58 = vadd.f32 %v1788_v44, %v7378_v57  ;;  %v1962_v3 = vpop.f32.mrf.mxu0  ;;  %2597 = vmatpush.msrb.mxu0 %v2572_v21  ;;  %v7385_v63 = vld [vmem:[#allocation22_spill] sm:$0xff]  ;;  %v7392_v21 = vld [vmem:[#allocation37_spill] sm:$0xff] }
 0x27a   : > { %v1391_v39 = vadd.f32 %v7385_v63, %v824_v1  ;;  %v2409_v63 = vld [vmem:[#allocation7 + $0x290] sm:$0xff] }
 0x27b   : > { %v5897_v52 = vadd.f32 %v1959_v14, %v1714_v35  ;;  %v5899_v32 = vadd.f32 %v2121_v36, %v1876_v58  ;;  %v7386_v35 = vld [vmem:[#allocation139_spill] sm:$0xff]  ;;  %2436 = vmatpush.msrb.mxu3 %v2409_v63 }
 0x27c   : > { %2009 = vmatmul.f32.gmra.mxu0 %v7381_v5 }
 0x27d   : > { %7379 = vst [vmem:[#allocation78_spill] sm:$0xff] %v5897_v52  ;;  %1676 = vmatmul.f32.gmra.mxu2 %v7384_v25  ;;  %1838 = vmatmul.f32.gmra.mxu3 %v7384_v25  ;;  %v2124_v9 = vpop.f32.mrf.mxu1  ;;  %v7390_v52 = vld [vmem:[#allocation90_spill] sm:$0xff]  ;;  %v7391_v25 = vld [vmem:[#allocation92_spill] sm:$0xff] }
 0x27e   : > { %7380 = vst [vmem:[#allocation80_spill] sm:$0xff] %v5899_v32  ;;  %v7389_v32 = vld [vmem:[#allocation43_spill] sm:$0xff]  ;;  %v827_v55 = vadd.f32 %v7391_v25, %v7390_v52  ;;  %v7394_v25 = vld [vmem:[#allocation141_spill] sm:$0xff] }
 0x280   : > { %v1629_v14 = vpop.f32.mrf.mxu2  ;;  %v1791_v44 = vpop.f32.mrf.mxu3  ;;  %2171 = vmatmul.f32.gmra.mxu1 %v7381_v5 }
 0x281   : > { %v1715_v36 = vadd.f32 %v1629_v14, %v1391_v39  ;;  %v1877_v57 = vadd.f32 %v1791_v44, %v7386_v35  ;;  %v1965_v58 = vpop.f32.mrf.mxu0  ;;  %v2247_v39 = vld [vmem:[#allocation5 + $0x290] sm:$0xff] }
 0x282   : > { %2274 = vmatpush.msrb.mxu2 %v2247_v39  ;;  %v7400_v39 = vld [vmem:[#allocation40_spill] sm:$0xff] }
 0x283   : > { %v5909_v40 = vadd.f32 %v1962_v3, %v1715_v36  ;;  %v5911_v61 = vadd.f32 %v2124_v9, %v1877_v57  ;;  %v7393_v3 = vld [vmem:[#allocation33_spill] sm:$0xff] }
 0x284   : > { %2012 = vmatmul.f32.gmra.mxu0 %v7389_v32  ;;  %v1392_v9 = vadd.f32 %v7393_v3, %v827_v55  ;;  %v2733_v3 = vld [vmem:[#allocation7 + $0x310] sm:$0xff] }
 0x285   : > { %7387 = vst [vmem:[#allocation24_spill] sm:$0xff] %v5909_v40  ;;  %4134 = vmatmul.msk.f32.gmra.mxu2 %vm4766_vm2, %v7392_v21  ;;  %4166 = vmatmul.msk.f32.gmra.mxu3 %vm4766_vm2, %v7392_v21  ;;  %v2127_v1 = vpop.f32.mrf.mxu1  ;;  %v7398_v40 = vld [vmem:[#allocation94_spill] sm:$0xff]  ;;  %v7399_v21 = vld [vmem:[#allocation96_spill] sm:$0xff] }
 0x286   : > { %7388 = vst [vmem:[#allocation18_spill] sm:$0xff] %v5911_v61  ;;  %v7397_v61 = vld [vmem:[#allocation47_spill] sm:$0xff]  ;;  %v830_v63 = vadd.f32 %v7399_v21, %v7398_v40  ;;  %2760 = vmatpush.msrb.mxu1 %v2733_v3 }
 0x288   : > { %v1632_v14 = vpop.f32.mrf.mxu2  ;;  %v1794_v44 = vpop.f32.mrf.mxu3  ;;  %2174 = vmatmul.f32.gmra.mxu1 %v7389_v32  ;;  %v2571_v32 = vld [vmem:[#allocation5 + $0x310] sm:$0xff] }
 0x289   : > { %v1716_v52 = vadd.f32 %v1632_v14, %v1392_v9  ;;  %v1878_v36 = vadd.f32 %v1794_v44, %v7394_v25  ;;  %v1968_v35 = vpop.f32.mrf.mxu0  ;;  %2598 = vmatpush.msrb.mxu0 %v2571_v32  ;;  %v7401_v9 = vld [vmem:[#allocation36_spill] sm:$0xff]  ;;  %v7408_v32 = vld [vmem:[#allocation45_spill] sm:$0xff] }
 0x28a   : > { %v1393_v14 = vadd.f32 %v7401_v9, %v830_v63  ;;  %v2408_v9 = vld [vmem:[#allocation7 + $0x288] sm:$0xff] }
 0x28b   : > { %v5925_v57 = vadd.f32 %v1965_v58, %v1716_v52  ;;  %v5927_v5 = vadd.f32 %v2127_v1, %v1878_v36  ;;  %v7402_v52 = vld [vmem:[#allocation143_spill] sm:$0xff]  ;;  %2437 = vmatpush.msrb.mxu3 %v2408_v9 }
 0x28c   : > { %2015 = vmatmul.f32.gmra.mxu0 %v7397_v61 }
 0x28d   : > { %7395 = vst [vmem:[#allocation136_spill] sm:$0xff] %v5925_v57  ;;  %1682 = vmatmul.f32.gmra.mxu2 %v7400_v39  ;;  %1844 = vmatmul.f32.gmra.mxu3 %v7400_v39  ;;  %v2130_v55 = vpop.f32.mrf.mxu1  ;;  %v7406_v57 = vld [vmem:[#allocation98_spill] sm:$0xff]  ;;  %v7407_v39 = vld [vmem:[#allocation100_spill] sm:$0xff] }
 0x28e   : > { %7396 = vst [vmem:[#allocation82_spill] sm:$0xff] %v5927_v5  ;;  %v7405_v5 = vld [vmem:[#allocation51_spill] sm:$0xff]  ;;  %v833_v3 = vadd.f32 %v7407_v39, %v7406_v57  ;;  %v7410_v39 = vld [vmem:[#allocation145_spill] sm:$0xff] }
 0x290   : > { %v1635_v58 = vpop.f32.mrf.mxu2  ;;  %v1797_v44 = vpop.f32.mrf.mxu3  ;;  %2177 = vmatmul.f32.gmra.mxu1 %v7397_v61 }
 0x291   : > { %v1717_v1 = vadd.f32 %v1635_v58, %v1393_v14  ;;  %v1879_v25 = vadd.f32 %v1797_v44, %v7402_v52  ;;  %v1971_v36 = vpop.f32.mrf.mxu0  ;;  %v2246_v14 = vld [vmem:[#allocation5 + $0x288] sm:$0xff] }
 0x292   : > { %2275 = vmatpush.msrb.mxu2 %v2246_v14  ;;  %v7415_v14 = vld [vmem:[#allocation48_spill] sm:$0xff] }
 0x293   : > { %v5937_v40 = vadd.f32 %v1968_v35, %v1717_v1  ;;  %v5939_v21 = vadd.f32 %v2130_v55, %v1879_v25  ;;  %v7409_v35 = vld [vmem:[#allocation41_spill] sm:$0xff] }
 0x294   : > { %2018 = vmatmul.f32.gmra.mxu0 %v7405_v5  ;;  %v1394_v55 = vadd.f32 %v7409_v35, %v833_v3  ;;  %v2732_v35 = vld [vmem:[#allocation7 + $0x308] sm:$0xff] }
 0x295   : > { %7403 = vst [vmem:[#allocation84_spill] sm:$0xff] %v5937_v40  ;;  %4136 = vmatmul.msk.f32.gmra.mxu2 %vm4766_vm2, %v7408_v32  ;;  %4168 = vmatmul.msk.f32.gmra.mxu3 %vm4766_vm2, %v7408_v32  ;;  %v2133_v63 = vpop.f32.mrf.mxu1  ;;  %v7414_v40 = vld [vmem:[#allocation104_spill] sm:$0xff] }
 0x296   : > { %7404 = vst [vmem:[#allocation25_spill] sm:$0xff] %v5939_v21  ;;  %v7413_v21 = vld [vmem:[#allocation102_spill] sm:$0xff]  ;;  %2761 = vmatpush.msrb.mxu1 %v2732_v35 }
 0x297   : > { %v836_v9 = vadd.f32 %v7414_v40, %v7413_v21 }
 0x298   : > { %v1638_v58 = vpop.f32.mrf.mxu2  ;;  %v1800_v44 = vpop.f32.mrf.mxu3  ;;  %2180 = vmatmul.f32.gmra.mxu1 %v7405_v5  ;;  %v2570_v5 = vld [vmem:[#allocation5 + $0x308] sm:$0xff] }
 0x299   : > { %v1718_v57 = vadd.f32 %v1638_v58, %v1394_v55  ;;  %v1880_v1 = vadd.f32 %v1800_v44, %v7410_v39  ;;  %v1974_v52 = vpop.f32.mrf.mxu0  ;;  %2599 = vmatpush.msrb.mxu0 %v2570_v5  ;;  %v7416_v55 = vld [vmem:[#allocation44_spill] sm:$0xff]  ;;  %v7423_v5 = vld [vmem:[#allocation53_spill] sm:$0xff] }
 0x29a   : > { %v1395_v58 = vadd.f32 %v7416_v55, %v836_v9  ;;  %v2407_v55 = vld [vmem:[#allocation7 + $0x280] sm:$0xff] }
 0x29b   : > { %v5953_v25 = vadd.f32 %v1971_v36, %v1718_v57  ;;  %v5955_v61 = vadd.f32 %v2133_v63, %v1880_v1  ;;  %v7417_v57 = vld [vmem:[#allocation147_spill] sm:$0xff]  ;;  %2438 = vmatpush.msrb.mxu3 %v2407_v55 }
 0x29c   : > { %2021 = vmatmul.f32.gmra.mxu0 %v7318_v31 }
 0x29d   : > { %7411 = vst [vmem:[#allocation137_spill] sm:$0xff] %v5953_v25  ;;  %1688 = vmatmul.f32.gmra.mxu2 %v7415_v14  ;;  %1850 = vmatmul.f32.gmra.mxu3 %v7415_v14  ;;  %v2136_v3 = vpop.f32.mrf.mxu1  ;;  %v7421_v25 = vld [vmem:[#allocation106_spill] sm:$0xff]  ;;  %v7422_v14 = vld [vmem:[#allocation108_spill] sm:$0xff] }
 0x29e   : > { %7412 = vst [vmem:[#allocation86_spill] sm:$0xff] %v5955_v61  ;;  %v7420_v61 = vld [vmem:[#allocation59_spill] sm:$0xff]  ;;  %v839_v35 = vadd.f32 %v7422_v14, %v7421_v25  ;;  %v7425_v14 = vld [vmem:[#allocation149_spill] sm:$0xff] }
 0x2a0   : > { %v1641_v36 = vpop.f32.mrf.mxu2  ;;  %v1803_v44 = vpop.f32.mrf.mxu3  ;;  %2183 = vmatmul.f32.gmra.mxu1 %v7318_v31 }
 0x2a1   : > { %v1719_v63 = vadd.f32 %v1641_v36, %v1395_v58  ;;  %v1881_v39 = vadd.f32 %v1803_v44, %v7417_v57  ;;  %v1977_v1 = vpop.f32.mrf.mxu0  ;;  %v2245_v58 = vld [vmem:[#allocation5 + $0x280] sm:$0xff] }
 0x2a2   : > { %2276 = vmatpush.msrb.mxu2 %v2245_v58  ;;  %v7430_v58 = vld [vmem:[#allocation56_spill] sm:$0xff] }
 0x2a3   : > { %v5965_v40 = vadd.f32 %v1974_v52, %v1719_v63  ;;  %v5967_v21 = vadd.f32 %v2136_v3, %v1881_v39  ;;  %v7424_v52 = vld [vmem:[#allocation49_spill] sm:$0xff] }
 0x2a4   : > { %2024 = vmatmul.f32.gmra.mxu0 %v7420_v61  ;;  %v1396_v3 = vadd.f32 %v7424_v52, %v839_v35  ;;  %v2731_v52 = vld [vmem:[#allocation7 + $0x300] sm:$0xff] }
 0x2a5   : > { %7418 = vst [vmem:[#allocation88_spill] sm:$0xff] %v5965_v40  ;;  %4138 = vmatmul.msk.f32.gmra.mxu2 %vm4766_vm2, %v7423_v5  ;;  %4170 = vmatmul.msk.f32.gmra.mxu3 %vm4766_vm2, %v7423_v5  ;;  %v2139_v9 = vpop.f32.mrf.mxu1  ;;  %v7429_v40 = vld [vmem:[#allocation112_spill] sm:$0xff] }
 0x2a6   : > { %7419 = vst [vmem:[#allocation22_spill] sm:$0xff] %v5967_v21  ;;  %v7428_v21 = vld [vmem:[#allocation110_spill] sm:$0xff]  ;;  %2762 = vmatpush.msrb.mxu1 %v2731_v52 }
 0x2a7   : > { %v842_v55 = vadd.f32 %v7429_v40, %v7428_v21  ;;  %v7435_v52 = vld [vmem:[#allocation114_spill] sm:$0xff] }
 0x2a8   : > { %v1644_v36 = vpop.f32.mrf.mxu2  ;;  %v1806_v44 = vpop.f32.mrf.mxu3  ;;  %2186 = vmatmul.f32.gmra.mxu1 %v7420_v61 }
 0x2a9   : > { %v1720_v25 = vadd.f32 %v1644_v36, %v1396_v3  ;;  %v1882_v63 = vadd.f32 %v1806_v44, %v7425_v14  ;;  %v1980_v57 = vpop.f32.mrf.mxu0  ;;  %v2569_v3 = vld [vmem:[#allocation5 + $0x300] sm:$0xff]  ;;  %v7431_v36 = vld [vmem:[#allocation52_spill] sm:$0xff] }
 0x2aa   : > { %2600 = vmatpush.msrb.mxu0 %v2569_v3  ;;  %v7432_v14 = vld [vmem:[#allocation151_spill] sm:$0xff]  ;;  %v7436_v3 = vld [vmem:[#allocation116_spill] sm:$0xff] }
 0x2ab   : > { %v5981_v39 = vadd.f32 %v1977_v1, %v1720_v25  ;;  %v5983_v31 = vadd.f32 %v2139_v9, %v1882_v63  ;;  %v1397_v1 = vadd.f32 %v7431_v36, %v842_v55  ;;  %v326_v36 = vld [vmem:[%s4735_s30 + $0xf0] sm:$0xff] }
 0x2ac   : > { %2027 = vmatmul.f32.gmra.mxu0 %v7330_v53 }
 0x2ad   : > { %7426 = vst [vmem:[#allocation139_spill] sm:$0xff] %v5981_v39  ;;  %1694 = vmatmul.f32.gmra.mxu2 %v7430_v58  ;;  %1856 = vmatmul.f32.gmra.mxu3 %v7430_v58  ;;  %v2142_v35 = vpop.f32.mrf.mxu1  ;;  %v845_v39 = vadd.f32 %v7436_v3, %v7435_v52  ;;  %v7437_v58 = vld [vmem:[#allocation61_spill] sm:$0xff] }
 0x2ae   : > { %7427 = vst [vmem:[#allocation90_spill] sm:$0xff] %v5983_v31  ;;  %v327_v31 = vld [vmem:[%s4735_s30 + $0xf8] sm:$0xff]  ;;  %v7439_v3 = vld [vmem:[#allocation153_spill] sm:$0xff]  ;;  %s6860_s30 = scalar_lea.sflag [#allocation10], %s3829_s12 }
 0x2b0   : > { %v1647_v9 = vpop.f32.mrf.mxu2  ;;  %v1809_v44 = vpop.f32.mrf.mxu3  ;;  %2189 = vmatmul.f32.gmra.mxu1 %v7330_v53 }
 0x2b1   : > { %v1721_v25 = vadd.f32 %v1647_v9, %v1397_v1  ;;  %v1883_v40 = vadd.f32 %v1809_v44, %v7432_v14  ;;  %v1983_v21 = vpop.f32.mrf.mxu0  ;;  %v2908_v1 = vld [vmem:[#allocation5 + $0x3f8] sm:$0xff]  ;;  %v7438_v9 = vld [vmem:[#allocation57_spill] sm:$0xff] }
 0x2b2   : > { %2909 = vmatpush.msra.mxu2 %v2908_v1  ;;  %v1398_v44 = vadd.f32 %v7438_v9, %v845_v39  ;;  %v7444_v1 = vld [vmem:[#allocation120_spill] sm:$0xff] }
 0x2b3   : > { %v5993_v63 = vadd.f32 %v1980_v57, %v1721_v25  ;;  %v5995_v61 = vadd.f32 %v2142_v35, %v1883_v40  ;;  %v3070_v57 = vld [vmem:[#allocation7 + $0x3f8] sm:$0xff]  ;;  %v407_v35 = vrot.slane %v327_v31, 7  ;;  %v6010_v40 = vrot.slane %v326_v36, 7 }
 0x2b4   : > { %2030 = vmatmul.f32.gmra.mxu0 %v7335_v15  ;;  %3071 = vmatpush.msra.mxu3 %v3070_v57  ;;  %v7443_v36 = vld [vmem:[#allocation118_spill] sm:$0xff] }
 0x2b5   : > { %7433 = vst [vmem:[#allocation92_spill] sm:$0xff] %v5993_v63  ;;  %4140 = vmatmul.msk.f32.gmra.mxu2 %vm4766_vm2, %v7437_v58  ;;  %4172 = vmatmul.msk.f32.gmra.mxu3 %vm4766_vm2, %v7437_v58  ;;  %v2145_v55 = vpop.f32.mrf.mxu1  ;;  %v6015_v63 = vsel %vm360_vm0, %v6010_v40, %v407_v35  ;;  %v6019_v31 = vsel %vm360_vm0, 0.0, %v6010_v40  ;;  %v848_v9 = vadd.f32 %v7444_v1, %v7443_v36  ;;  %v7446_v1 = vld [vmem:[#allocation156_spill] sm:$0xff] }
 0x2b6   : > { %7434 = vst [vmem:[#allocation33_spill] sm:$0xff] %v5995_v61  ;;  %v2238_v43 = vrot.slane %v6015_v63, 2 }
 0x2b7   : > { %7440 = vst [vmem:[#allocation141_spill] sm:$0xff] %v6019_v31 }
 0x2b8   : > { %v1650_v25 = vpop.f32.mrf.mxu2  ;;  %v1812_v14 = vpop.f32.mrf.mxu3  ;;  %2192 = vmatmul.f32.gmra.mxu1 %v7335_v15  ;;  %v3232_v15 = vld [vmem:[#allocation5 + $0x478] sm:$0xff] }
 0x2b9   : > { %v1722_v52 = vadd.f32 %v1650_v25, %v1398_v44  ;;  %v1884_v53 = vadd.f32 %v1812_v14, %v7439_v3  ;;  %v1986_v61 = vpop.f32.mrf.mxu0  ;;  %v1906_v25 = vrot.slane %v6019_v31, 1  ;;  %v1907_v14 = vrot.slane %v6015_v63, 1  ;;  %v3394_v3 = vld [vmem:[#allocation7 + $0x478] sm:$0xff]  ;;  %3233 = vmatpush.msra.mxu0 %v3232_v15 }
 0x2ba   : > { %3395 = vmatpush.msra.mxu1 %v3394_v3  ;;  %v6039_v31 = vsel %vm360_vm0, %v407_v35, 0.0  ;;  %v7449_v15 = vld [vmem:[#allocation122_spill] sm:$0xff] }
 0x2bb   : > { %v6021_v57 = vadd.f32 %v1983_v21, %v1722_v52  ;;  %v6023_v39 = vadd.f32 %v2145_v55, %v1884_v53  ;;  %v7445_v53 = vld [vmem:[#allocation60_spill] sm:$0xff]  ;;  %7448 = vst [vmem:[#allocation143_spill] sm:$0xff] %v6039_v31  ;;  %v1909_v35 = vrot.slane %v6039_v31, 1 }
 0x2bc   : > { %2033 = vmatmul.f32.gmra.mxu0 %v7339_v19  ;;  %v1399_v21 = vadd.f32 %v7445_v53, %v848_v9  ;;  %v7450_v9 = vld [vmem:[#allocation124_spill] sm:$0xff] }
 0x2bd   : > { %7441 = vst [vmem:[#allocation94_spill] sm:$0xff] %v6021_v57  ;;  %1700 = vmatmul.f32.gmra.mxu2 %v7331_v12  ;;  %1862 = vmatmul.f32.gmra.mxu3 %v7331_v12  ;;  %v2148_v44 = vpop.f32.mrf.mxu1  ;;  %v6036_v12 = vsel %vm552_vm1, %v1906_v25, %v1907_v14  ;;  %v851_v53 = vadd.f32 %v7450_v9, %v7449_v15 }
 0x2be   : > { %7442 = vst [vmem:[#allocation96_spill] sm:$0xff] %v6023_v39  ;;  %v6059_v9 = vsel %vm552_vm1, %v1907_v14, %v1909_v35 }
 0x2bf   : > { %7447 = vst [vmem:[#allocation36_spill] sm:$0xff] %v6036_v12 }
 0x2c0   : > { %v1653_v55 = vpop.f32.mrf.mxu2  ;;  %v1815_v52 = vpop.f32.mrf.mxu3  ;;  %2195 = vmatmul.f32.gmra.mxu1 %v7339_v19  ;;  %7452 = vst [vmem:[#allocation98_spill] sm:$0xff] %v6059_v9 }
 0x2c1   : > { %v1723_v36 = vadd.f32 %v1653_v55, %v1399_v21  ;;  %v1885_v39 = vadd.f32 %v1815_v52, %v7446_v1  ;;  %v1989_v57 = vpop.f32.mrf.mxu0  ;;  %v2907_v21 = vld [vmem:[#allocation5 + $0x3f0] sm:$0xff] }
 0x2c2   : > { %2910 = vmatpush.msra.mxu2 %v2907_v21  ;;  %v7454_v21 = vld [vmem:[#allocation128_spill] sm:$0xff] }
 0x2c3   : > { %v6041_v58 = vadd.f32 %v1986_v61, %v1723_v36  ;;  %v6043_v3 = vadd.f32 %v2148_v44, %v1885_v39  ;;  %v3069_v61 = vld [vmem:[#allocation7 + $0x3f0] sm:$0xff]  ;;  %v7451_v39 = vld [vmem:[#allocation154_spill] sm:$0xff] }
 0x2c4   : > { %2036 = vmatmul.f32.gmra.mxu0 %v6036_v12  ;;  %3072 = vmatpush.msra.mxu3 %v3069_v61  ;;  %v1400_v44 = vadd.f32 %v7451_v39, %v851_v53  ;;  %v7453_v61 = vld [vmem:[#allocation126_spill] sm:$0xff] }
 0x2c5   : > { %4142 = vmatmul.msk.f32.gmra.mxu2 %vm4766_vm2, %v6010_v40  ;;  %4174 = vmatmul.msk.f32.gmra.mxu3 %vm4766_vm2, %v6010_v40  ;;  %v2151_v25 = vpop.f32.mrf.mxu1  ;;  %v854_v53 = vadd.f32 %v7454_v21, %v7453_v61  ;;  %v7455_v61 = vld [vmem:[#allocation76_spill] sm:$0xff] }
 0x2c6   : > { %v3068_v21 = vld [vmem:[#allocation7 + $0x3e8] sm:$0xff] }
 0x2c7   : > { %v1401_v14 = vadd.f32 %v5656_v33, %v854_v53  ;;  %v2906_v53 = vld [vmem:[#allocation5 + $0x3e8] sm:$0xff]  ;;  %3073 = vmatpush.msra.mxu3 %v3068_v21 }
 0x2c8   : > { %v1656_v55 = vpop.f32.mrf.mxu2  ;;  %v1818_v52 = vpop.f32.mrf.mxu3  ;;  %2198 = vmatmul.f32.gmra.mxu1 %v6036_v12  ;;  %2911 = vmatpush.msra.mxu2 %v2906_v53  ;;  %v3392_v53 = vld [vmem:[#allocation7 + $0x468] sm:$0xff] }
 0x2c9   : > { %v1724_v36 = vadd.f32 %v1656_v55, %v1400_v44  ;;  %v1886_v1 = vadd.f32 %v1818_v52, %v5661_v20  ;;  %v1992_v15 = vpop.f32.mrf.mxu0  ;;  %v3393_v44 = vld [vmem:[#allocation7 + $0x470] sm:$0xff] }
 0x2ca   : > { %v3231_v20 = vld [vmem:[#allocation5 + $0x470] sm:$0xff]  ;;  %3396 = vmatpush.msra.mxu1 %v3393_v44 }
 0x2cb   : > { %v6061_v19 = vadd.f32 %v1989_v57, %v1724_v36  ;;  %v6063_v31 = vadd.f32 %v2151_v25, %v1886_v1  ;;  %3234 = vmatpush.msra.mxu0 %v3231_v20  ;;  %v7456_v44 = vld [vmem:[#allocation73_spill] sm:$0xff] }
 0x2cc   : > { %2039 = vmatmul.f32.gmra.mxu0 %v6059_v9  ;;  %3397 = vmatpush.msra.mxu1 %v3392_v53  ;;  %v2905_v53 = vld [vmem:[#allocation5 + $0x3e0] sm:$0xff] }
 0x2cd   : > { %1706 = vmatmul.f32.gmra.mxu2 %v6015_v63  ;;  %1868 = vmatmul.f32.gmra.mxu3 %v6015_v63  ;;  %v2154_v39 = vpop.f32.mrf.mxu1 }
 0x2ce   : > { %2912 = vmatpush.msra.mxu2 %v2905_v53  ;;  %v3391_v53 = vld [vmem:[#allocation7 + $0x460] sm:$0xff] }
 0x2cf   : > { %3398 = vmatpush.msra.mxu1 %v3391_v53  ;;  %v7466_v53 = vld [vmem:[#allocation91_spill] sm:$0xff] }
 0x2d0   : > { %v1659_v57 = vpop.f32.mrf.mxu2  ;;  %v1821_v35 = vpop.f32.mrf.mxu3  ;;  %2201 = vmatmul.f32.gmra.mxu1 %v6059_v9 }
 0x2d1   : > { %v1725_v25 = vadd.f32 %v1659_v57, %v1401_v14  ;;  %v1887_v55 = vadd.f32 %v1821_v35, %v5669_v60  ;;  %v1995_v52 = vpop.f32.mrf.mxu0  ;;  %v7457_v60 = vld [vmem:[#allocation157_spill] sm:$0xff] }
 0x2d2   : > { %v1402_v20 = vadd.f32 %v7457_v60, %v7456_v44  ;;  %v3230_v44 = vld [vmem:[#allocation5 + $0x468] sm:$0xff] }
 0x2d3   : > { %v6073_v36 = vadd.f32 %v1992_v15, %v1725_v25  ;;  %v6075_v1 = vadd.f32 %v2154_v39, %v1887_v55  ;;  %3235 = vmatpush.msra.mxu0 %v3230_v44 }
 0x2d4   : > { %4176 = vmatmul.msk.f32.vlgmr.msrb.gmra.mxu0 %vm4766_vm2, %v4844_v37 }
 0x2d5   : > { %2277 = vmatmul.f32.vlgmr.msrb.gmra.mxu2 %v7455_v61  ;;  %2439 = vmatmul.f32.vlgmr.msrb.gmra.mxu3 %v7455_v61  ;;  %v2157_v33 = vpop.f32.mrf.mxu1  ;;  %v7458_v61 = vld [vmem:[#allocation79_spill] sm:$0xff] }
 0x2d8   : > { %v1662_v15 = vpop.f32.mrf.mxu2  ;;  %v1824_v14 = vpop.f32.mrf.mxu3  ;;  %4206 = vmatmul.msk.f32.vlgmr.msrb.gmra.mxu1 %vm4766_vm2, %v4844_v37  ;;  %v7459_v37 = vld [vmem:[#allocation74_spill] sm:$0xff] }
 0x2d9   : > { %v1726_v39 = vadd.f32 %v1662_v15, %v1402_v20  ;;  %v1888_v57 = vadd.f32 %v1824_v14, %v5681_v23  ;;  %v1998_v35 = vpop.f32.mrf.mxu0  ;;  %v1403_v60 = vadd.f32 %v5679_v13, %v7459_v37 }
 0x2db   : > { %v6088_v25 = vadd.f32 %v1995_v52, %v1726_v39  ;;  %v6090_v55 = vadd.f32 %v2157_v33, %v1888_v57  ;;  %v7460_v57 = vld [vmem:[#allocation83_spill] sm:$0xff] }
 0x2dc   : > { %2604 = vmatmul.f32.gmra.mxu0 %v4859_v49 }
 0x2dd   : > { %2280 = vmatmul.f32.gmra.mxu2 %v7458_v61  ;;  %2442 = vmatmul.f32.gmra.mxu3 %v7458_v61  ;;  %v2160_v21 = vpop.f32.mrf.mxu1  ;;  %v3067_v61 = vld [vmem:[#allocation7 + $0x3e0] sm:$0xff] }
 0x2de   : > { %3074 = vmatpush.msra.mxu3 %v3067_v61 }
 0x2e0   : > { %v1665_v23 = vpop.f32.mrf.mxu2  ;;  %v1827_v20 = vpop.f32.mrf.mxu3  ;;  %2766 = vmatmul.f32.gmra.mxu1 %v4859_v49  ;;  %v7461_v49 = vld [vmem:[#allocation77_spill] sm:$0xff] }
 0x2e1   : > { %v1727_v52 = vadd.f32 %v1665_v23, %v1403_v60  ;;  %v1889_v33 = vadd.f32 %v1827_v20, %v5689_v7  ;;  %v2001_v15 = vpop.f32.mrf.mxu0  ;;  %v7462_v7 = vld [vmem:[#allocation158_spill] sm:$0xff] }
 0x2e2   : > { %v1404_v44 = vadd.f32 %v7462_v7, %v7461_v49  ;;  %v3229_v49 = vld [vmem:[#allocation5 + $0x460] sm:$0xff] }
 0x2e3   : > { %v6099_v14 = vadd.f32 %v1998_v35, %v1727_v52  ;;  %v6101_v39 = vadd.f32 %v2160_v21, %v1889_v33  ;;  %v7463_v33 = vld [vmem:[#allocation87_spill] sm:$0xff]  ;;  %3236 = vmatpush.msra.mxu0 %v3229_v49  ;;  %v3066_v49 = vld [vmem:[#allocation7 + $0x3d8] sm:$0xff] }
 0x2e4   : > { %4178 = vmatmul.msk.f32.gmra.mxu0 %vm4766_vm2, %v4904_v17  ;;  %3075 = vmatpush.msra.mxu3 %v3066_v49  ;;  %v7469_v49 = vld [vmem:[#allocation95_spill] sm:$0xff] }
 0x2e5   : > { %2283 = vmatmul.f32.gmra.mxu2 %v7460_v57  ;;  %2445 = vmatmul.f32.gmra.mxu3 %v7460_v57  ;;  %v2163_v13 = vpop.f32.mrf.mxu1 }
 0x2e8   : > { %v1668_v35 = vpop.f32.mrf.mxu2  ;;  %v1830_v37 = vpop.f32.mrf.mxu3  ;;  %4208 = vmatmul.msk.f32.gmra.mxu1 %vm4766_vm2, %v4904_v17  ;;  %v7464_v17 = vld [vmem:[#allocation81_spill] sm:$0xff] }
 0x2e9   : > { %v1728_v21 = vadd.f32 %v1668_v35, %v1404_v44  ;;  %v1890_v60 = vadd.f32 %v1830_v37, %v5701_v11  ;;  %v2004_v23 = vpop.f32.mrf.mxu0  ;;  %v1405_v7 = vadd.f32 %v5699_v56, %v7464_v17  ;;  %v2904_v17 = vld [vmem:[#allocation5 + $0x3d8] sm:$0xff] }
 0x2ea   : > { %2913 = vmatpush.msra.mxu2 %v2904_v17 }
 0x2eb   : > { %v6114_v20 = vadd.f32 %v2001_v15, %v1728_v21  ;;  %v6116_v52 = vadd.f32 %v2163_v13, %v1890_v60  ;;  %v7465_v13 = vld [vmem:[#allocation160_spill] sm:$0xff] }
 0x2ec   : > { %2610 = vmatmul.f32.gmra.mxu0 %v4919_v29 }
 0x2ed   : > { %2286 = vmatmul.f32.gmra.mxu2 %v7463_v33  ;;  %2448 = vmatmul.f32.gmra.mxu3 %v7463_v33  ;;  %v2166_v61 = vpop.f32.mrf.mxu1 }
 0x2f0   : > { %v1671_v11 = vpop.f32.mrf.mxu2  ;;  %v1833_v44 = vpop.f32.mrf.mxu3  ;;  %2772 = vmatmul.f32.gmra.mxu1 %v4919_v29  ;;  %v7467_v29 = vld [vmem:[#allocation85_spill] sm:$0xff] }
 0x2f1   : > { %v1729_v15 = vadd.f32 %v1671_v11, %v1405_v7  ;;  %v1891_v35 = vadd.f32 %v1833_v44, %v7465_v13  ;;  %v2007_v37 = vpop.f32.mrf.mxu0  ;;  %v7468_v7 = vld [vmem:[#allocation159_spill] sm:$0xff] }
 0x2f2   : > { %v1406_v11 = vadd.f32 %v7468_v7, %v7467_v29  ;;  %v3390_v29 = vld [vmem:[#allocation7 + $0x458] sm:$0xff] }
 0x2f3   : > { %v6125_v21 = vadd.f32 %v2004_v23, %v1729_v15  ;;  %v6127_v60 = vadd.f32 %v2166_v61, %v1891_v35  ;;  %v3228_v7 = vld [vmem:[#allocation5 + $0x458] sm:$0xff]  ;;  %3399 = vmatpush.msra.mxu1 %v3390_v29  ;;  %v7473_v29 = vld [vmem:[#allocation99_spill] sm:$0xff] }
 0x2f4   : > { %4180 = vmatmul.msk.f32.gmra.mxu0 %vm4766_vm2, %v4964_v16 }
 0x2f5   : > { %2289 = vmatmul.f32.gmra.mxu2 %v7466_v53  ;;  %2451 = vmatmul.f32.gmra.mxu3 %v7466_v53  ;;  %v2169_v56 = vpop.f32.mrf.mxu1 }
 0x2f6   : > { %3237 = vmatpush.msra.mxu0 %v3228_v7  ;;  %v3065_v7 = vld [vmem:[#allocation7 + $0x3d0] sm:$0xff] }
 0x2f7   : > { %3076 = vmatpush.msra.mxu3 %v3065_v7  ;;  %v7477_v7 = vld [vmem:[#allocation103_spill] sm:$0xff] }
 0x2f8   : > { %v1674_v23 = vpop.f32.mrf.mxu2  ;;  %v1836_v44 = vpop.f32.mrf.mxu3  ;;  %4210 = vmatmul.msk.f32.gmra.mxu1 %vm4766_vm2, %v4964_v16  ;;  %v7470_v16 = vld [vmem:[#allocation89_spill] sm:$0xff] }
 0x2f9   : > { %v1730_v61 = vadd.f32 %v1674_v23, %v1406_v11  ;;  %v1892_v15 = vadd.f32 %v1836_v44, %v5721_v27  ;;  %v2010_v13 = vpop.f32.mrf.mxu0  ;;  %v1407_v11 = vadd.f32 %v5719_v47, %v7470_v16  ;;  %v2903_v16 = vld [vmem:[#allocation5 + $0x3d0] sm:$0xff] }
 0x2fa   : > { %2914 = vmatpush.msra.mxu2 %v2903_v16 }
 0x2fb   : > { %v6140_v35 = vadd.f32 %v2007_v37, %v1730_v61  ;;  %v6142_v9 = vadd.f32 %v2169_v56, %v1892_v15  ;;  %v7471_v56 = vld [vmem:[#allocation162_spill] sm:$0xff] }
 0x2fc   : > { %2616 = vmatmul.f32.gmra.mxu0 %v4979_v45 }
 0x2fd   : > { %2292 = vmatmul.f32.gmra.mxu2 %v7469_v49  ;;  %2454 = vmatmul.f32.gmra.mxu3 %v7469_v49  ;;  %v2172_v17 = vpop.f32.mrf.mxu1 }
 0x300   : > { %v1677_v27 = vpop.f32.mrf.mxu2  ;;  %v1839_v23 = vpop.f32.mrf.mxu3  ;;  %2778 = vmatmul.f32.gmra.mxu1 %v4979_v45  ;;  %v7474_v45 = vld [vmem:[#allocation93_spill] sm:$0xff] }
 0x301   : > { %v1731_v37 = vadd.f32 %v1677_v27, %v1407_v11  ;;  %v1893_v44 = vadd.f32 %v1839_v23, %v7471_v56  ;;  %v2013_v61 = vpop.f32.mrf.mxu0  ;;  %v7475_v11 = vld [vmem:[#allocation161_spill] sm:$0xff] }
 0x302   : > { %v1408_v27 = vadd.f32 %v7475_v11, %v7474_v45  ;;  %v3389_v45 = vld [vmem:[#allocation7 + $0x450] sm:$0xff] }
 0x303   : > { %v6151_v15 = vadd.f32 %v2010_v13, %v1731_v37  ;;  %v6153_v12 = vadd.f32 %v2172_v17, %v1893_v44  ;;  %v3227_v11 = vld [vmem:[#allocation5 + $0x450] sm:$0xff]  ;;  %3400 = vmatpush.msra.mxu1 %v3389_v45  ;;  %v7481_v45 = vld [vmem:[#allocation107_spill] sm:$0xff] }
 0x304   : > { %4182 = vmatmul.msk.f32.gmra.mxu0 %vm4766_vm2, %v5024_v41 }
 0x305   : > { %7472 = vst [vmem:[#allocation100_spill] sm:$0xff] %v6153_v12  ;;  %2295 = vmatmul.f32.gmra.mxu2 %v7473_v29  ;;  %2457 = vmatmul.f32.gmra.mxu3 %v7473_v29  ;;  %v2175_v47 = vpop.f32.mrf.mxu1 }
 0x306   : > { %3238 = vmatpush.msra.mxu0 %v3227_v11  ;;  %v3064_v11 = vld [vmem:[#allocation7 + $0x3c8] sm:$0xff] }
 0x307   : > { %3077 = vmatpush.msra.mxu3 %v3064_v11  ;;  %v7485_v11 = vld [vmem:[#allocation111_spill] sm:$0xff] }
 0x308   : > { %v1680_v13 = vpop.f32.mrf.mxu2  ;;  %v1842_v23 = vpop.f32.mrf.mxu3  ;;  %4212 = vmatmul.msk.f32.gmra.mxu1 %vm4766_vm2, %v5024_v41  ;;  %v7478_v41 = vld [vmem:[#allocation97_spill] sm:$0xff] }
 0x309   : > { %v1732_v17 = vadd.f32 %v1680_v13, %v1408_v27  ;;  %v1894_v37 = vadd.f32 %v1842_v23, %v5741_v38  ;;  %v2016_v56 = vpop.f32.mrf.mxu0  ;;  %v1409_v27 = vadd.f32 %v5739_v18, %v7478_v41  ;;  %v2902_v41 = vld [vmem:[#allocation5 + $0x3c8] sm:$0xff] }
 0x30a   : > { %2915 = vmatpush.msra.mxu2 %v2902_v41 }
 0x30b   : > { %v6166_v44 = vadd.f32 %v2013_v61, %v1732_v17  ;;  %v6168_v12 = vadd.f32 %v2175_v47, %v1894_v37  ;;  %v7479_v47 = vld [vmem:[#allocation164_spill] sm:$0xff] }
 0x30c   : > { %2622 = vmatmul.f32.gmra.mxu0 %v5039_v62 }
 0x30d   : > { %7476 = vst [vmem:[#allocation45_spill] sm:$0xff] %v6168_v12  ;;  %2298 = vmatmul.f32.gmra.mxu2 %v7477_v7  ;;  %2460 = vmatmul.f32.gmra.mxu3 %v7477_v7  ;;  %v2178_v16 = vpop.f32.mrf.mxu1 }
 0x310   : > { %v1683_v38 = vpop.f32.mrf.mxu2  ;;  %v1845_v13 = vpop.f32.mrf.mxu3  ;;  %2784 = vmatmul.f32.gmra.mxu1 %v5039_v62  ;;  %v7482_v62 = vld [vmem:[#allocation101_spill] sm:$0xff] }
 0x311   : > { %v1733_v61 = vadd.f32 %v1683_v38, %v1409_v27  ;;  %v1895_v23 = vadd.f32 %v1845_v13, %v7479_v47  ;;  %v2019_v17 = vpop.f32.mrf.mxu0  ;;  %v7483_v27 = vld [vmem:[#allocation163_spill] sm:$0xff] }
 0x312   : > { %v1410_v38 = vadd.f32 %v7483_v27, %v7482_v62  ;;  %v3388_v62 = vld [vmem:[#allocation7 + $0x448] sm:$0xff] }
 0x313   : > { %v6177_v37 = vadd.f32 %v2016_v56, %v1733_v61  ;;  %v6179_v12 = vadd.f32 %v2178_v16, %v1895_v23  ;;  %v3226_v27 = vld [vmem:[#allocation5 + $0x448] sm:$0xff]  ;;  %3401 = vmatpush.msra.mxu1 %v3388_v62  ;;  %v7489_v62 = vld [vmem:[#allocation115_spill] sm:$0xff] }
 0x314   : > { %4184 = vmatmul.msk.f32.gmra.mxu0 %vm4766_vm2, %v5084_v28 }
 0x315   : > { %7480 = vst [vmem:[#allocation41_spill] sm:$0xff] %v6179_v12  ;;  %2301 = vmatmul.f32.gmra.mxu2 %v7481_v45  ;;  %2463 = vmatmul.f32.gmra.mxu3 %v7481_v45  ;;  %v2181_v18 = vpop.f32.mrf.mxu1 }
 0x316   : > { %3239 = vmatpush.msra.mxu0 %v3226_v27  ;;  %v3063_v27 = vld [vmem:[#allocation7 + $0x3c0] sm:$0xff] }
 0x317   : > { %3078 = vmatpush.msra.mxu3 %v3063_v27  ;;  %v7493_v27 = vld [vmem:[#allocation119_spill] sm:$0xff] }
 0x318   : > { %v1686_v56 = vpop.f32.mrf.mxu2  ;;  %v1848_v13 = vpop.f32.mrf.mxu3  ;;  %4214 = vmatmul.msk.f32.gmra.mxu1 %vm4766_vm2, %v5084_v28  ;;  %v7486_v28 = vld [vmem:[#allocation105_spill] sm:$0xff] }
 0x319   : > { %v1734_v16 = vadd.f32 %v1686_v56, %v1410_v38  ;;  %v1896_v61 = vadd.f32 %v1848_v13, %v5761_v26  ;;  %v2022_v47 = vpop.f32.mrf.mxu0  ;;  %v1411_v38 = vadd.f32 %v5759_v8, %v7486_v28  ;;  %v2901_v28 = vld [vmem:[#allocation5 + $0x3c0] sm:$0xff] }
 0x31a   : > { %2916 = vmatpush.msra.mxu2 %v2901_v28 }
 0x31b   : > { %v6192_v23 = vadd.f32 %v2019_v17, %v1734_v16  ;;  %v6194_v12 = vadd.f32 %v2181_v18, %v1896_v61  ;;  %v7487_v18 = vld [vmem:[#allocation166_spill] sm:$0xff] }
 0x31c   : > { %2628 = vmatmul.f32.gmra.mxu0 %v5099_v34 }
 0x31d   : > { %7484 = vst [vmem:[#allocation145_spill] sm:$0xff] %v6194_v12  ;;  %2304 = vmatmul.f32.gmra.mxu2 %v7485_v11  ;;  %2466 = vmatmul.f32.gmra.mxu3 %v7485_v11  ;;  %v2184_v41 = vpop.f32.mrf.mxu1 }
 0x320   : > { %v1689_v26 = vpop.f32.mrf.mxu2  ;;  %v1851_v56 = vpop.f32.mrf.mxu3  ;;  %2790 = vmatmul.f32.gmra.mxu1 %v5099_v34  ;;  %v7490_v34 = vld [vmem:[#allocation109_spill] sm:$0xff] }
 0x321   : > { %v1735_v17 = vadd.f32 %v1689_v26, %v1411_v38  ;;  %v1897_v13 = vadd.f32 %v1851_v56, %v7487_v18  ;;  %v2025_v16 = vpop.f32.mrf.mxu0  ;;  %v7491_v38 = vld [vmem:[#allocation165_spill] sm:$0xff] }
 0x322   : > { %v1412_v26 = vadd.f32 %v7491_v38, %v7490_v34  ;;  %v3387_v34 = vld [vmem:[#allocation7 + $0x440] sm:$0xff] }
 0x323   : > { %v6203_v61 = vadd.f32 %v2022_v47, %v1735_v17  ;;  %v6205_v12 = vadd.f32 %v2184_v41, %v1897_v13  ;;  %v3225_v38 = vld [vmem:[#allocation5 + $0x440] sm:$0xff]  ;;  %3402 = vmatpush.msra.mxu1 %v3387_v34 }
 0x324   : > { %4186 = vmatmul.msk.f32.gmra.mxu0 %vm4766_vm2, %v5144_v48  ;;  %v7497_v34 = vld [vmem:[#allocation123_spill] sm:$0xff] }
 0x325   : > { %7488 = vst [vmem:[#allocation102_spill] sm:$0xff] %v6205_v12  ;;  %2307 = vmatmul.f32.gmra.mxu2 %v7489_v62  ;;  %2469 = vmatmul.f32.gmra.mxu3 %v7489_v62  ;;  %v2187_v8 = vpop.f32.mrf.mxu1 }
 0x326   : > { %3240 = vmatpush.msra.mxu0 %v3225_v38  ;;  %v3062_v38 = vld [vmem:[#allocation7 + $0x3b8] sm:$0xff] }
 0x327   : > { %3079 = vmatpush.msra.mxu3 %v3062_v38  ;;  %v7501_v38 = vld [vmem:[#allocation127_spill] sm:$0xff] }
 0x328   : > { %v1692_v47 = vpop.f32.mrf.mxu2  ;;  %v1854_v56 = vpop.f32.mrf.mxu3  ;;  %4216 = vmatmul.msk.f32.gmra.mxu1 %vm4766_vm2, %v5144_v48  ;;  %v7494_v48 = vld [vmem:[#allocation113_spill] sm:$0xff] }
 0x329   : > { %v1736_v41 = vadd.f32 %v1692_v47, %v1412_v26  ;;  %v1898_v17 = vadd.f32 %v1854_v56, %v5781_v59  ;;  %v2028_v18 = vpop.f32.mrf.mxu0  ;;  %v1413_v26 = vadd.f32 %v5779_v2, %v7494_v48  ;;  %v2900_v48 = vld [vmem:[#allocation5 + $0x3b8] sm:$0xff] }
 0x32a   : > { %2917 = vmatpush.msra.mxu2 %v2900_v48 }
 0x32b   : > { %v6218_v13 = vadd.f32 %v2025_v16, %v1736_v41  ;;  %v6220_v12 = vadd.f32 %v2187_v8, %v1898_v17  ;;  %v7495_v8 = vld [vmem:[#allocation168_spill] sm:$0xff] }
 0x32c   : > { %2634 = vmatmul.f32.gmra.mxu0 %v5159_v54 }
 0x32d   : > { %7492 = vst [vmem:[#allocation104_spill] sm:$0xff] %v6220_v12  ;;  %2310 = vmatmul.f32.gmra.mxu2 %v7493_v27  ;;  %2472 = vmatmul.f32.gmra.mxu3 %v7493_v27  ;;  %v2190_v28 = vpop.f32.mrf.mxu1 }
 0x330   : > { %v1695_v59 = vpop.f32.mrf.mxu2  ;;  %v1857_v47 = vpop.f32.mrf.mxu3  ;;  %2796 = vmatmul.f32.gmra.mxu1 %v5159_v54  ;;  %v7498_v54 = vld [vmem:[#allocation117_spill] sm:$0xff] }
 0x331   : > { %v1737_v16 = vadd.f32 %v1695_v59, %v1413_v26  ;;  %v1899_v56 = vadd.f32 %v1857_v47, %v7495_v8  ;;  %v2031_v41 = vpop.f32.mrf.mxu0  ;;  %v7499_v26 = vld [vmem:[#allocation167_spill] sm:$0xff] }
 0x332   : > { %v1414_v59 = vadd.f32 %v7499_v26, %v7498_v54  ;;  %v3386_v54 = vld [vmem:[#allocation7 + $0x438] sm:$0xff] }
 0x333   : > { %v6229_v17 = vadd.f32 %v2028_v18, %v1737_v16  ;;  %v6231_v12 = vadd.f32 %v2190_v28, %v1899_v56  ;;  %v3224_v26 = vld [vmem:[#allocation5 + $0x438] sm:$0xff]  ;;  %3403 = vmatpush.msra.mxu1 %v3386_v54 }
 0x334   : > { %4188 = vmatmul.msk.f32.gmra.mxu0 %vm4766_vm2, %v4747_v24  ;;  %v7506_v54 = vld [vmem:[#allocation130_spill] sm:$0xff] }
 0x335   : > { %7496 = vst [vmem:[#allocation44_spill] sm:$0xff] %v6231_v12  ;;  %2313 = vmatmul.f32.gmra.mxu2 %v7497_v34  ;;  %2475 = vmatmul.f32.gmra.mxu3 %v7497_v34  ;;  %v2193_v2 = vpop.f32.mrf.mxu1 }
 0x336   : > { %3241 = vmatpush.msra.mxu0 %v3224_v26  ;;  %v3061_v26 = vld [vmem:[#allocation7 + $0x3b0] sm:$0xff] }
 0x337   : > { %3080 = vmatpush.msra.mxu3 %v3061_v26  ;;  %v7512_v26 = vld [vmem:[#allocation131_spill] sm:$0xff] }
 0x338   : > { %v1698_v18 = vpop.f32.mrf.mxu2  ;;  %v1860_v47 = vpop.f32.mrf.mxu3  ;;  %4218 = vmatmul.msk.f32.gmra.mxu1 %vm4766_vm2, %v4747_v24  ;;  %v7502_v24 = vld [vmem:[#allocation121_spill] sm:$0xff] }
 0x339   : > { %v1738_v28 = vadd.f32 %v1698_v18, %v1414_v59  ;;  %v1900_v16 = vadd.f32 %v1860_v47, %v5801_v0  ;;  %v2034_v8 = vpop.f32.mrf.mxu0  ;;  %v1415_v59 = vadd.f32 %v5799_v46, %v7502_v24  ;;  %v2899_v24 = vld [vmem:[#allocation5 + $0x3b0] sm:$0xff] }
 0x33a   : > { %2918 = vmatpush.msra.mxu2 %v2899_v24 }
 0x33b   : > { %v6244_v56 = vadd.f32 %v2031_v41, %v1738_v28  ;;  %v6246_v12 = vadd.f32 %v2193_v2, %v1900_v16  ;;  %v7503_v2 = vld [vmem:[#allocation170_spill] sm:$0xff] }
 0x33c   : > { %2640 = vmatmul.f32.gmra.mxu0 %v4751_v30 }
 0x33d   : > { %7500 = vst [vmem:[#allocation147_spill] sm:$0xff] %v6246_v12  ;;  %2316 = vmatmul.f32.gmra.mxu2 %v7501_v38  ;;  %2478 = vmatmul.f32.gmra.mxu3 %v7501_v38  ;;  %v2196_v48 = vpop.f32.mrf.mxu1 }
 0x340   : > { %v1701_v0 = vpop.f32.mrf.mxu2  ;;  %v1863_v18 = vpop.f32.mrf.mxu3  ;;  %2802 = vmatmul.f32.gmra.mxu1 %v4751_v30  ;;  %v7507_v30 = vld [vmem:[#allocation125_spill] sm:$0xff] }
 0x341   : > { %v1739_v41 = vadd.f32 %v1701_v0, %v1415_v59  ;;  %v1901_v47 = vadd.f32 %v1863_v18, %v7503_v2  ;;  %v2037_v28 = vpop.f32.mrf.mxu0  ;;  %v7508_v59 = vld [vmem:[#allocation169_spill] sm:$0xff] }
 0x342   : > { %v1416_v0 = vadd.f32 %v7508_v59, %v7507_v30  ;;  %v3385_v30 = vld [vmem:[#allocation7 + $0x430] sm:$0xff] }
 0x343   : > { %v6255_v16 = vadd.f32 %v2034_v8, %v1739_v41  ;;  %v6257_v12 = vadd.f32 %v2196_v48, %v1901_v47  ;;  %v7509_v41 = vld [vmem:[#allocation172_spill] sm:$0xff]  ;;  %v3223_v59 = vld [vmem:[#allocation5 + $0x430] sm:$0xff]  ;;  %3404 = vmatpush.msra.mxu1 %v3385_v30 }
 0x344   : > { %4190 = vmatmul.msk.f32.gmra.mxu0 %vm4766_vm2, %v7265_v10  ;;  %v7516_v30 = vld [vmem:[#allocation133_spill] sm:$0xff] }
 0x345   : > { %7504 = vst [vmem:[#allocation106_spill] sm:$0xff] %v6255_v16  ;;  %2319 = vmatmul.f32.gmra.mxu2 %v7506_v54  ;;  %2481 = vmatmul.f32.gmra.mxu3 %v7506_v54  ;;  %v2199_v46 = vpop.f32.mrf.mxu1 }
 0x346   : > { %7505 = vst [vmem:[#allocation108_spill] sm:$0xff] %v6257_v12  ;;  %3242 = vmatpush.msra.mxu0 %v3223_v59 }
 0x348   : > { %v1704_v8 = vpop.f32.mrf.mxu2  ;;  %v1866_v18 = vpop.f32.mrf.mxu3  ;;  %4220 = vmatmul.msk.f32.gmra.mxu1 %vm4766_vm2, %v7265_v10  ;;  %v7513_v10 = vld [vmem:[#allocation129_spill] sm:$0xff] }
 0x349   : > { %v1740_v48 = vadd.f32 %v1704_v8, %v1416_v0  ;;  %v1902_v2 = vadd.f32 %v1866_v18, %v7509_v41  ;;  %v2040_v47 = vpop.f32.mrf.mxu0  ;;  %v7514_v0 = vld [vmem:[#allocation171_spill] sm:$0xff] }
 0x34a   : > { %v1417_v8 = vadd.f32 %v7514_v0, %v7513_v10  ;;  %v3060_v10 = vld [vmem:[#allocation7 + $0x3a8] sm:$0xff] }
 0x34b   : > { %v6270_v12 = vadd.f32 %v2037_v28, %v1740_v48  ;;  %v6272_v16 = vadd.f32 %v2199_v46, %v1902_v2  ;;  %v7515_v46 = vld [vmem:[#allocation173_spill] sm:$0xff]  ;;  %v2898_v0 = vld [vmem:[#allocation5 + $0x3a8] sm:$0xff]  ;;  %3081 = vmatpush.msra.mxu3 %v3060_v10 }
 0x34c   : > { %2646 = vmatmul.f32.gmra.mxu0 %v4807_v4  ;;  %2919 = vmatpush.msra.mxu2 %v2898_v0  ;;  %v3384_v10 = vld [vmem:[#allocation7 + $0x428] sm:$0xff] }
 0x34d   : > { %7510 = vst [vmem:[#allocation53_spill] sm:$0xff] %v6270_v12  ;;  %2322 = vmatmul.f32.gmra.mxu2 %v7512_v26  ;;  %2484 = vmatmul.f32.gmra.mxu3 %v7512_v26  ;;  %v2202_v24 = vpop.f32.mrf.mxu1  ;;  %v3222_v0 = vld [vmem:[#allocation5 + $0x428] sm:$0xff] }
 0x34e   : > { %7511 = vst [vmem:[#allocation49_spill] sm:$0xff] %v6272_v16  ;;  %3405 = vmatpush.msra.mxu1 %v3384_v10  ;;  %3243 = vmatpush.msra.mxu0 %v3222_v0  ;;  %v3059_v0 = vld [vmem:[#allocation7 + $0x3a0] sm:$0xff] }
 0x34f   : > { %3082 = vmatpush.msra.mxu3 %v3059_v0 }
 0x350   : > { %v1707_v18 = vpop.f32.mrf.mxu2  ;;  %v1869_v41 = vpop.f32.mrf.mxu3  ;;  %2808 = vmatmul.f32.gmra.mxu1 %v4807_v4 }
 0x351   : > { %v1741_v28 = vadd.f32 %v1707_v18, %v1417_v8  ;;  %v1903_v48 = vadd.f32 %v1869_v41, %v7515_v46  ;;  %v2602_v2 = vpop.f32.mrf.mxu0  ;;  %v7519_v46 = vld [vmem:[#allocation21_spill] sm:$0xff] }
 0x353   : > { %v6281_v16 = vadd.f32 %v2040_v47, %v1741_v28  ;;  %v6283_v12 = vadd.f32 %v2202_v24, %v1903_v48 }
 0x354   : > { %4192 = vmatmul.msk.f32.gmra.mxu0 %vm4766_vm2, %v7277_v50 }
 0x355   : > { %2325 = vmatmul.f32.gmra.mxu2 %v7516_v30  ;;  %2487 = vmatmul.f32.gmra.mxu3 %v7516_v30  ;;  %v2764_v59 = vpop.f32.mrf.mxu1 }
 0x358   : > { %v2278_v4 = vpop.f32.mrf.mxu2  ;;  %v2440_v8 = vpop.f32.mrf.mxu3  ;;  %4222 = vmatmul.msk.f32.gmra.mxu1 %vm4766_vm2, %v7277_v50 }
 0x359   : > { %v2374_v47 = vadd.f32 %v2278_v4, %v5841_v42  ;;  %v2536_v24 = vadd.f32 %v2440_v8, %v5843_v22  ;;  %v2605_v18 = vpop.f32.mrf.mxu0 }
 0x35b   : > { %v6295_v41 = vadd.f32 %v2602_v2, %v2374_v47  ;;  %v6297_v28 = vadd.f32 %v2764_v59, %v2536_v24  ;;  %v7520_v2 = vld [vmem:[#allocation71_spill] sm:$0xff]  ;;  %v7523_v24 = vld [vmem:[#allocation29_spill] sm:$0xff] }
 0x35c   : > { %2652 = vmatmul.f32.gmra.mxu0 %v7368_v6 }
 0x35d   : > { %7517 = vst [vmem:[#allocation149_spill] sm:$0xff] %v6295_v41  ;;  %2328 = vmatmul.f32.gmra.mxu2 %v7519_v46  ;;  %2490 = vmatmul.f32.gmra.mxu3 %v7519_v46  ;;  %v2767_v48 = vpop.f32.mrf.mxu1  ;;  %v7530_v41 = vld [vmem:[#allocation28_spill] sm:$0xff] }
 0x35e   : > { %7518 = vst [vmem:[#allocation110_spill] sm:$0xff] %v6297_v28  ;;  %v7524_v28 = vld [vmem:[#allocation135_spill] sm:$0xff] }
 0x360   : > { %v2281_v50 = vpop.f32.mrf.mxu2  ;;  %v2443_v42 = vpop.f32.mrf.mxu3  ;;  %2814 = vmatmul.f32.gmra.mxu1 %v7368_v6  ;;  %v2897_v6 = vld [vmem:[#allocation5 + $0x3a0] sm:$0xff] }
 0x361   : > { %v2375_v22 = vadd.f32 %v2281_v50, %v5853_v51  ;;  %v2537_v59 = vadd.f32 %v2443_v42, %v7520_v2  ;;  %v2608_v4 = vpop.f32.mrf.mxu0  ;;  %2920 = vmatpush.msra.mxu2 %v2897_v6  ;;  %v7526_v42 = vld [vmem:[#allocation75_spill] sm:$0xff] }
 0x362   : > { %v3383_v6 = vld [vmem:[#allocation7 + $0x420] sm:$0xff] }
 0x363   : > { %v6305_v8 = vadd.f32 %v2605_v18, %v2375_v22  ;;  %v6307_v47 = vadd.f32 %v2767_v48, %v2537_v59  ;;  %v7525_v18 = vld [vmem:[#allocation72_spill] sm:$0xff]  ;;  %3406 = vmatpush.msra.mxu1 %v3383_v6  ;;  %v3058_v6 = vld [vmem:[#allocation7 + $0x398] sm:$0xff] }
 0x364   : > { %4194 = vmatmul.msk.f32.gmra.mxu0 %vm4766_vm2, %v7523_v24  ;;  %3083 = vmatpush.msra.mxu3 %v3058_v6 }
 0x365   : > { %7521 = vst [vmem:[#allocation112_spill] sm:$0xff] %v6305_v8  ;;  %2331 = vmatmul.f32.gmra.mxu2 %v7524_v28  ;;  %2493 = vmatmul.f32.gmra.mxu3 %v7524_v28  ;;  %v2770_v10 = vpop.f32.mrf.mxu1  ;;  %v7529_v8 = vld [vmem:[#allocation32_spill] sm:$0xff]  ;;  %v3221_v28 = vld [vmem:[#allocation5 + $0x420] sm:$0xff] }
 0x366   : > { %7522 = vst [vmem:[#allocation52_spill] sm:$0xff] %v6307_v47  ;;  %3244 = vmatpush.msra.mxu0 %v3221_v28 }
 0x368   : > { %v2284_v51 = vpop.f32.mrf.mxu2  ;;  %v2446_v50 = vpop.f32.mrf.mxu3  ;;  %4224 = vmatmul.msk.f32.gmra.mxu1 %vm4766_vm2, %v7523_v24 }
 0x369   : > { %v2376_v48 = vadd.f32 %v2284_v51, %v7525_v18  ;;  %v2538_v22 = vadd.f32 %v2446_v50, %v7526_v42  ;;  %v2611_v2 = vpop.f32.mrf.mxu0  ;;  %v7531_v50 = vld [vmem:[#allocation132_spill] sm:$0xff]  ;;  %v7532_v18 = vld [vmem:[#allocation134_spill] sm:$0xff] }
 0x36b   : > { %v6319_v59 = vadd.f32 %v2608_v4, %v2376_v48  ;;  %v6321_v47 = vadd.f32 %v2770_v10, %v2538_v22 }
 0x36c   : > { %2658 = vmatmul.f32.gmra.mxu0 %v7529_v8 }
 0x36d   : > { %7527 = vst [vmem:[#allocation151_spill] sm:$0xff] %v6319_v59  ;;  %2334 = vmatmul.f32.gmra.mxu2 %v7530_v41  ;;  %2496 = vmatmul.f32.gmra.mxu3 %v7530_v41  ;;  %v2773_v0 = vpop.f32.mrf.mxu1  ;;  %v7536_v59 = vld [vmem:[#allocation138_spill] sm:$0xff] }
 0x36e   : > { %7528 = vst [vmem:[#allocation114_spill] sm:$0xff] %v6321_v47  ;;  %v7535_v47 = vld [vmem:[#allocation37_spill] sm:$0xff]  ;;  %v3220_v41 = vld [vmem:[#allocation5 + $0x418] sm:$0xff] }
 0x36f   : > { %3245 = vmatpush.msra.mxu0 %v3220_v41 }
 0x370   : > { %v2287_v24 = vpop.f32.mrf.mxu2  ;;  %v2449_v51 = vpop.f32.mrf.mxu3  ;;  %2820 = vmatmul.f32.gmra.mxu1 %v7529_v8  ;;  %v2896_v8 = vld [vmem:[#allocation5 + $0x398] sm:$0xff] }
 0x371   : > { %v2377_v4 = vadd.f32 %v2287_v24, %v7531_v50  ;;  %v2539_v10 = vadd.f32 %v2449_v51, %v7532_v18  ;;  %v2614_v48 = vpop.f32.mrf.mxu0  ;;  %2921 = vmatpush.msra.mxu2 %v2896_v8  ;;  %v7538_v50 = vld [vmem:[#allocation80_spill] sm:$0xff]  ;;  %v3382_v8 = vld [vmem:[#allocation7 + $0x418] sm:$0xff] }
 0x372   : > { %3407 = vmatpush.msra.mxu1 %v3382_v8  ;;  %v3057_v8 = vld [vmem:[#allocation7 + $0x390] sm:$0xff] }
 0x373   : > { %v6329_v42 = vadd.f32 %v2611_v2, %v2377_v4  ;;  %v6331_v22 = vadd.f32 %v2773_v0, %v2539_v10  ;;  %v7537_v2 = vld [vmem:[#allocation78_spill] sm:$0xff]  ;;  %3084 = vmatpush.msra.mxu3 %v3057_v8 }
 0x374   : > { %4196 = vmatmul.msk.f32.gmra.mxu0 %vm4766_vm2, %v7535_v47 }
 0x375   : > { %7533 = vst [vmem:[#allocation116_spill] sm:$0xff] %v6329_v42  ;;  %2337 = vmatmul.f32.gmra.mxu2 %v7536_v59  ;;  %2499 = vmatmul.f32.gmra.mxu3 %v7536_v59  ;;  %v2776_v28 = vpop.f32.mrf.mxu1  ;;  %v7541_v42 = vld [vmem:[#allocation40_spill] sm:$0xff] }
 0x376   : > { %7534 = vst [vmem:[#allocation57_spill] sm:$0xff] %v6331_v22  ;;  %v7542_v59 = vld [vmem:[#allocation140_spill] sm:$0xff] }
 0x378   : > { %v2290_v24 = vpop.f32.mrf.mxu2  ;;  %v2452_v51 = vpop.f32.mrf.mxu3  ;;  %4226 = vmatmul.msk.f32.gmra.mxu1 %vm4766_vm2, %v7535_v47 }
 0x379   : > { %v2378_v0 = vadd.f32 %v2290_v24, %v7537_v2  ;;  %v2540_v4 = vadd.f32 %v2452_v51, %v7538_v50  ;;  %v2617_v18 = vpop.f32.mrf.mxu0  ;;  %v7543_v51 = vld [vmem:[#allocation24_spill] sm:$0xff]  ;;  %v7544_v2 = vld [vmem:[#allocation18_spill] sm:$0xff] }
 0x37b   : > { %v6343_v10 = vadd.f32 %v2614_v48, %v2378_v0  ;;  %v6345_v22 = vadd.f32 %v2776_v28, %v2540_v4 }
 0x37c   : > { %2664 = vmatmul.f32.gmra.mxu0 %v7541_v42 }
 0x37d   : > { %7539 = vst [vmem:[#allocation153_spill] sm:$0xff] %v6343_v10  ;;  %2340 = vmatmul.f32.gmra.mxu2 %v7542_v59  ;;  %2502 = vmatmul.f32.gmra.mxu3 %v7542_v59  ;;  %v2779_v6 = vpop.f32.mrf.mxu1  ;;  %v7553_v10 = vld [vmem:[#allocation144_spill] sm:$0xff] }
 0x37e   : > { %7540 = vst [vmem:[#allocation118_spill] sm:$0xff] %v6345_v22  ;;  %v7547_v22 = vld [vmem:[#allocation142_spill] sm:$0xff] }
 0x380   : > { %v2293_v47 = vpop.f32.mrf.mxu2  ;;  %v2455_v24 = vpop.f32.mrf.mxu3  ;;  %2826 = vmatmul.f32.gmra.mxu1 %v7541_v42  ;;  %v2895_v42 = vld [vmem:[#allocation5 + $0x390] sm:$0xff] }
 0x381   : > { %v2379_v48 = vadd.f32 %v2293_v47, %v7543_v51  ;;  %v2541_v28 = vadd.f32 %v2455_v24, %v7544_v2  ;;  %v2620_v0 = vpop.f32.mrf.mxu0  ;;  %2922 = vmatpush.msra.mxu2 %v2895_v42  ;;  %v7549_v51 = vld [vmem:[#allocation82_spill] sm:$0xff]  ;;  %v3381_v42 = vld [vmem:[#allocation7 + $0x410] sm:$0xff] }
 0x382   : > { %3408 = vmatpush.msra.mxu1 %v3381_v42  ;;  %v3056_v42 = vld [vmem:[#allocation7 + $0x388] sm:$0xff] }
 0x383   : > { %v6353_v50 = vadd.f32 %v2617_v18, %v2379_v48  ;;  %v6355_v4 = vadd.f32 %v2779_v6, %v2541_v28  ;;  %v7548_v18 = vld [vmem:[#allocation136_spill] sm:$0xff]  ;;  %3085 = vmatpush.msra.mxu3 %v3056_v42 }
 0x384   : > { %4198 = vmatmul.msk.f32.gmra.mxu0 %vm4766_vm2, %v7408_v32 }
 0x385   : > { %7545 = vst [vmem:[#allocation120_spill] sm:$0xff] %v6353_v50  ;;  %2343 = vmatmul.f32.gmra.mxu2 %v7547_v22  ;;  %2505 = vmatmul.f32.gmra.mxu3 %v7547_v22  ;;  %v2782_v41 = vpop.f32.mrf.mxu1  ;;  %v7552_v50 = vld [vmem:[#allocation48_spill] sm:$0xff]  ;;  %v3219_v22 = vld [vmem:[#allocation5 + $0x410] sm:$0xff] }
 0x386   : > { %7546 = vst [vmem:[#allocation60_spill] sm:$0xff] %v6355_v4  ;;  %3246 = vmatpush.msra.mxu0 %v3219_v22 }
 0x388   : > { %v2296_v47 = vpop.f32.mrf.mxu2  ;;  %v2458_v24 = vpop.f32.mrf.mxu3  ;;  %4228 = vmatmul.msk.f32.gmra.mxu1 %vm4766_vm2, %v7408_v32 }
 0x389   : > { %v2380_v6 = vadd.f32 %v2296_v47, %v7548_v18  ;;  %v2542_v48 = vadd.f32 %v2458_v24, %v7549_v51  ;;  %v2623_v2 = vpop.f32.mrf.mxu0  ;;  %v7554_v24 = vld [vmem:[#allocation84_spill] sm:$0xff]  ;;  %v7555_v18 = vld [vmem:[#allocation25_spill] sm:$0xff] }
 0x38b   : > { %v6367_v28 = vadd.f32 %v2620_v0, %v2380_v6  ;;  %v6369_v4 = vadd.f32 %v2782_v41, %v2542_v48 }
 0x38c   : > { %2670 = vmatmul.f32.gmra.mxu0 %v7552_v50 }
 0x38d   : > { %7550 = vst [vmem:[#allocation156_spill] sm:$0xff] %v6367_v28  ;;  %2346 = vmatmul.f32.gmra.mxu2 %v7553_v10  ;;  %2508 = vmatmul.f32.gmra.mxu3 %v7553_v10  ;;  %v2785_v8 = vpop.f32.mrf.mxu1  ;;  %v7564_v28 = vld [vmem:[#allocation148_spill] sm:$0xff] }
 0x38e   : > { %7551 = vst [vmem:[#allocation122_spill] sm:$0xff] %v6369_v4  ;;  %v7558_v4 = vld [vmem:[#allocation146_spill] sm:$0xff] }
 0x390   : > { %v2299_v32 = vpop.f32.mrf.mxu2  ;;  %v2461_v47 = vpop.f32.mrf.mxu3  ;;  %2832 = vmatmul.f32.gmra.mxu1 %v7552_v50  ;;  %v2894_v50 = vld [vmem:[#allocation5 + $0x388] sm:$0xff] }
 0x391   : > { %v2381_v0 = vadd.f32 %v2299_v32, %v7554_v24  ;;  %v2543_v41 = vadd.f32 %v2461_v47, %v7555_v18  ;;  %v2626_v6 = vpop.f32.mrf.mxu0  ;;  %2923 = vmatpush.msra.mxu2 %v2894_v50  ;;  %v7560_v24 = vld [vmem:[#allocation86_spill] sm:$0xff]  ;;  %v3380_v50 = vld [vmem:[#allocation7 + $0x408] sm:$0xff] }
 0x392   : > { %3409 = vmatpush.msra.mxu1 %v3380_v50  ;;  %v3055_v50 = vld [vmem:[#allocation7 + $0x380] sm:$0xff] }
 0x393   : > { %v6377_v51 = vadd.f32 %v2623_v2, %v2381_v0  ;;  %v6379_v48 = vadd.f32 %v2785_v8, %v2543_v41  ;;  %v7559_v2 = vld [vmem:[#allocation137_spill] sm:$0xff]  ;;  %3086 = vmatpush.msra.mxu3 %v3055_v50 }
 0x394   : > { %4200 = vmatmul.msk.f32.gmra.mxu0 %vm4766_vm2, %v7423_v5 }
 0x395   : > { %7556 = vst [vmem:[#allocation124_spill] sm:$0xff] %v6377_v51  ;;  %2349 = vmatmul.f32.gmra.mxu2 %v7558_v4  ;;  %2511 = vmatmul.f32.gmra.mxu3 %v7558_v4  ;;  %v2788_v22 = vpop.f32.mrf.mxu1  ;;  %v7563_v51 = vld [vmem:[#allocation56_spill] sm:$0xff] }
 0x396   : > { %7557 = vst [vmem:[#allocation154_spill] sm:$0xff] %v6379_v48  ;;  %v3218_v4 = vld [vmem:[#allocation5 + $0x408] sm:$0xff] }
 0x397   : > { %3247 = vmatpush.msra.mxu0 %v3218_v4 }
 0x398   : > { %v2302_v32 = vpop.f32.mrf.mxu2  ;;  %v2464_v47 = vpop.f32.mrf.mxu3  ;;  %4230 = vmatmul.msk.f32.gmra.mxu1 %vm4766_vm2, %v7423_v5 }
 0x399   : > { %v2382_v8 = vadd.f32 %v2302_v32, %v7559_v2  ;;  %v2544_v0 = vadd.f32 %v2464_v47, %v7560_v24  ;;  %v2629_v18 = vpop.f32.mrf.mxu0  ;;  %v7565_v47 = vld [vmem:[#allocation88_spill] sm:$0xff]  ;;  %v7566_v2 = vld [vmem:[#allocation22_spill] sm:$0xff] }
 0x39b   : > { %v6391_v41 = vadd.f32 %v2626_v6, %v2382_v8  ;;  %v6393_v48 = vadd.f32 %v2788_v22, %v2544_v0 }
 0x39c   : > { %2676 = vmatmul.f32.gmra.mxu0 %v7563_v51 }
 0x39d   : > { %7561 = vst [vmem:[#allocation126_spill] sm:$0xff] %v6391_v41  ;;  %2352 = vmatmul.f32.gmra.mxu2 %v7564_v28  ;;  %2514 = vmatmul.f32.gmra.mxu3 %v7564_v28  ;;  %v2791_v42 = vpop.f32.mrf.mxu1  ;;  %v7570_v41 = vld [vmem:[#allocation150_spill] sm:$0xff]  ;;  %v3217_v28 = vld [vmem:[#allocation5 + $0x400] sm:$0xff] }
 0x39e   : > { %7562 = vst [vmem:[#allocation128_spill] sm:$0xff] %v6393_v48  ;;  %v7569_v48 = vld [vmem:[#allocation61_spill] sm:$0xff]  ;;  %3248 = vmatpush.msra.mxu0 %v3217_v28 }
 0x3a0   : > { %v2305_v5 = vpop.f32.mrf.mxu2  ;;  %v2467_v32 = vpop.f32.mrf.mxu3  ;;  %2838 = vmatmul.f32.gmra.mxu1 %v7563_v51  ;;  %v2893_v51 = vld [vmem:[#allocation5 + $0x380] sm:$0xff] }
 0x3a1   : > { %v2383_v6 = vadd.f32 %v2305_v5, %v7565_v47  ;;  %v2545_v22 = vadd.f32 %v2467_v32, %v7566_v2  ;;  %v2632_v8 = vpop.f32.mrf.mxu0  ;;  %2924 = vmatpush.msra.mxu2 %v2893_v51  ;;  %v7572_v47 = vld [vmem:[#allocation90_spill] sm:$0xff]  ;;  %v3379_v51 = vld [vmem:[#allocation7 + $0x400] sm:$0xff] }
 0x3a2   : > { %3410 = vmatpush.msra.mxu1 %v3379_v51 }
 0x3a3   : > { %v6401_v24 = vadd.f32 %v2629_v18, %v2383_v6  ;;  %v6403_v0 = vadd.f32 %v2791_v42, %v2545_v22  ;;  %v7571_v18 = vld [vmem:[#allocation139_spill] sm:$0xff] }
 0x3a4   : > { %4202 = vmatmul.msk.f32.gmra.mxu0 %vm4766_vm2, %v7569_v48 }
 0x3a5   : > { %7567 = vst [vmem:[#allocation76_spill] sm:$0xff] %v6401_v24  ;;  %2355 = vmatmul.f32.gmra.mxu2 %v7570_v41  ;;  %2517 = vmatmul.f32.gmra.mxu3 %v7570_v41  ;;  %v2794_v4 = vpop.f32.mrf.mxu1  ;;  %v7575_v24 = vld [vmem:[#allocation64_spill] sm:$0xff] }
 0x3a6   : > { %7568 = vst [vmem:[#allocation73_spill] sm:$0xff] %v6403_v0  ;;  %v7576_v41 = vld [vmem:[#allocation152_spill] sm:$0xff] }
 0x3a8   : > { %v2308_v5 = vpop.f32.mrf.mxu2  ;;  %v2470_v32 = vpop.f32.mrf.mxu3  ;;  %4232 = vmatmul.msk.f32.gmra.mxu1 %vm4766_vm2, %v7569_v48 }
 0x3a9   : > { %v2384_v42 = vadd.f32 %v2308_v5, %v7571_v18  ;;  %v2546_v6 = vadd.f32 %v2470_v32, %v7572_v47  ;;  %v2635_v2 = vpop.f32.mrf.mxu0  ;;  %v7577_v32 = vld [vmem:[#allocation92_spill] sm:$0xff]  ;;  %v7578_v18 = vld [vmem:[#allocation33_spill] sm:$0xff] }
 0x3ab   : > { %v6415_v22 = vadd.f32 %v2632_v8, %v2384_v42  ;;  %v6417_v0 = vadd.f32 %v2794_v4, %v2546_v6 }
 0x3ac   : > { %2682 = vmatmul.f32.gmra.mxu0 %v7575_v24 }
 0x3ad   : > { %7573 = vst [vmem:[#allocation157_spill] sm:$0xff] %v6415_v22  ;;  %2358 = vmatmul.f32.gmra.mxu2 %v7576_v41  ;;  %2520 = vmatmul.f32.gmra.mxu3 %v7576_v41  ;;  %v2797_v50 = vpop.f32.mrf.mxu1 }
 0x3ae   : > { %7574 = vst [vmem:[#allocation79_spill] sm:$0xff] %v6417_v0  ;;  %v7581_v0 = vld [vmem:[#allocation155_spill] sm:$0xff] }
 0x3b0   : > { %v2311_v48 = vpop.f32.mrf.mxu2  ;;  %v2473_v5 = vpop.f32.mrf.mxu3  ;;  %2844 = vmatmul.f32.gmra.mxu1 %v7575_v24 }
 0x3b1   : > { %v2385_v8 = vadd.f32 %v2311_v48, %v7577_v32  ;;  %v2547_v4 = vadd.f32 %v2473_v5, %v7578_v18  ;;  %v2638_v42 = vpop.f32.mrf.mxu0  ;;  %v7582_v48 = vld [vmem:[#allocation94_spill] sm:$0xff]  ;;  %v7583_v5 = vld [vmem:[#allocation96_spill] sm:$0xff] }
 0x3b3   : > { %v6425_v47 = vadd.f32 %v2635_v2, %v2385_v8  ;;  %v6427_v6 = vadd.f32 %v2797_v50, %v2547_v4  ;;  %v7585_v4 = vld [vmem:[#allocation67_spill] sm:$0xff] }
 0x3b4   : > { %4204 = vmatmul.msk.f32.gmra.mxu0 %vm4766_vm2, %v6010_v40 }
 0x3b5   : > { %7579 = vst [vmem:[#allocation74_spill] sm:$0xff] %v6425_v47  ;;  %2361 = vmatmul.f32.gmra.mxu2 %v7581_v0  ;;  %2523 = vmatmul.f32.gmra.mxu3 %v7581_v0  ;;  %v2800_v28 = vpop.f32.mrf.mxu1  ;;  %v7586_v47 = vld [vmem:[#allocation141_spill] sm:$0xff] }
 0x3b6   : > { %7580 = vst [vmem:[#allocation83_spill] sm:$0xff] %v6427_v6  ;;  %v2237_v22 = vrot.slane %v7586_v47, 2 }
 0x3b8   : > { %v2314_v51 = vpop.f32.mrf.mxu2  ;;  %v2476_v24 = vpop.f32.mrf.mxu3  ;;  %4234 = vmatmul.msk.f32.gmra.mxu1 %vm4766_vm2, %v6010_v40 }
 0x3b9   : > { %v2386_v2 = vadd.f32 %v2314_v51, %v7582_v48  ;;  %v2548_v50 = vadd.f32 %v2476_v24, %v7583_v5  ;;  %v2641_v32 = vpop.f32.mrf.mxu0  ;;  %v6452_v48 = vsel %vm1147_vm3, %v2237_v22, %v2238_v43 }
 0x3bb   : > { %v6439_v8 = vadd.f32 %v2638_v42, %v2386_v2  ;;  %v6441_v18 = vadd.f32 %v2800_v28, %v2548_v50  ;;  %v7588_v50 = vmov 0.0  }
 0x3bc   : > { %2688 = vmatmul.f32.gmra.mxu0 %v6015_v63 }
 0x3bd   : > { %7584 = vst [vmem:[#allocation77_spill] sm:$0xff] %v6441_v18  ;;  %2364 = vmatmul.f32.gmra.mxu2 %v7585_v4  ;;  %2526 = vmatmul.f32.gmra.mxu3 %v7585_v4  ;;  %v2803_v6 = vpop.f32.mrf.mxu1 }
 0x3c0   : > { %v2317_v40 = vpop.f32.mrf.mxu2  ;;  %v2479_v51 = vpop.f32.mrf.mxu3  ;;  %2850 = vmatmul.f32.gmra.mxu1 %v6015_v63  ;;  %v7589_v63 = vld [vmem:[#allocation143_spill] sm:$0xff] }
 0x3c1   : > { %v2387_v42 = vadd.f32 %v2317_v40, %v6041_v58  ;;  %v2549_v28 = vadd.f32 %v2479_v51, %v6043_v3  ;;  %v2644_v24 = vpop.f32.mrf.mxu0  ;;  %v2240_v18 = vrot.slane %v7589_v63, 2 }
 0x3c3   : > { %v6454_v2 = vadd.f32 %v2641_v32, %v2387_v42  ;;  %v6456_v5 = vadd.f32 %v2803_v6, %v2549_v28  ;;  %v6466_v6 = vsel %vm1147_vm3, %v2238_v43, %v2240_v18 }
 0x3c4   : > { %2691 = vmatmul.f32.gmra.mxu0 %v7588_v50 }
 0x3c5   : > { %7587 = vst [vmem:[#allocation158_spill] sm:$0xff] %v6456_v5  ;;  %2367 = vmatmul.f32.gmra.mxu2 %v6452_v48  ;;  %2529 = vmatmul.f32.gmra.mxu3 %v6452_v48  ;;  %v2806_v47 = vpop.f32.mrf.mxu1 }
 0x3c8   : > { %v2320_v58 = vpop.f32.mrf.mxu2  ;;  %v2482_v40 = vpop.f32.mrf.mxu3  ;;  %2853 = vmatmul.f32.gmra.mxu1 %v7588_v50 }
 0x3c9   : > { %v2388_v3 = vadd.f32 %v2320_v58, %v6061_v19  ;;  %v2550_v22 = vadd.f32 %v2482_v40, %v6063_v31  ;;  %v2647_v32 = vpop.f32.mrf.mxu0 }
 0x3cb   : > { %v6468_v51 = vadd.f32 %v2644_v24, %v2388_v3  ;;  %v6470_v42 = vadd.f32 %v2806_v47, %v2550_v22  ;;  %v7590_v47 = vld [vmem:[#allocation26_spill] sm:$0xff] }
 0x3cc   : > { %2694 = vmatmul.f32.gmra.mxu0 %v7588_v50 }
 0x3cd   : > { %2370 = vmatmul.f32.gmra.mxu2 %v6466_v6  ;;  %2532 = vmatmul.f32.gmra.mxu3 %v6466_v6  ;;  %v2809_v28 = vpop.f32.mrf.mxu1 }
 0x3d0   : > { %v2323_v63 = vpop.f32.mrf.mxu2  ;;  %v2485_v5 = vpop.f32.mrf.mxu3  ;;  %2856 = vmatmul.f32.gmra.mxu1 %v7588_v50 }
 0x3d1   : > { %v2389_v19 = vadd.f32 %v2323_v63, %v6073_v36  ;;  %v2551_v31 = vadd.f32 %v2485_v5, %v6075_v1  ;;  %v2650_v18 = vpop.f32.mrf.mxu0 }
 0x3d3   : > { %v6478_v43 = vadd.f32 %v2647_v32, %v2389_v19  ;;  %v6480_v24 = vadd.f32 %v2809_v28, %v2551_v31  ;;  %v7591_v32 = vld [vmem:[#allocation30_spill] sm:$0xff] }
 0x3d4   : > { %3249 = vmatmul.f32.vlgmr.msra.gmra.mxu0 %v7460_v57 }
 0x3d5   : > { %2925 = vmatmul.f32.vlgmr.msra.gmra.mxu2 %v7590_v47  ;;  %3087 = vmatmul.f32.vlgmr.msra.gmra.mxu3 %v7590_v47  ;;  %v2812_v58 = vpop.f32.mrf.mxu1  ;;  %v7592_v47 = vld [vmem:[#allocation34_spill] sm:$0xff] }
 0x3d8   : > { %v2326_v40 = vpop.f32.mrf.mxu2  ;;  %v2488_v3 = vpop.f32.mrf.mxu3  ;;  %3411 = vmatmul.f32.vlgmr.msra.gmra.mxu1 %v7460_v57 }
 0x3d9   : > { %v2390_v36 = vadd.f32 %v2326_v40, %v6088_v25  ;;  %v2552_v1 = vadd.f32 %v2488_v3, %v6090_v55  ;;  %v2653_v5 = vpop.f32.mrf.mxu0 }
 0x3db   : > { %v6488_v50 = vadd.f32 %v2650_v18, %v2390_v36  ;;  %v6490_v22 = vadd.f32 %v2812_v58, %v2552_v1 }
 0x3dc   : > { %3252 = vmatmul.f32.gmra.mxu0 %v7463_v33 }
 0x3dd   : > { %2928 = vmatmul.f32.gmra.mxu2 %v7591_v32  ;;  %3090 = vmatmul.f32.gmra.mxu3 %v7591_v32  ;;  %v2815_v28 = vpop.f32.mrf.mxu1 }
 0x3e0   : > { %v2329_v63 = vpop.f32.mrf.mxu2  ;;  %v2491_v19 = vpop.f32.mrf.mxu3  ;;  %3414 = vmatmul.f32.gmra.mxu1 %v7463_v33 }
 0x3e1   : > { %v2391_v25 = vadd.f32 %v2329_v63, %v6099_v14  ;;  %v2553_v55 = vadd.f32 %v2491_v19, %v6101_v39  ;;  %v2656_v57 = vpop.f32.mrf.mxu0 }
 0x3e3   : > { %v6498_v31 = vadd.f32 %v2653_v5, %v2391_v25  ;;  %v6500_v18 = vadd.f32 %v2815_v28, %v2553_v55  ;;  %v7593_v5 = vld [vmem:[#allocation38_spill] sm:$0xff] }
 0x3e4   : > { %3255 = vmatmul.f32.gmra.mxu0 %v7466_v53  ;;  %v7594_v55 = vld [vmem:[#allocation42_spill] sm:$0xff] }
 0x3e5   : > { %2931 = vmatmul.f32.gmra.mxu2 %v7592_v47  ;;  %3093 = vmatmul.f32.gmra.mxu3 %v7592_v47  ;;  %v2818_v58 = vpop.f32.mrf.mxu1 }
 0x3e8   : > { %v2332_v40 = vpop.f32.mrf.mxu2  ;;  %v2494_v3 = vpop.f32.mrf.mxu3  ;;  %3417 = vmatmul.f32.gmra.mxu1 %v7466_v53 }
 0x3e9   : > { %v2392_v14 = vadd.f32 %v2332_v40, %v6114_v20  ;;  %v2554_v39 = vadd.f32 %v2494_v3, %v6116_v52  ;;  %v2659_v33 = vpop.f32.mrf.mxu0 }
 0x3eb   : > { %v6508_v36 = vadd.f32 %v2656_v57, %v2392_v14  ;;  %v6510_v1 = vadd.f32 %v2818_v58, %v2554_v39  ;;  %v7595_v14 = vld [vmem:[#allocation46_spill] sm:$0xff] }
 0x3ec   : > { %3258 = vmatmul.f32.gmra.mxu0 %v7469_v49 }
 0x3ed   : > { %2934 = vmatmul.f32.gmra.mxu2 %v7593_v5  ;;  %3096 = vmatmul.f32.gmra.mxu3 %v7593_v5  ;;  %v2821_v32 = vpop.f32.mrf.mxu1 }
 0x3f0   : > { %v2335_v28 = vpop.f32.mrf.mxu2  ;;  %v2497_v63 = vpop.f32.mrf.mxu3  ;;  %3420 = vmatmul.f32.gmra.mxu1 %v7469_v49 }
 0x3f1   : > { %v2393_v20 = vadd.f32 %v2335_v28, %v6125_v21  ;;  %v2555_v52 = vadd.f32 %v2497_v63, %v6127_v60  ;;  %v2662_v53 = vpop.f32.mrf.mxu0 }
 0x3f3   : > { %v6518_v19 = vadd.f32 %v2659_v33, %v2393_v20  ;;  %v6520_v25 = vadd.f32 %v2821_v32, %v2555_v52  ;;  %v7597_v20 = vld [vmem:[#allocation50_spill] sm:$0xff] }
 0x3f4   : > { %3261 = vmatmul.f32.gmra.mxu0 %v7473_v29 }
 0x3f5   : > { %2937 = vmatmul.f32.gmra.mxu2 %v7594_v55  ;;  %3099 = vmatmul.f32.gmra.mxu3 %v7594_v55  ;;  %v2824_v57 = vpop.f32.mrf.mxu1 }
 0x3f8   : > { %v2338_v47 = vpop.f32.mrf.mxu2  ;;  %v2500_v58 = vpop.f32.mrf.mxu3  ;;  %3423 = vmatmul.f32.gmra.mxu1 %v7473_v29  ;;  %v7596_v29 = vld [vmem:[#allocation100_spill] sm:$0xff] }
 0x3f9   : > { %v2394_v21 = vadd.f32 %v2338_v47, %v6140_v35  ;;  %v2556_v60 = vadd.f32 %v2500_v58, %v6142_v9  ;;  %v2665_v49 = vpop.f32.mrf.mxu0 }
 0x3fb   : > { %v6528_v40 = vadd.f32 %v2662_v53, %v2394_v21  ;;  %v6530_v3 = vadd.f32 %v2824_v57, %v2556_v60  ;;  %v7599_v60 = vld [vmem:[#allocation54_spill] sm:$0xff] }
 0x3fc   : > { %3264 = vmatmul.f32.gmra.mxu0 %v7477_v7 }
 0x3fd   : > { %2940 = vmatmul.f32.gmra.mxu2 %v7595_v14  ;;  %3102 = vmatmul.f32.gmra.mxu3 %v7595_v14  ;;  %v2827_v39 = vpop.f32.mrf.mxu1 }
 0x400   : > { %v2341_v33 = vpop.f32.mrf.mxu2  ;;  %v2503_v5 = vpop.f32.mrf.mxu3  ;;  %3426 = vmatmul.f32.gmra.mxu1 %v7477_v7  ;;  %v7598_v7 = vld [vmem:[#allocation45_spill] sm:$0xff] }
 0x401   : > { %v2395_v35 = vadd.f32 %v2341_v33, %v6151_v15  ;;  %v2557_v9 = vadd.f32 %v2503_v5, %v7596_v29  ;;  %v2668_v32 = vpop.f32.mrf.mxu0 }
 0x403   : > { %v6538_v28 = vadd.f32 %v2665_v49, %v2395_v35  ;;  %v6540_v63 = vadd.f32 %v2827_v39, %v2557_v9  ;;  %v7601_v9 = vld [vmem:[#allocation58_spill] sm:$0xff] }
 0x404   : > { %3267 = vmatmul.f32.gmra.mxu0 %v7481_v45 }
 0x405   : > { %2943 = vmatmul.f32.gmra.mxu2 %v7597_v20  ;;  %3105 = vmatmul.f32.gmra.mxu3 %v7597_v20  ;;  %v2830_v52 = vpop.f32.mrf.mxu1 }
 0x408   : > { %v2344_v53 = vpop.f32.mrf.mxu2  ;;  %v2506_v55 = vpop.f32.mrf.mxu3  ;;  %3429 = vmatmul.f32.gmra.mxu1 %v7481_v45  ;;  %v7600_v45 = vld [vmem:[#allocation41_spill] sm:$0xff] }
 0x409   : > { %v2396_v15 = vadd.f32 %v2344_v53, %v6166_v44  ;;  %v2558_v57 = vadd.f32 %v2506_v55, %v7598_v7  ;;  %v2671_v47 = vpop.f32.mrf.mxu0 }
 0x40b   : > { %v6548_v58 = vadd.f32 %v2668_v32, %v2396_v15  ;;  %v6550_v21 = vadd.f32 %v2830_v52, %v2558_v57  ;;  %v7603_v57 = vld [vmem:[#allocation62_spill] sm:$0xff] }
 0x40c   : > { %3270 = vmatmul.f32.gmra.mxu0 %v7485_v11 }
 0x40d   : > { %2946 = vmatmul.f32.gmra.mxu2 %v7599_v60  ;;  %3108 = vmatmul.f32.gmra.mxu3 %v7599_v60  ;;  %v2833_v49 = vpop.f32.mrf.mxu1 }
 0x410   : > { %v2347_v14 = vpop.f32.mrf.mxu2  ;;  %v2509_v39 = vpop.f32.mrf.mxu3  ;;  %3432 = vmatmul.f32.gmra.mxu1 %v7485_v11  ;;  %v7602_v11 = vld [vmem:[#allocation145_spill] sm:$0xff] }
 0x411   : > { %v2397_v44 = vadd.f32 %v2347_v14, %v6177_v37  ;;  %v2559_v33 = vadd.f32 %v2509_v39, %v7600_v45  ;;  %v2674_v5 = vpop.f32.mrf.mxu0 }
 0x413   : > { %v6558_v35 = vadd.f32 %v2671_v47, %v2397_v44  ;;  %v6560_v29 = vadd.f32 %v2833_v49, %v2559_v33  ;;  %v7605_v33 = vld [vmem:[#allocation65_spill] sm:$0xff] }
 0x414   : > { %3273 = vmatmul.f32.gmra.mxu0 %v7489_v62 }
 0x415   : > { %2949 = vmatmul.f32.gmra.mxu2 %v7601_v9  ;;  %3111 = vmatmul.f32.gmra.mxu3 %v7601_v9  ;;  %v2836_v32 = vpop.f32.mrf.mxu1 }
 0x418   : > { %v2350_v20 = vpop.f32.mrf.mxu2  ;;  %v2512_v52 = vpop.f32.mrf.mxu3  ;;  %3435 = vmatmul.f32.gmra.mxu1 %v7489_v62  ;;  %v7604_v62 = vld [vmem:[#allocation102_spill] sm:$0xff] }
 0x419   : > { %v2398_v37 = vadd.f32 %v2350_v20, %v6192_v23  ;;  %v2560_v53 = vadd.f32 %v2512_v52, %v7602_v11  ;;  %v2677_v55 = vpop.f32.mrf.mxu0 }
 0x41b   : > { %v6568_v15 = vadd.f32 %v2674_v5, %v2398_v37  ;;  %v6570_v7 = vadd.f32 %v2836_v32, %v2560_v53  ;;  %v7607_v53 = vld [vmem:[#allocation68_spill] sm:$0xff] }
 0x41c   : > { %3276 = vmatmul.f32.gmra.mxu0 %v7493_v27 }
 0x41d   : > { %2952 = vmatmul.f32.gmra.mxu2 %v7603_v57  ;;  %3114 = vmatmul.f32.gmra.mxu3 %v7603_v57  ;;  %v2839_v47 = vpop.f32.mrf.mxu1 }
 0x420   : > { %v2353_v60 = vpop.f32.mrf.mxu2  ;;  %v2515_v49 = vpop.f32.mrf.mxu3  ;;  %3438 = vmatmul.f32.gmra.mxu1 %v7493_v27  ;;  %v7606_v27 = vld [vmem:[#allocation104_spill] sm:$0xff] }
 0x421   : > { %v2399_v23 = vadd.f32 %v2353_v60, %v6203_v61  ;;  %v2561_v14 = vadd.f32 %v2515_v49, %v7604_v62  ;;  %v2680_v39 = vpop.f32.mrf.mxu0 }
 0x423   : > { %v6578_v44 = vadd.f32 %v2677_v55, %v2399_v23  ;;  %v6580_v45 = vadd.f32 %v2839_v47, %v2561_v14  ;;  %v7609_v14 = vld [vmem:[#allocation17_spill] sm:$0xff] }
 0x424   : > { %3279 = vmatmul.f32.gmra.mxu0 %v7497_v34 }
 0x425   : > { %2955 = vmatmul.f32.gmra.mxu2 %v7605_v33  ;;  %3117 = vmatmul.f32.gmra.mxu3 %v7605_v33  ;;  %v2842_v5 = vpop.f32.mrf.mxu1 }
 0x428   : > { %v2356_v9 = vpop.f32.mrf.mxu2  ;;  %v2518_v32 = vpop.f32.mrf.mxu3  ;;  %3441 = vmatmul.f32.gmra.mxu1 %v7497_v34  ;;  %v7608_v34 = vld [vmem:[#allocation44_spill] sm:$0xff] }
 0x429   : > { %v2400_v61 = vadd.f32 %v2356_v9, %v6218_v13  ;;  %v2562_v20 = vadd.f32 %v2518_v32, %v7606_v27  ;;  %v2683_v52 = vpop.f32.mrf.mxu0 }
 0x42b   : > { %v6588_v37 = vadd.f32 %v2680_v39, %v2400_v61  ;;  %v6590_v11 = vadd.f32 %v2842_v5, %v2562_v20  ;;  %v7611_v20 = vld [vmem:[#allocation19_spill] sm:$0xff] }
 0x42c   : > { %3282 = vmatmul.f32.gmra.mxu0 %v7501_v38 }
 0x42d   : > { %2958 = vmatmul.f32.gmra.mxu2 %v7607_v53  ;;  %3120 = vmatmul.f32.gmra.mxu3 %v7607_v53  ;;  %v2845_v55 = vpop.f32.mrf.mxu1 }
 0x430   : > { %v2359_v57 = vpop.f32.mrf.mxu2  ;;  %v2521_v47 = vpop.f32.mrf.mxu3  ;;  %3444 = vmatmul.f32.gmra.mxu1 %v7501_v38  ;;  %v7610_v38 = vld [vmem:[#allocation147_spill] sm:$0xff] }
 0x431   : > { %v2401_v13 = vadd.f32 %v2359_v57, %v6229_v17  ;;  %v2563_v60 = vadd.f32 %v2521_v47, %v7608_v34  ;;  %v2686_v49 = vpop.f32.mrf.mxu0  ;;  %v7613_v57 = vld [vmem:[#allocation108_spill] sm:$0xff] }
 0x433   : > { %v6598_v23 = vadd.f32 %v2683_v52, %v2401_v13  ;;  %v6600_v62 = vadd.f32 %v2845_v55, %v2563_v60 }
 0x434   : > { %3285 = vmatmul.f32.gmra.mxu0 %v7506_v54 }
 0x435   : > { %2961 = vmatmul.f32.gmra.mxu2 %v7609_v14  ;;  %3123 = vmatmul.f32.gmra.mxu3 %v7609_v14  ;;  %v2848_v39 = vpop.f32.mrf.mxu1 }
 0x438   : > { %v2362_v33 = vpop.f32.mrf.mxu2  ;;  %v2524_v5 = vpop.f32.mrf.mxu3  ;;  %3447 = vmatmul.f32.gmra.mxu1 %v7506_v54  ;;  %v7612_v54 = vld [vmem:[#allocation106_spill] sm:$0xff] }
 0x439   : > { %v2402_v17 = vadd.f32 %v2362_v33, %v6244_v56  ;;  %v2564_v9 = vadd.f32 %v2524_v5, %v7610_v38  ;;  %v2689_v32 = vpop.f32.mrf.mxu0 }
 0x43b   : > { %v6608_v61 = vadd.f32 %v2686_v49, %v2402_v17  ;;  %v6610_v27 = vadd.f32 %v2848_v39, %v2564_v9  ;;  %v7614_v49 = vld [vmem:[#allocation20_spill] sm:$0xff]  ;;  %v7616_v17 = vld [vmem:[#allocation49_spill] sm:$0xff] }
 0x43c   : > { %3288 = vmatmul.f32.gmra.mxu0 %v7512_v26 }
 0x43d   : > { %2964 = vmatmul.f32.gmra.mxu2 %v7611_v20  ;;  %3126 = vmatmul.f32.gmra.mxu3 %v7611_v20  ;;  %v2851_v52 = vpop.f32.mrf.mxu1 }
 0x440   : > { %v2365_v53 = vpop.f32.mrf.mxu2  ;;  %v2527_v55 = vpop.f32.mrf.mxu3  ;;  %3450 = vmatmul.f32.gmra.mxu1 %v7512_v26  ;;  %v7615_v26 = vld [vmem:[#allocation53_spill] sm:$0xff] }
 0x441   : > { %v2403_v56 = vadd.f32 %v2365_v53, %v7612_v54  ;;  %v2565_v47 = vadd.f32 %v2527_v55, %v7613_v57  ;;  %v2692_v13 = vpop.f32.mrf.mxu0 }
 0x443   : > { %v6618_v34 = vadd.f32 %v2689_v32, %v2403_v56  ;;  %v6620_v60 = vadd.f32 %v2851_v52, %v2565_v47  ;;  %v7619_v52 = vld [vmem:[#allocation23_spill] sm:$0xff] }
 0x444   : > { %3291 = vmatmul.f32.gmra.mxu0 %v7516_v30 }
 0x445   : > { %2967 = vmatmul.f32.gmra.mxu2 %v7614_v49  ;;  %3129 = vmatmul.f32.gmra.mxu3 %v7614_v49  ;;  %v2854_v14 = vpop.f32.mrf.mxu1  ;;  %v7622_v49 = vld [vmem:[#allocation135_spill] sm:$0xff] }
 0x448   : > { %v2368_v39 = vpop.f32.mrf.mxu2  ;;  %v2530_v33 = vpop.f32.mrf.mxu3  ;;  %3453 = vmatmul.f32.gmra.mxu1 %v7516_v30 }
 0x449   : > { %v2404_v5 = vadd.f32 %v2368_v39, %v7615_v26  ;;  %v2566_v38 = vadd.f32 %v2530_v33, %v7616_v17  ;;  %v2695_v9 = vpop.f32.mrf.mxu0  ;;  %v7625_v26 = vld [vmem:[#allocation110_spill] sm:$0xff] }
 0x44b   : > { %v6628_v32 = vadd.f32 %v2692_v13, %v2404_v5  ;;  %v6630_v20 = vadd.f32 %v2854_v14, %v2566_v38  ;;  %v7623_v14 = vld [vmem:[#allocation27_spill] sm:$0xff] }
 0x44c   : > { %3294 = vmatmul.f32.gmra.mxu0 %v7519_v46 }
 0x44d   : > { %7617 = vst [vmem:[#allocation87_spill] sm:$0xff] %v6628_v32  ;;  %2970 = vmatmul.f32.gmra.mxu2 %v7619_v52  ;;  %3132 = vmatmul.f32.gmra.mxu3 %v7619_v52  ;;  %v2857_v53 = vpop.f32.mrf.mxu1  ;;  %v7626_v52 = vld [vmem:[#allocation28_spill] sm:$0xff] }
 0x44e   : > { %7618 = vst [vmem:[#allocation81_spill] sm:$0xff] %v6630_v20 }
 0x450   : > { %v2371_v55 = vpop.f32.mrf.mxu2  ;;  %v2533_v54 = vpop.f32.mrf.mxu3  ;;  %3456 = vmatmul.f32.gmra.mxu1 %v7519_v46 }
 0x451   : > { %v2405_v30 = vadd.f32 %v2371_v55, %v6281_v16  ;;  %v2567_v56 = vadd.f32 %v2533_v54, %v6283_v12  ;;  %v3250_v57 = vpop.f32.mrf.mxu0  ;;  %v7624_v16 = vld [vmem:[#allocation149_spill] sm:$0xff] }
 0x453   : > { %v6638_v47 = vadd.f32 %v2695_v9, %v2405_v30  ;;  %v6640_v13 = vadd.f32 %v2857_v53, %v2567_v56  ;;  %v7627_v53 = vld [vmem:[#allocation31_spill] sm:$0xff]  ;;  %v7628_v56 = vld [vmem:[#allocation112_spill] sm:$0xff] }
 0x454   : > { %3297 = vmatmul.f32.gmra.mxu0 %v7622_v49 }
 0x455   : > { %7620 = vst [vmem:[#allocation160_spill] sm:$0xff] %v6638_v47  ;;  %2973 = vmatmul.f32.gmra.mxu2 %v7623_v14  ;;  %3135 = vmatmul.f32.gmra.mxu3 %v7623_v14  ;;  %v3412_v39 = vpop.f32.mrf.mxu1 }
 0x456   : > { %7621 = vst [vmem:[#allocation91_spill] sm:$0xff] %v6640_v13 }
 0x458   : > { %v2926_v33 = vpop.f32.mrf.mxu2  ;;  %v3088_v46 = vpop.f32.mrf.mxu3  ;;  %3459 = vmatmul.f32.gmra.mxu1 %v7622_v49  ;;  %v7629_v49 = vld [vmem:[#allocation52_spill] sm:$0xff] }
 0x459   : > { %v3022_v12 = vadd.f32 %v2926_v33, %v7624_v16  ;;  %v3184_v5 = vadd.f32 %v3088_v46, %v7625_v26  ;;  %v3253_v17 = vpop.f32.mrf.mxu0  ;;  %v7630_v26 = vld [vmem:[#allocation138_spill] sm:$0xff] }
 0x45b   : > { %v3346_v38 = vadd.f32 %v3250_v57, %v3022_v12  ;;  %v3508_v9 = vadd.f32 %v3412_v39, %v3184_v5 }
 0x45c   : > { %3300 = vmatmul.f32.gmra.mxu0 %v7626_v52 }
 0x45d   : > { %3540 = vst [vmem:[%s6650_s24] sm:$0xff] %v3346_v38  ;;  %2976 = vmatmul.f32.gmra.mxu2 %v7627_v53  ;;  %3138 = vmatmul.f32.gmra.mxu3 %v7627_v53  ;;  %v3415_v55 = vpop.f32.mrf.mxu1  ;;  %v3641_v16 = vmul.f32 %v3346_v38, %v3346_v38  ;;  %v3748_v12 = vmul.f32 %v3508_v9, %v3508_v9 }
 0x45e   : > { %3572 = vst [vmem:[%s6656_s29] sm:$0xff] %v3508_v9 }
 0x460   : > { %v2929_v54 = vpop.f32.mrf.mxu2  ;;  %v3091_v30 = vpop.f32.mrf.mxu3  ;;  %3462 = vmatmul.f32.gmra.mxu1 %v7626_v52  ;;  %v7631_v52 = vld [vmem:[#allocation35_spill] sm:$0xff] }
 0x461   : > { %v3023_v57 = vadd.f32 %v2929_v54, %v7628_v56  ;;  %v3185_v14 = vadd.f32 %v3091_v30, %v7629_v49  ;;  %v3256_v39 = vpop.f32.mrf.mxu0  ;;  %v7632_v56 = vld [vmem:[#allocation151_spill] sm:$0xff] }
 0x463   : > { %v3347_v33 = vadd.f32 %v3253_v17, %v3023_v57  ;;  %v3509_v46 = vadd.f32 %v3415_v55, %v3185_v14 }
 0x464   : > { %3303 = vmatmul.f32.gmra.mxu0 %v7630_v26 }
 0x465   : > { %3541 = vst [vmem:[%s6650_s24 + $0x8] sm:$0xff] %v3347_v33  ;;  %v3604_v5 = vadd.f32 %v3347_v33, %v3346_v38  ;;  %v3642_v53 = vmul.f32 %v3347_v33, %v3347_v33  ;;  %v3711_v13 = vadd.f32 %v3509_v46, %v3508_v9  ;;  %v3749_v47 = vmul.f32 %v3509_v46, %v3509_v46  ;;  %v3418_v20 = vpop.f32.mrf.mxu1  ;;  %v7633_v38 = vld [vmem:[#allocation114_spill] sm:$0xff] }
 0x466   : > { %3573 = vst [vmem:[%s6656_s29 + $0x8] sm:$0xff] %v3509_v46  ;;  %2979 = vmatmul.f32.gmra.mxu2 %v7631_v52  ;;  %3141 = vmatmul.f32.gmra.mxu3 %v7631_v52 }
 0x467   : > { %v3673_v54 = vadd.f32 %v3642_v53, %v3641_v16  ;;  %v3780_v30 = vadd.f32 %v3749_v47, %v3748_v12  ;;  %v7634_v12 = vld [vmem:[#allocation39_spill] sm:$0xff] }
 0x468   : > { %v2932_v17 = vpop.f32.mrf.mxu2  ;;  %v3094_v55 = vpop.f32.mrf.mxu3  ;;  %3465 = vmatmul.f32.gmra.mxu1 %v7630_v26 }
 0x469   : > { %v3024_v57 = vadd.f32 %v2932_v17, %v7632_v56  ;;  %v3186_v49 = vadd.f32 %v3094_v55, %v7633_v38  ;;  %v3259_v9 = vpop.f32.mrf.mxu0 }
 0x46b   : > { %v3348_v14 = vadd.f32 %v3256_v39, %v3024_v57  ;;  %v3510_v33 = vadd.f32 %v3418_v20, %v3186_v49  ;;  %v7635_v20 = vld [vmem:[#allocation116_spill] sm:$0xff]  ;;  %v7637_v49 = vld [vmem:[#allocation142_spill] sm:$0xff] }
 0x46c   : > { %3306 = vmatmul.f32.gmra.mxu0 %v7542_v59 }
 0x46d   : > { %3542 = vst [vmem:[%s6650_s24 + $0x10] sm:$0xff] %v3348_v14  ;;  %v3605_v46 = vadd.f32 %v3604_v5, %v3348_v14  ;;  %v3643_v32 = vmul.f32 %v3348_v14, %v3348_v14  ;;  %v3712_v52 = vadd.f32 %v3711_v13, %v3510_v33  ;;  %v3750_v16 = vmul.f32 %v3510_v33, %v3510_v33  ;;  %v3421_v47 = vpop.f32.mrf.mxu1  ;;  %v7636_v5 = vld [vmem:[#allocation57_spill] sm:$0xff] }
 0x46e   : > { %3574 = vst [vmem:[%s6656_s29 + $0x10] sm:$0xff] %v3510_v33  ;;  %2982 = vmatmul.f32.gmra.mxu2 %v7634_v12  ;;  %3144 = vmatmul.f32.gmra.mxu3 %v7634_v12 }
 0x46f   : > { %v3674_v26 = vadd.f32 %v3673_v54, %v3643_v32  ;;  %v3781_v53 = vadd.f32 %v3780_v30, %v3750_v16  ;;  %v7638_v30 = vld [vmem:[#allocation43_spill] sm:$0xff] }
 0x470   : > { %v2935_v17 = vpop.f32.mrf.mxu2  ;;  %v3097_v39 = vpop.f32.mrf.mxu3  ;;  %3468 = vmatmul.f32.gmra.mxu1 %v7542_v59 }
 0x471   : > { %v3025_v55 = vadd.f32 %v2935_v17, %v7635_v20  ;;  %v3187_v56 = vadd.f32 %v3097_v39, %v7636_v5  ;;  %v3262_v13 = vpop.f32.mrf.mxu0 }
 0x473   : > { %v3349_v57 = vadd.f32 %v3259_v9, %v3025_v55  ;;  %v3511_v38 = vadd.f32 %v3421_v47, %v3187_v56  ;;  %v7639_v47 = vld [vmem:[#allocation153_spill] sm:$0xff] }
 0x474   : > { %3309 = vmatmul.f32.gmra.mxu0 %v7637_v49 }
 0x475   : > { %3543 = vst [vmem:[%s6650_s24 + $0x18] sm:$0xff] %v3349_v57  ;;  %v3606_v14 = vadd.f32 %v3605_v46, %v3349_v57  ;;  %v3644_v33 = vmul.f32 %v3349_v57, %v3349_v57  ;;  %v3713_v12 = vadd.f32 %v3712_v52, %v3511_v38  ;;  %v3751_v32 = vmul.f32 %v3511_v38, %v3511_v38  ;;  %v3424_v54 = vpop.f32.mrf.mxu1  ;;  %v7640_v46 = vld [vmem:[#allocation118_spill] sm:$0xff] }
 0x476   : > { %3575 = vst [vmem:[%s6656_s29 + $0x18] sm:$0xff] %v3511_v38  ;;  %2985 = vmatmul.f32.gmra.mxu2 %v7638_v30  ;;  %3147 = vmatmul.f32.gmra.mxu3 %v7638_v30 }
 0x477   : > { %v3675_v59 = vadd.f32 %v3674_v26, %v3644_v33  ;;  %v3782_v16 = vadd.f32 %v3781_v53, %v3751_v32  ;;  %v7641_v33 = vld [vmem:[#allocation47_spill] sm:$0xff] }
 0x478   : > { %v2938_v17 = vpop.f32.mrf.mxu2  ;;  %v3100_v9 = vpop.f32.mrf.mxu3  ;;  %3471 = vmatmul.f32.gmra.mxu1 %v7637_v49 }
 0x479   : > { %v3026_v39 = vadd.f32 %v2938_v17, %v7639_v47  ;;  %v3188_v20 = vadd.f32 %v3100_v9, %v7640_v46  ;;  %v3265_v52 = vpop.f32.mrf.mxu0  ;;  %v7644_v46 = vld [vmem:[#allocation146_spill] sm:$0xff] }
 0x47b   : > { %v3350_v55 = vadd.f32 %v3262_v13, %v3026_v39  ;;  %v3512_v5 = vadd.f32 %v3424_v54, %v3188_v20  ;;  %v7642_v54 = vld [vmem:[#allocation120_spill] sm:$0xff] }
 0x47c   : > { %3312 = vmatmul.f32.gmra.mxu0 %v7553_v10 }
 0x47d   : > { %3544 = vst [vmem:[%s6650_s24 + $0x20] sm:$0xff] %v3350_v55  ;;  %v3607_v56 = vadd.f32 %v3606_v14, %v3350_v55  ;;  %v3645_v57 = vmul.f32 %v3350_v55, %v3350_v55  ;;  %v3714_v38 = vadd.f32 %v3713_v12, %v3512_v5  ;;  %v3752_v26 = vmul.f32 %v3512_v5, %v3512_v5  ;;  %v3427_v53 = vpop.f32.mrf.mxu1  ;;  %v7643_v14 = vld [vmem:[#allocation60_spill] sm:$0xff] }
 0x47e   : > { %3576 = vst [vmem:[%s6656_s29 + $0x20] sm:$0xff] %v3512_v5  ;;  %2988 = vmatmul.f32.gmra.mxu2 %v7641_v33  ;;  %3150 = vmatmul.f32.gmra.mxu3 %v7641_v33 }
 0x47f   : > { %v3676_v49 = vadd.f32 %v3675_v59, %v3645_v57  ;;  %v3783_v32 = vadd.f32 %v3782_v16, %v3752_v26  ;;  %v7645_v57 = vld [vmem:[#allocation51_spill] sm:$0xff] }
 0x480   : > { %v2941_v30 = vpop.f32.mrf.mxu2  ;;  %v3103_v13 = vpop.f32.mrf.mxu3  ;;  %3474 = vmatmul.f32.gmra.mxu1 %v7553_v10 }
 0x481   : > { %v3027_v17 = vadd.f32 %v2941_v30, %v7642_v54  ;;  %v3189_v9 = vadd.f32 %v3103_v13, %v7643_v14  ;;  %v3268_v12 = vpop.f32.mrf.mxu0  ;;  %v7648_v14 = vld [vmem:[#allocation148_spill] sm:$0xff] }
 0x483   : > { %v3351_v47 = vadd.f32 %v3265_v52, %v3027_v17  ;;  %v3513_v39 = vadd.f32 %v3427_v53, %v3189_v9  ;;  %v7646_v53 = vld [vmem:[#allocation156_spill] sm:$0xff] }
 0x484   : > { %3315 = vmatmul.f32.gmra.mxu0 %v7644_v46 }
 0x485   : > { %3545 = vst [vmem:[%s6650_s24 + $0x28] sm:$0xff] %v3351_v47  ;;  %v3608_v20 = vadd.f32 %v3607_v56, %v3351_v47  ;;  %v3646_v55 = vmul.f32 %v3351_v47, %v3351_v47  ;;  %v3715_v5 = vadd.f32 %v3714_v38, %v3513_v39  ;;  %v3753_v59 = vmul.f32 %v3513_v39, %v3513_v39  ;;  %v3430_v16 = vpop.f32.mrf.mxu1  ;;  %v7647_v56 = vld [vmem:[#allocation122_spill] sm:$0xff] }
 0x486   : > { %3577 = vst [vmem:[%s6656_s29 + $0x28] sm:$0xff] %v3513_v39  ;;  %2991 = vmatmul.f32.gmra.mxu2 %v7645_v57  ;;  %3153 = vmatmul.f32.gmra.mxu3 %v7645_v57 }
 0x487   : > { %v3677_v10 = vadd.f32 %v3676_v49, %v3646_v55  ;;  %v3784_v26 = vadd.f32 %v3783_v32, %v3753_v59  ;;  %v7649_v55 = vld [vmem:[#allocation55_spill] sm:$0xff] }
 0x488   : > { %v2944_v33 = vpop.f32.mrf.mxu2  ;;  %v3106_v52 = vpop.f32.mrf.mxu3  ;;  %3477 = vmatmul.f32.gmra.mxu1 %v7644_v46 }
 0x489   : > { %v3028_v30 = vadd.f32 %v2944_v33, %v7646_v53  ;;  %v3190_v13 = vadd.f32 %v3106_v52, %v7647_v56  ;;  %v3271_v38 = vpop.f32.mrf.mxu0  ;;  %v7652_v56 = vld [vmem:[#allocation150_spill] sm:$0xff] }
 0x48b   : > { %v3352_v54 = vadd.f32 %v3268_v12, %v3028_v30  ;;  %v3514_v17 = vadd.f32 %v3430_v16, %v3190_v13  ;;  %v7650_v16 = vld [vmem:[#allocation124_spill] sm:$0xff] }
 0x48c   : > { %3318 = vmatmul.f32.gmra.mxu0 %v7648_v14 }
 0x48d   : > { %3546 = vst [vmem:[%s6650_s24 + $0x30] sm:$0xff] %v3352_v54  ;;  %v3609_v9 = vadd.f32 %v3608_v20, %v3352_v54  ;;  %v3647_v47 = vmul.f32 %v3352_v54, %v3352_v54  ;;  %v3716_v39 = vadd.f32 %v3715_v5, %v3514_v17  ;;  %v3754_v49 = vmul.f32 %v3514_v17, %v3514_v17  ;;  %v3433_v32 = vpop.f32.mrf.mxu1  ;;  %v7651_v20 = vld [vmem:[#allocation154_spill] sm:$0xff] }
 0x48e   : > { %3578 = vst [vmem:[%s6656_s29 + $0x30] sm:$0xff] %v3514_v17  ;;  %2994 = vmatmul.f32.gmra.mxu2 %v7649_v55  ;;  %3156 = vmatmul.f32.gmra.mxu3 %v7649_v55 }
 0x48f   : > { %v3678_v46 = vadd.f32 %v3677_v10, %v3647_v47  ;;  %v3785_v59 = vadd.f32 %v3784_v26, %v3754_v49  ;;  %v7653_v47 = vld [vmem:[#allocation59_spill] sm:$0xff] }
 0x490   : > { %v2947_v57 = vpop.f32.mrf.mxu2  ;;  %v3109_v12 = vpop.f32.mrf.mxu3  ;;  %3480 = vmatmul.f32.gmra.mxu1 %v7648_v14 }
 0x491   : > { %v3029_v33 = vadd.f32 %v2947_v57, %v7650_v16  ;;  %v3191_v52 = vadd.f32 %v3109_v12, %v7651_v20  ;;  %v3274_v5 = vpop.f32.mrf.mxu0 }
 0x493   : > { %v3353_v53 = vadd.f32 %v3271_v38, %v3029_v33  ;;  %v3515_v30 = vadd.f32 %v3433_v32, %v3191_v52  ;;  %v7654_v32 = vld [vmem:[#allocation126_spill] sm:$0xff] }
 0x494   : > { %3321 = vmatmul.f32.gmra.mxu0 %v7652_v56 }
 0x495   : > { %3547 = vst [vmem:[%s6650_s24 + $0x38] sm:$0xff] %v3353_v53  ;;  %v3610_v13 = vadd.f32 %v3609_v9, %v3353_v53  ;;  %v3648_v54 = vmul.f32 %v3353_v53, %v3353_v53  ;;  %v3717_v17 = vadd.f32 %v3716_v39, %v3515_v30  ;;  %v3755_v10 = vmul.f32 %v3515_v30, %v3515_v30  ;;  %v3436_v26 = vpop.f32.mrf.mxu1  ;;  %v7655_v9 = vld [vmem:[#allocation128_spill] sm:$0xff] }
 0x496   : > { %3579 = vst [vmem:[%s6656_s29 + $0x38] sm:$0xff] %v3515_v30  ;;  %2997 = vmatmul.f32.gmra.mxu2 %v7653_v47  ;;  %3159 = vmatmul.f32.gmra.mxu3 %v7653_v47  ;;  %v7656_v30 = vld [vmem:[#allocation63_spill] sm:$0xff] }
 0x497   : > { %v3679_v14 = vadd.f32 %v3678_v46, %v3648_v54  ;;  %v3786_v49 = vadd.f32 %v3785_v59, %v3755_v10 }
 0x498   : > { %v2950_v55 = vpop.f32.mrf.mxu2  ;;  %v3112_v38 = vpop.f32.mrf.mxu3  ;;  %3483 = vmatmul.f32.gmra.mxu1 %v7652_v56 }
 0x499   : > { %v3030_v57 = vadd.f32 %v2950_v55, %v7654_v32  ;;  %v3192_v12 = vadd.f32 %v3112_v38, %v7655_v9  ;;  %v3277_v39 = vpop.f32.mrf.mxu0 }
 0x49b   : > { %v3354_v16 = vadd.f32 %v3274_v5, %v3030_v57  ;;  %v3516_v33 = vadd.f32 %v3436_v26, %v3192_v12  ;;  %v7657_v26 = vld [vmem:[#allocation76_spill] sm:$0xff] }
 0x49c   : > { %3324 = vmatmul.f32.gmra.mxu0 %v7576_v41 }
 0x49d   : > { %3548 = vst [vmem:[%s6650_s24 + $0x40] sm:$0xff] %v3354_v16  ;;  %v3611_v20 = vadd.f32 %v3610_v13, %v3354_v16  ;;  %v3649_v52 = vmul.f32 %v3354_v16, %v3354_v16  ;;  %v3718_v53 = vadd.f32 %v3717_v17, %v3516_v33  ;;  %v3756_v46 = vmul.f32 %v3516_v33, %v3516_v33  ;;  %v3439_v59 = vpop.f32.mrf.mxu1  ;;  %v7658_v13 = vld [vmem:[#allocation73_spill] sm:$0xff]  ;;  %v7659_v16 = vld [vmem:[#allocation66_spill] sm:$0xff] }
 0x49e   : > { %3580 = vst [vmem:[%s6656_s29 + $0x40] sm:$0xff] %v3516_v33  ;;  %3000 = vmatmul.f32.gmra.mxu2 %v7656_v30  ;;  %3162 = vmatmul.f32.gmra.mxu3 %v7656_v30 }
 0x49f   : > { %v3680_v56 = vadd.f32 %v3679_v14, %v3649_v52  ;;  %v3787_v54 = vadd.f32 %v3786_v49, %v3756_v46  ;;  %v7660_v46 = vld [vmem:[#allocation157_spill] sm:$0xff] }
 0x4a0   : > { %v2953_v10 = vpop.f32.mrf.mxu2  ;;  %v3115_v5 = vpop.f32.mrf.mxu3  ;;  %3486 = vmatmul.f32.gmra.mxu1 %v7576_v41 }
 0x4a1   : > { %v3031_v47 = vadd.f32 %v2953_v10, %v7657_v26  ;;  %v3193_v55 = vadd.f32 %v3115_v5, %v7658_v13  ;;  %v3280_v17 = vpop.f32.mrf.mxu0 }
 0x4a3   : > { %v3355_v38 = vadd.f32 %v3277_v39, %v3031_v47  ;;  %v3517_v32 = vadd.f32 %v3439_v59, %v3193_v55  ;;  %v7662_v55 = vld [vmem:[#allocation69_spill] sm:$0xff] }
 0x4a4   : > { %3327 = vmatmul.f32.gmra.mxu0 %v7581_v0 }
 0x4a5   : > { %3549 = vst [vmem:[%s6650_s24 + $0x48] sm:$0xff] %v3355_v38  ;;  %v3612_v57 = vadd.f32 %v3611_v20, %v3355_v38  ;;  %v3650_v9 = vmul.f32 %v3355_v38, %v3355_v38  ;;  %v3719_v12 = vadd.f32 %v3718_v53, %v3517_v32  ;;  %v3757_v14 = vmul.f32 %v3517_v32, %v3517_v32  ;;  %v3442_v49 = vpop.f32.mrf.mxu1  ;;  %v7661_v20 = vld [vmem:[#allocation79_spill] sm:$0xff] }
 0x4a6   : > { %3581 = vst [vmem:[%s6656_s29 + $0x48] sm:$0xff] %v3517_v32  ;;  %3003 = vmatmul.f32.gmra.mxu2 %v7659_v16  ;;  %3165 = vmatmul.f32.gmra.mxu3 %v7659_v16 }
 0x4a7   : > { %v3681_v41 = vadd.f32 %v3680_v56, %v3650_v9  ;;  %v3788_v33 = vadd.f32 %v3787_v54, %v3757_v14  ;;  %v7663_v9 = vld [vmem:[#allocation74_spill] sm:$0xff] }
 0x4a8   : > { %v2956_v52 = vpop.f32.mrf.mxu2  ;;  %v3118_v39 = vpop.f32.mrf.mxu3  ;;  %3489 = vmatmul.f32.gmra.mxu1 %v7581_v0 }
 0x4a9   : > { %v3032_v59 = vadd.f32 %v2956_v52, %v7660_v46  ;;  %v3194_v30 = vadd.f32 %v3118_v39, %v7661_v20  ;;  %v3283_v53 = vpop.f32.mrf.mxu0  ;;  %v7665_v20 = vld [vmem:[#allocation36_spill] sm:$0xff] }
 0x4ab   : > { %v3356_v10 = vadd.f32 %v3280_v17, %v3032_v59  ;;  %v3518_v5 = vadd.f32 %v3442_v49, %v3194_v30 }
 0x4ac   : > { %3330 = vmatmul.f32.gmra.mxu0 %v7585_v4 }
 0x4ad   : > { %3550 = vst [vmem:[%s6650_s24 + $0x50] sm:$0xff] %v3356_v10  ;;  %v3613_v26 = vadd.f32 %v3612_v57, %v3356_v10  ;;  %v3651_v47 = vmul.f32 %v3356_v10, %v3356_v10  ;;  %v3720_v13 = vadd.f32 %v3719_v12, %v3518_v5  ;;  %v3758_v56 = vmul.f32 %v3518_v5, %v3518_v5  ;;  %v3445_v54 = vpop.f32.mrf.mxu1  ;;  %v7664_v57 = vld [vmem:[#allocation83_spill] sm:$0xff] }
 0x4ae   : > { %3582 = vst [vmem:[%s6656_s29 + $0x50] sm:$0xff] %v3518_v5  ;;  %3006 = vmatmul.f32.gmra.mxu2 %v7662_v55  ;;  %3168 = vmatmul.f32.gmra.mxu3 %v7662_v55 }
 0x4af   : > { %v3682_v0 = vadd.f32 %v3681_v41, %v3651_v47  ;;  %v3789_v38 = vadd.f32 %v3788_v33, %v3758_v56 }
 0x4b0   : > { %v2959_v32 = vpop.f32.mrf.mxu2  ;;  %v3121_v17 = vpop.f32.mrf.mxu3  ;;  %3492 = vmatmul.f32.gmra.mxu1 %v7585_v4 }
 0x4b1   : > { %v3033_v14 = vadd.f32 %v2959_v32, %v7663_v9  ;;  %v3195_v49 = vadd.f32 %v3121_v17, %v7664_v57  ;;  %v3286_v12 = vpop.f32.mrf.mxu0  ;;  %v7667_v9 = vld [vmem:[#allocation98_spill] sm:$0xff] }
 0x4b3   : > { %v3357_v16 = vadd.f32 %v3283_v53, %v3033_v14  ;;  %v3519_v52 = vadd.f32 %v3445_v54, %v3195_v49 }
 0x4b4   : > { %3333 = vmatmul.f32.gmra.mxu0 %v6452_v48 }
 0x4b5   : > { %3551 = vst [vmem:[%s6650_s24 + $0x58] sm:$0xff] %v3357_v16  ;;  %v3614_v39 = vadd.f32 %v3613_v26, %v3357_v16  ;;  %v3652_v46 = vmul.f32 %v3357_v16, %v3357_v16  ;;  %v3721_v59 = vadd.f32 %v3720_v13, %v3519_v52  ;;  %v3759_v41 = vmul.f32 %v3519_v52, %v3519_v52  ;;  %v3448_v33 = vpop.f32.mrf.mxu1  ;;  %v7666_v26 = vld [vmem:[#allocation77_spill] sm:$0xff] }
 0x4b6   : > { %3583 = vst [vmem:[%s6656_s29 + $0x58] sm:$0xff] %v3519_v52  ;;  %3009 = vmatmul.f32.gmra.mxu2 %v7665_v20  ;;  %3171 = vmatmul.f32.gmra.mxu3 %v7665_v20 }
 0x4b7   : > { %v3683_v4 = vadd.f32 %v3682_v0, %v3652_v46  ;;  %v3790_v30 = vadd.f32 %v3789_v38, %v3759_v41 }
 0x4b8   : > { %v2962_v10 = vpop.f32.mrf.mxu2  ;;  %v3124_v53 = vpop.f32.mrf.mxu3  ;;  %3495 = vmatmul.f32.gmra.mxu1 %v6452_v48 }
 0x4b9   : > { %v3034_v5 = vadd.f32 %v2962_v10, %v6439_v8  ;;  %v3196_v47 = vadd.f32 %v3124_v53, %v7666_v26  ;;  %v3289_v13 = vpop.f32.mrf.mxu0  ;;  %v7670_v10 = vld [vmem:[#allocation16_spill] sm:$0xff] }
 0x4bb   : > { %v3358_v56 = vadd.f32 %v3286_v12, %v3034_v5  ;;  %v3520_v54 = vadd.f32 %v3448_v33, %v3196_v47  ;;  %v7668_v12 = vld [vmem:[#allocation158_spill] sm:$0xff] }
 0x4bc   : > { %3336 = vmatmul.f32.gmra.mxu0 %v6466_v6 }
 0x4bd   : > { %3552 = vst [vmem:[%s6650_s24 + $0x60] sm:$0xff] %v3358_v56  ;;  %v3615_v55 = vadd.f32 %v3614_v39, %v3358_v56  ;;  %v3653_v32 = vmul.f32 %v3358_v56, %v3358_v56  ;;  %v3722_v17 = vadd.f32 %v3721_v59, %v3520_v54  ;;  %v3760_v0 = vmul.f32 %v3520_v54, %v3520_v54  ;;  %v3451_v38 = vpop.f32.mrf.mxu1  ;;  %v7669_v59 = vld [vmem:[#allocation70_spill] sm:$0xff] }
 0x4be   : > { %3584 = vst [vmem:[%s6656_s29 + $0x60] sm:$0xff] %v3520_v54  ;;  %3012 = vmatmul.f32.gmra.mxu2 %v7667_v9  ;;  %3174 = vmatmul.f32.gmra.mxu3 %v7667_v9 }
 0x4bf   : > { %v3684_v8 = vadd.f32 %v3683_v4, %v3653_v32  ;;  %v3791_v48 = vadd.f32 %v3790_v30, %v3760_v0 }
 0x4c0   : > { %v2965_v14 = vpop.f32.mrf.mxu2  ;;  %v3127_v57 = vpop.f32.mrf.mxu3  ;;  %3498 = vmatmul.f32.gmra.mxu1 %v6466_v6 }
 0x4c1   : > { %v3035_v49 = vadd.f32 %v2965_v14, %v6454_v2  ;;  %v3197_v16 = vadd.f32 %v3127_v57, %v7668_v12  ;;  %v3292_v52 = vpop.f32.mrf.mxu0 }
 0x4c3   : > { %v3359_v39 = vadd.f32 %v3289_v13, %v3035_v49  ;;  %v3521_v46 = vadd.f32 %v3451_v38, %v3197_v16 }
 0x4c4   : > { %3339 = vmatmul.f32.gmra.mxu0 %v7669_v59 }
 0x4c5   : > { %3553 = vst [vmem:[%s6650_s24 + $0x68] sm:$0xff] %v3359_v39  ;;  %v3616_v41 = vadd.f32 %v3615_v55, %v3359_v39  ;;  %v3654_v33 = vmul.f32 %v3359_v39, %v3359_v39  ;;  %v3723_v20 = vadd.f32 %v3722_v17, %v3521_v46  ;;  %v3761_v4 = vmul.f32 %v3521_v46, %v3521_v46  ;;  %v3454_v30 = vpop.f32.mrf.mxu1 }
 0x4c6   : > { %3585 = vst [vmem:[%s6656_s29 + $0x68] sm:$0xff] %v3521_v46  ;;  %3015 = vmatmul.f32.gmra.mxu2 %v7670_v10  ;;  %3177 = vmatmul.f32.gmra.mxu3 %v7670_v10 }
 0x4c7   : > { %v3685_v2 = vadd.f32 %v3684_v8, %v3654_v33  ;;  %v3792_v6 = vadd.f32 %v3791_v48, %v3761_v4 }
 0x4c8   : > { %v2968_v53 = vpop.f32.mrf.mxu2  ;;  %v3130_v5 = vpop.f32.mrf.mxu3  ;;  %3501 = vmatmul.f32.gmra.mxu1 %v7669_v59 }
 0x4c9   : > { %v3036_v26 = vadd.f32 %v2968_v53, %v6468_v51  ;;  %v3198_v47 = vadd.f32 %v3130_v5, %v6470_v42  ;;  %v3295_v13 = vpop.f32.mrf.mxu0 }
 0x4cb   : > { %v3360_v56 = vadd.f32 %v3292_v52, %v3036_v26  ;;  %v3522_v54 = vadd.f32 %v3454_v30, %v3198_v47 }
 0x4cc   : > { %3342 = vmatmul.f32.gmra.mxu0 %v7669_v59 }
 0x4cd   : > { %3554 = vst [vmem:[%s6650_s24 + $0x70] sm:$0xff] %v3360_v56  ;;  %v3617_v55 = vadd.f32 %v3616_v41, %v3360_v56  ;;  %v3655_v32 = vmul.f32 %v3360_v56, %v3360_v56  ;;  %v3724_v17 = vadd.f32 %v3723_v20, %v3522_v54  ;;  %v3762_v0 = vmul.f32 %v3522_v54, %v3522_v54  ;;  %v3457_v38 = vpop.f32.mrf.mxu1 }
 0x4ce   : > { %3586 = vst [vmem:[%s6656_s29 + $0x70] sm:$0xff] %v3522_v54  ;;  %3018 = vmatmul.f32.gmra.mxu2 %v7670_v10  ;;  %3180 = vmatmul.f32.gmra.mxu3 %v7670_v10 }
 0x4cf   : > { %v3686_v51 = vadd.f32 %v3685_v2, %v3655_v32  ;;  %v3793_v42 = vadd.f32 %v3792_v6, %v3762_v0 }
 0x4d0   : > { %v2971_v9 = vpop.f32.mrf.mxu2  ;;  %v3133_v8 = vpop.f32.mrf.mxu3  ;;  %3504 = vmatmul.f32.gmra.mxu1 %v7669_v59 }
 0x4d1   : > { %v3037_v48 = vadd.f32 %v2971_v9, %v6478_v43  ;;  %v3199_v14 = vadd.f32 %v3133_v8, %v6480_v24  ;;  %v3298_v57 = vpop.f32.mrf.mxu0 }
 0x4d3   : > { %v3361_v49 = vadd.f32 %v3295_v13, %v3037_v48  ;;  %v3523_v12 = vadd.f32 %v3457_v38, %v3199_v14 }
 0x4d5   : > { %3555 = vst [vmem:[%s6650_s24 + $0x78] sm:$0xff] %v3361_v49  ;;  %v3618_v16 = vadd.f32 %v3617_v55, %v3361_v49  ;;  %v3656_v52 = vmul.f32 %v3361_v49, %v3361_v49  ;;  %v3725_v39 = vadd.f32 %v3724_v17, %v3523_v12  ;;  %v3763_v46 = vmul.f32 %v3523_v12, %v3523_v12  ;;  %v3460_v41 = vpop.f32.mrf.mxu1 }
 0x4d6   : > { %3587 = vst [vmem:[%s6656_s29 + $0x78] sm:$0xff] %v3523_v12 }
 0x4d7   : > { %v3687_v33 = vadd.f32 %v3686_v51, %v3656_v52  ;;  %v3794_v20 = vadd.f32 %v3793_v42, %v3763_v46 }
 0x4d8   : > { %v2974_v4 = vpop.f32.mrf.mxu2  ;;  %v3136_v59 = vpop.f32.mrf.mxu3 }
 0x4d9   : > { %v3038_v43 = vadd.f32 %v2974_v4, %v6488_v50  ;;  %v3200_v24 = vadd.f32 %v3136_v59, %v6490_v22  ;;  %v3301_v30 = vpop.f32.mrf.mxu0 }
 0x4db   : > { %v3362_v10 = vadd.f32 %v3298_v57, %v3038_v43  ;;  %v3524_v2 = vadd.f32 %v3460_v41, %v3200_v24 }
 0x4dd   : > { %3556 = vst [vmem:[%s6650_s24 + $0x80] sm:$0xff] %v3362_v10  ;;  %v3619_v6 = vadd.f32 %v3618_v16, %v3362_v10  ;;  %v3657_v53 = vmul.f32 %v3362_v10, %v3362_v10  ;;  %v3726_v5 = vadd.f32 %v3725_v39, %v3524_v2  ;;  %v3764_v26 = vmul.f32 %v3524_v2, %v3524_v2  ;;  %v3463_v47 = vpop.f32.mrf.mxu1 }
 0x4de   : > { %3588 = vst [vmem:[%s6656_s29 + $0x80] sm:$0xff] %v3524_v2 }
 0x4df   : > { %v3688_v13 = vadd.f32 %v3687_v33, %v3657_v53  ;;  %v3795_v56 = vadd.f32 %v3794_v20, %v3764_v26 }
 0x4e0   : > { %v2977_v54 = vpop.f32.mrf.mxu2  ;;  %v3139_v55 = vpop.f32.mrf.mxu3 }
 0x4e1   : > { %v3039_v50 = vadd.f32 %v2977_v54, %v6498_v31  ;;  %v3201_v22 = vadd.f32 %v3139_v55, %v6500_v18  ;;  %v3304_v32 = vpop.f32.mrf.mxu0 }
 0x4e3   : > { %v3363_v17 = vadd.f32 %v3301_v30, %v3039_v50  ;;  %v3525_v0 = vadd.f32 %v3463_v47, %v3201_v22 }
 0x4e5   : > { %3557 = vst [vmem:[%s6650_s24 + $0x88] sm:$0xff] %v3363_v17  ;;  %v3620_v38 = vadd.f32 %v3619_v6, %v3363_v17  ;;  %v3658_v51 = vmul.f32 %v3363_v17, %v3363_v17  ;;  %v3727_v42 = vadd.f32 %v3726_v5, %v3525_v0  ;;  %v3765_v9 = vmul.f32 %v3525_v0, %v3525_v0  ;;  %v3466_v8 = vpop.f32.mrf.mxu1 }
 0x4e6   : > { %3589 = vst [vmem:[%s6656_s29 + $0x88] sm:$0xff] %v3525_v0 }
 0x4e7   : > { %v3689_v48 = vadd.f32 %v3688_v13, %v3658_v51  ;;  %v3796_v14 = vadd.f32 %v3795_v56, %v3765_v9 }
 0x4e9   : > { %v2980_v57 = vpop.f32.mrf.mxu2  ;;  %v3142_v49 = vpop.f32.mrf.mxu3 }
 0x4ea   : > { %v3040_v31 = vadd.f32 %v2980_v57, %v6508_v36  ;;  %v3202_v18 = vadd.f32 %v3142_v49, %v6510_v1  ;;  %v3307_v12 = vpop.f32.mrf.mxu0 }
 0x4ec   : > { %v3364_v16 = vadd.f32 %v3304_v32, %v3040_v31  ;;  %v3526_v52 = vadd.f32 %v3466_v8, %v3202_v18 }
 0x4ed   : > { %v3469_v39 = vpop.f32.mrf.mxu1 }
 0x4ee   : > { %3558 = vst [vmem:[%s6650_s24 + $0x90] sm:$0xff] %v3364_v16  ;;  %v3621_v46 = vadd.f32 %v3620_v38, %v3364_v16  ;;  %v3659_v41 = vmul.f32 %v3364_v16, %v3364_v16  ;;  %v3728_v33 = vadd.f32 %v3727_v42, %v3526_v52  ;;  %v3766_v20 = vmul.f32 %v3526_v52, %v3526_v52 }
 0x4ef   : > { %3590 = vst [vmem:[%s6656_s29 + $0x90] sm:$0xff] %v3526_v52 }
 0x4f0   : > { %v3690_v4 = vadd.f32 %v3689_v48, %v3659_v41  ;;  %v3797_v59 = vadd.f32 %v3796_v14, %v3766_v20 }
 0x4f1   : > { %v2983_v43 = vpop.f32.mrf.mxu2  ;;  %v3145_v24 = vpop.f32.mrf.mxu3 }
 0x4f2   : > { %v3041_v36 = vadd.f32 %v2983_v43, %v6518_v19  ;;  %v3203_v1 = vadd.f32 %v3145_v24, %v6520_v25  ;;  %v3310_v30 = vpop.f32.mrf.mxu0 }
 0x4f4   : > { %v3365_v10 = vadd.f32 %v3307_v12, %v3041_v36  ;;  %v3527_v2 = vadd.f32 %v3469_v39, %v3203_v1 }
 0x4f5   : > { %v3472_v6 = vpop.f32.mrf.mxu1 }
 0x4f6   : > { %3559 = vst [vmem:[%s6650_s24 + $0x98] sm:$0xff] %v3365_v10  ;;  %v3622_v53 = vadd.f32 %v3621_v46, %v3365_v10  ;;  %v3660_v5 = vmul.f32 %v3365_v10, %v3365_v10  ;;  %v3729_v26 = vadd.f32 %v3728_v33, %v3527_v2  ;;  %v3767_v47 = vmul.f32 %v3527_v2, %v3527_v2 }
 0x4f7   : > { %3591 = vst [vmem:[%s6656_s29 + $0x98] sm:$0xff] %v3527_v2 }
 0x4f8   : > { %v3691_v13 = vadd.f32 %v3690_v4, %v3660_v5  ;;  %v3798_v56 = vadd.f32 %v3797_v59, %v3767_v47 }
 0x4f9   : > { %v2986_v54 = vpop.f32.mrf.mxu2  ;;  %v3148_v55 = vpop.f32.mrf.mxu3 }
 0x4fa   : > { %v3042_v19 = vadd.f32 %v2986_v54, %v6528_v40  ;;  %v3204_v25 = vadd.f32 %v3148_v55, %v6530_v3  ;;  %v3313_v50 = vpop.f32.mrf.mxu0 }
 0x4fc   : > { %v3366_v22 = vadd.f32 %v3310_v30, %v3042_v19  ;;  %v3528_v32 = vadd.f32 %v3472_v6, %v3204_v25 }
 0x4fd   : > { %v3475_v17 = vpop.f32.mrf.mxu1 }
 0x4fe   : > { %3560 = vst [vmem:[%s6650_s24 + $0xa0] sm:$0xff] %v3366_v22  ;;  %v3623_v0 = vadd.f32 %v3622_v53, %v3366_v22  ;;  %v3661_v38 = vmul.f32 %v3366_v22, %v3366_v22  ;;  %v3730_v51 = vadd.f32 %v3729_v26, %v3528_v32  ;;  %v3768_v42 = vmul.f32 %v3528_v32, %v3528_v32 }
 0x4ff   : > { %3592 = vst [vmem:[%s6656_s29 + $0xa0] sm:$0xff] %v3528_v32 }
 0x500   : > { %v3692_v9 = vadd.f32 %v3691_v13, %v3661_v38  ;;  %v3799_v8 = vadd.f32 %v3798_v56, %v3768_v42 }
 0x501   : > { %v2989_v48 = vpop.f32.mrf.mxu2  ;;  %v3151_v14 = vpop.f32.mrf.mxu3 }
 0x502   : > { %v3043_v40 = vadd.f32 %v2989_v48, %v6538_v28  ;;  %v3205_v3 = vadd.f32 %v3151_v14, %v6540_v63  ;;  %v3316_v57 = vpop.f32.mrf.mxu0 }
 0x504   : > { %v3367_v49 = vadd.f32 %v3313_v50, %v3043_v40  ;;  %v3529_v31 = vadd.f32 %v3475_v17, %v3205_v3 }
 0x505   : > { %v3478_v18 = vpop.f32.mrf.mxu1 }
 0x506   : > { %3561 = vst [vmem:[%s6650_s24 + $0xa8] sm:$0xff] %v3367_v49  ;;  %v3624_v12 = vadd.f32 %v3623_v0, %v3367_v49  ;;  %v3662_v16 = vmul.f32 %v3367_v49, %v3367_v49  ;;  %v3731_v52 = vadd.f32 %v3730_v51, %v3529_v31  ;;  %v3769_v39 = vmul.f32 %v3529_v31, %v3529_v31 }
 0x507   : > { %3593 = vst [vmem:[%s6656_s29 + $0xa8] sm:$0xff] %v3529_v31 }
 0x508   : > { %v3693_v46 = vadd.f32 %v3692_v9, %v3662_v16  ;;  %v3800_v41 = vadd.f32 %v3799_v8, %v3769_v39 }
 0x509   : > { %v2992_v33 = vpop.f32.mrf.mxu2  ;;  %v3154_v20 = vpop.f32.mrf.mxu3 }
 0x50a   : > { %v3044_v28 = vadd.f32 %v2992_v33, %v6548_v58  ;;  %v3206_v63 = vadd.f32 %v3154_v20, %v6550_v21  ;;  %v3319_v4 = vpop.f32.mrf.mxu0 }
 0x50c   : > { %v3368_v59 = vadd.f32 %v3316_v57, %v3044_v28  ;;  %v3530_v43 = vadd.f32 %v3478_v18, %v3206_v63 }
 0x50d   : > { %v3481_v24 = vpop.f32.mrf.mxu1 }
 0x50e   : > { %3562 = vst [vmem:[%s6650_s24 + $0xb0] sm:$0xff] %v3368_v59  ;;  %v3625_v36 = vadd.f32 %v3624_v12, %v3368_v59  ;;  %v3663_v1 = vmul.f32 %v3368_v59, %v3368_v59  ;;  %v3732_v30 = vadd.f32 %v3731_v52, %v3530_v43  ;;  %v3770_v10 = vmul.f32 %v3530_v43, %v3530_v43 }
 0x50f   : > { %3594 = vst [vmem:[%s6656_s29 + $0xb0] sm:$0xff] %v3530_v43 }
 0x510   : > { %v3694_v2 = vadd.f32 %v3693_v46, %v3663_v1  ;;  %v3801_v6 = vadd.f32 %v3800_v41, %v3770_v10 }
 0x511   : > { %v2995_v53 = vpop.f32.mrf.mxu2  ;;  %v3157_v5 = vpop.f32.mrf.mxu3 }
 0x512   : > { %v3045_v58 = vadd.f32 %v2995_v53, %v6558_v35  ;;  %v3207_v21 = vadd.f32 %v3157_v5, %v6560_v29  ;;  %v3322_v26 = vpop.f32.mrf.mxu0 }
 0x514   : > { %v3369_v47 = vadd.f32 %v3319_v4, %v3045_v58  ;;  %v3531_v13 = vadd.f32 %v3481_v24, %v3207_v21 }
 0x515   : > { %v3484_v56 = vpop.f32.mrf.mxu1 }
 0x516   : > { %3563 = vst [vmem:[%s6650_s24 + $0xb8] sm:$0xff] %v3369_v47  ;;  %v3626_v54 = vadd.f32 %v3625_v36, %v3369_v47  ;;  %v3664_v55 = vmul.f32 %v3369_v47, %v3369_v47  ;;  %v3733_v19 = vadd.f32 %v3732_v30, %v3531_v13  ;;  %v3771_v25 = vmul.f32 %v3531_v13, %v3531_v13 }
 0x517   : > { %3595 = vst [vmem:[%s6656_s29 + $0xb8] sm:$0xff] %v3531_v13 }
 0x518   : > { %v3695_v50 = vadd.f32 %v3694_v2, %v3664_v55  ;;  %v3802_v22 = vadd.f32 %v3801_v6, %v3771_v25 }
 0x519   : > { %v2998_v32 = vpop.f32.mrf.mxu2  ;;  %v3160_v17 = vpop.f32.mrf.mxu3 }
 0x51a   : > { %v3046_v35 = vadd.f32 %v2998_v32, %v6568_v15  ;;  %v3208_v29 = vadd.f32 %v3160_v17, %v6570_v7  ;;  %v3325_v0 = vpop.f32.mrf.mxu0 }
 0x51c   : > { %v3370_v38 = vadd.f32 %v3322_v26, %v3046_v35  ;;  %v3532_v51 = vadd.f32 %v3484_v56, %v3208_v29 }
 0x51d   : > { %v3487_v42 = vpop.f32.mrf.mxu1 }
 0x51e   : > { %3564 = vst [vmem:[%s6650_s24 + $0xc0] sm:$0xff] %v3370_v38  ;;  %v3627_v9 = vadd.f32 %v3626_v54, %v3370_v38  ;;  %v3665_v8 = vmul.f32 %v3370_v38, %v3370_v38  ;;  %v3734_v48 = vadd.f32 %v3733_v19, %v3532_v51  ;;  %v3772_v14 = vmul.f32 %v3532_v51, %v3532_v51 }
 0x51f   : > { %3596 = vst [vmem:[%s6656_s29 + $0xc0] sm:$0xff] %v3532_v51 }
 0x520   : > { %v3696_v40 = vadd.f32 %v3695_v50, %v3665_v8  ;;  %v3803_v3 = vadd.f32 %v3802_v22, %v3772_v14 }
 0x521   : > { %v3001_v57 = vpop.f32.mrf.mxu2  ;;  %v3163_v49 = vpop.f32.mrf.mxu3 }
 0x522   : > { %v3047_v15 = vadd.f32 %v3001_v57, %v6578_v44  ;;  %v3209_v7 = vadd.f32 %v3163_v49, %v6580_v45  ;;  %v3328_v31 = vpop.f32.mrf.mxu0 }
 0x524   : > { %v3371_v18 = vadd.f32 %v3325_v0, %v3047_v15  ;;  %v3533_v12 = vadd.f32 %v3487_v42, %v3209_v7 }
 0x525   : > { %v3490_v16 = vpop.f32.mrf.mxu1 }
 0x526   : > { %3565 = vst [vmem:[%s6650_s24 + $0xc8] sm:$0xff] %v3371_v18  ;;  %v3628_v52 = vadd.f32 %v3627_v9, %v3371_v18  ;;  %v3666_v39 = vmul.f32 %v3371_v18, %v3371_v18  ;;  %v3735_v46 = vadd.f32 %v3734_v48, %v3533_v12  ;;  %v3773_v41 = vmul.f32 %v3533_v12, %v3533_v12 }
 0x527   : > { %3597 = vst [vmem:[%s6656_s29 + $0xc8] sm:$0xff] %v3533_v12 }
 0x528   : > { %v3697_v33 = vadd.f32 %v3696_v40, %v3666_v39  ;;  %v3804_v20 = vadd.f32 %v3803_v3, %v3773_v41  ;;  %v7671_v39 = vld [vmem:[#allocation87_spill] sm:$0xff] }
 0x529   : > { %v3004_v28 = vpop.f32.mrf.mxu2  ;;  %v3166_v63 = vpop.f32.mrf.mxu3 }
 0x52a   : > { %v3048_v44 = vadd.f32 %v3004_v28, %v6588_v37  ;;  %v3210_v45 = vadd.f32 %v3166_v63, %v6590_v11  ;;  %v3331_v4 = vpop.f32.mrf.mxu0 }
 0x52c   : > { %v3372_v59 = vadd.f32 %v3328_v31, %v3048_v44  ;;  %v3534_v43 = vadd.f32 %v3490_v16, %v3210_v45 }
 0x52d   : > { %v3493_v24 = vpop.f32.mrf.mxu1 }
 0x52e   : > { %3566 = vst [vmem:[%s6650_s24 + $0xd0] sm:$0xff] %v3372_v59  ;;  %v3629_v36 = vadd.f32 %v3628_v52, %v3372_v59  ;;  %v3667_v1 = vmul.f32 %v3372_v59, %v3372_v59  ;;  %v3736_v30 = vadd.f32 %v3735_v46, %v3534_v43  ;;  %v3774_v10 = vmul.f32 %v3534_v43, %v3534_v43  ;;  %v7672_v46 = vld [vmem:[#allocation81_spill] sm:$0xff] }
 0x52f   : > { %3598 = vst [vmem:[%s6656_s29 + $0xd0] sm:$0xff] %v3534_v43 }
 0x530   : > { %v3698_v2 = vadd.f32 %v3697_v33, %v3667_v1  ;;  %v3805_v6 = vadd.f32 %v3804_v20, %v3774_v10 }
 0x531   : > { %v3007_v53 = vpop.f32.mrf.mxu2  ;;  %v3169_v5 = vpop.f32.mrf.mxu3 }
 0x532   : > { %v3049_v37 = vadd.f32 %v3007_v53, %v6598_v23  ;;  %v3211_v11 = vadd.f32 %v3169_v5, %v6600_v62  ;;  %v3334_v58 = vpop.f32.mrf.mxu0 }
 0x534   : > { %v3373_v21 = vadd.f32 %v3331_v4, %v3049_v37  ;;  %v3535_v26 = vadd.f32 %v3493_v24, %v3211_v11 }
 0x535   : > { %v3496_v47 = vpop.f32.mrf.mxu1 }
 0x536   : > { %3567 = vst [vmem:[%s6650_s24 + $0xd8] sm:$0xff] %v3373_v21  ;;  %v3630_v13 = vadd.f32 %v3629_v36, %v3373_v21  ;;  %v3668_v56 = vmul.f32 %v3373_v21, %v3373_v21  ;;  %v3737_v54 = vadd.f32 %v3736_v30, %v3535_v26  ;;  %v3775_v55 = vmul.f32 %v3535_v26, %v3535_v26  ;;  %v7673_v30 = vld [vmem:[#allocation160_spill] sm:$0xff] }
 0x537   : > { %3599 = vst [vmem:[%s6656_s29 + $0xd8] sm:$0xff] %v3535_v26 }
 0x538   : > { %v3699_v19 = vadd.f32 %v3698_v2, %v3668_v56  ;;  %v3806_v25 = vadd.f32 %v3805_v6, %v3775_v55  ;;  %v7674_v2 = vld [vmem:[#allocation91_spill] sm:$0xff] }
 0x539   : > { %v3010_v50 = vpop.f32.mrf.mxu2  ;;  %v3172_v22 = vpop.f32.mrf.mxu3 }
 0x53a   : > { %v3050_v23 = vadd.f32 %v3010_v50, %v6608_v61  ;;  %v3212_v62 = vadd.f32 %v3172_v22, %v6610_v27  ;;  %v3337_v35 = vpop.f32.mrf.mxu0 }
 0x53c   : > { %v3374_v32 = vadd.f32 %v3334_v58, %v3050_v23  ;;  %v3536_v17 = vadd.f32 %v3496_v47, %v3212_v62 }
 0x53d   : > { %v3499_v29 = vpop.f32.mrf.mxu1 }
 0x53e   : > { %3568 = vst [vmem:[%s6650_s24 + $0xe0] sm:$0xff] %v3374_v32  ;;  %v3631_v0 = vadd.f32 %v3630_v13, %v3374_v32  ;;  %v3669_v38 = vmul.f32 %v3374_v32, %v3374_v32  ;;  %v3738_v51 = vadd.f32 %v3737_v54, %v3536_v17  ;;  %v3776_v42 = vmul.f32 %v3536_v17, %v3536_v17 }
 0x53f   : > { %3600 = vst [vmem:[%s6656_s29 + $0xe0] sm:$0xff] %v3536_v17 }
 0x540   : > { %v3700_v9 = vadd.f32 %v3699_v19, %v3669_v38  ;;  %v3807_v8 = vadd.f32 %v3806_v25, %v3776_v42 }
 0x541   : > { %v3013_v48 = vpop.f32.mrf.mxu2  ;;  %v3175_v14 = vpop.f32.mrf.mxu3 }
 0x542   : > { %v3051_v61 = vadd.f32 %v3013_v48, %v6618_v34  ;;  %v3213_v27 = vadd.f32 %v3175_v14, %v6620_v60  ;;  %v3340_v31 = vpop.f32.mrf.mxu0 }
 0x544   : > { %v3375_v40 = vadd.f32 %v3337_v35, %v3051_v61  ;;  %v3537_v3 = vadd.f32 %v3499_v29, %v3213_v27 }
 0x545   : > { %v3502_v18 = vpop.f32.mrf.mxu1 }
 0x546   : > { %3569 = vst [vmem:[%s6650_s24 + $0xe8] sm:$0xff] %v3375_v40  ;;  %v3632_v57 = vadd.f32 %v3631_v0, %v3375_v40  ;;  %v3670_v49 = vmul.f32 %v3375_v40, %v3375_v40  ;;  %v3739_v15 = vadd.f32 %v3738_v51, %v3537_v3  ;;  %v3777_v7 = vmul.f32 %v3537_v3, %v3537_v3 }
 0x547   : > { %3601 = vst [vmem:[%s6656_s29 + $0xe8] sm:$0xff] %v3537_v3 }
 0x548   : > { %v3701_v12 = vadd.f32 %v3700_v9, %v3670_v49  ;;  %v3808_v16 = vadd.f32 %v3807_v8, %v3777_v7 }
 0x549   : > { %v3016_v52 = vpop.f32.mrf.mxu2  ;;  %v3178_v34 = vpop.f32.mrf.mxu3 }
 0x54a   : > { %v3052_v60 = vadd.f32 %v3016_v52, %v7671_v39  ;;  %v3214_v41 = vadd.f32 %v3178_v34, %v7672_v46  ;;  %v3343_v43 = vpop.f32.mrf.mxu0 }
 0x54c   : > { %v3376_v33 = vadd.f32 %v3340_v31, %v3052_v60  ;;  %v3538_v20 = vadd.f32 %v3502_v18, %v3214_v41 }
 0x54d   : > { %v3505_v24 = vpop.f32.mrf.mxu1 }
 0x54e   : > { %3570 = vst [vmem:[%s6650_s24 + $0xf0] sm:$0xff] %v3376_v33  ;;  %v3633_v28 = vadd.f32 %v3632_v57, %v3376_v33  ;;  %v3671_v63 = vmul.f32 %v3376_v33, %v3376_v33  ;;  %v3740_v44 = vadd.f32 %v3739_v15, %v3538_v20  ;;  %v3778_v45 = vmul.f32 %v3538_v20, %v3538_v20 }
 0x54f   : > { %3602 = vst [vmem:[%s6656_s29 + $0xf0] sm:$0xff] %v3538_v20 }
 0x550   : > { %v3702_v4 = vadd.f32 %v3701_v12, %v3671_v63  ;;  %v3809_v59 = vadd.f32 %v3808_v16, %v3778_v45 }
 0x551   : > { %v3019_v36 = vpop.f32.mrf.mxu2  ;;  %v3181_v1 = vpop.f32.mrf.mxu3 }
 0x552   : > { %v3053_v10 = vadd.f32 %v3019_v36, %v7673_v30  ;;  %v3215_v6 = vadd.f32 %v3181_v1, %v7674_v2 }
 0x554   : > { %v3377_v53 = vadd.f32 %v3343_v43, %v3053_v10  ;;  %v3539_v5 = vadd.f32 %v3505_v24, %v3215_v6 }
 0x556   : > { %3571 = vst [vmem:[%s6650_s24 + $0xf8] sm:$0xff] %v3377_v53  ;;  %v3634_v37 = vadd.f32 %v3633_v28, %v3377_v53  ;;  %v3672_v11 = vmul.f32 %v3377_v53, %v3377_v53  ;;  %v3741_v58 = vadd.f32 %v3740_v44, %v3539_v5  ;;  %v3779_v21 = vmul.f32 %v3539_v5, %v3539_v5  ;;  %s4468_s24 = scalar_lea.hbm %s4467_s11, 256 }
 0x557   : > { %3603 = vst [vmem:[%s6656_s29 + $0xf8] sm:$0xff] %v3539_v5  ;;  %p4469_p1 = scmp.ne.s32.totalorder %s4467_s11, %s4468_s24  ;;  %p4474_p2 = scmp.lt.s32.totalorder %s4472_s15, %s4468_s24 }
 0x558   : > { %v3635_v26 = vrot.slane %v3634_v37, 4  ;;  %v3703_v47 = vadd.f32 %v3702_v4, %v3672_v11  ;;  %v3742_v13 = vrot.slane %v3741_v58, 4  ;;  %v3810_v56 = vadd.f32 %v3809_v59, %v3779_v21 }
 0x559   : > { %p4470_p4 = pnand %p4469_p1, %p4695_p3  ;;  %p4475_p9 = por %p4474_p2, %p4473_p11 }
 0x55b   : > { %p4471_p8 = pneg %p4470_p4 }
 0x55d   : > { %p4476_p10 = pnand %p4475_p9, %p4471_p8 }
 0x55f   : > { %4479 = shalt.err (!%p4476_p10)
}
 0x560   : > { %s4589_s12 = smov 128   ;;  %s4590_s6 = smov 8  }
 0x561   : > { %4291 = dma.vmem_to_hbm [thread:$0]  (%p4695_p3), %s6848_s8, 4096, %s6850_s27, %s6860_s30, %s4589_s12, %s4589_s12, %s4590_s6  }
 0x562   : > { %s3825_s7 = scalar_lea.sflag [#allocation4], %s4728_s9  ;;  %s4494_s13 = sshra.s32 %s6855_s10, 4  ;;  %s4495_s13 = int_to_ptr.hbm [resolvable:$true] %s4494_s13 }
 0x563   : > { %s4496_s16 = scalar_lea.hbm %s4495_s13, 256  ;;  %s4500_s15 = scalar_lea.hbm %s6931_s3, 512 }
 0x564   : > { %p4497_p12 = scmp.ne.s32.totalorder %s4495_s13, %s4496_s16  ;;  %p4501_p5 = scmp.lt.s32.totalorder %s4495_s13, %s6931_s3 }
 0x565   : > { %p4502_p7 = scmp.lt.s32.totalorder %s4500_s15, %s4496_s16 }
 0x566   : > { %p4498_p13 = pnand %p4497_p12, %p4695_p3 }
 0x567   : > { %p4503_p1 = por %p4502_p7, %p4501_p5 }
 0x568   : > { %p4499_p0 = pneg %p4498_p13 }
 0x56a   : > { %p4504_p4 = pnand %p4503_p1, %p4499_p0 }
 0x56c   : > { %4507 = shalt.err (!%p4504_p4)
}
 0x56d   : > { %4290 = dma.vmem_to_hbm [thread:$0]  (%p4695_p3), %s6853_s23, 4096, %s6855_s10, %s3825_s7, %s4589_s12, %s4589_s12, %s4590_s6   ;;  %v3636_v54 = vadd.f32 %v3635_v26, %v3634_v37  ;;  %v3704_v55 = vrot.slane %v3703_v47, 4  ;;  %v3743_v19 = vadd.f32 %v3742_v13, %v3741_v58  ;;  %v3811_v25 = vrot.slane %v3810_v56, 4 }
 0x56e   : > { %s4050_s8 = sshll.u32 %s4728_s9, 2  ;;  %s4242_s27 = sshll.u32 %s4642_s22, 2  ;;  %vm3821_vm4 = vcmask 1041408  }
 0x56f   : > { %v3637_v50 = vrot.slane %v3636_v54, 2  ;;  %v3705_v22 = vadd.f32 %v3704_v55, %v3703_v47  ;;  %v3744_v23 = vrot.slane %v3743_v19, 2  ;;  %v3812_v62 = vadd.f32 %v3811_v25, %v3810_v56  ;;  %s3879_s12 = scalar_lea.hbm %s6933_s5, %s4242_s27  ;;  %s295_s6 = scalar_lea.vmem [#allocation11], %s4050_s8 }
 0x570   : > { %s3881_s7 = sshll.u32 %s295_s6, 4  ;;  %s3883_s13 = sshll.u32 %s3879_s12, 4  ;;  %s3882_s7 = int_to_ptr.vmem [resolvable:$true] %s3881_s7  ;;  %s3884_s13 = int_to_ptr.hbm [resolvable:$true] %s3883_s13 }
 0x571   : > { %v3638_v32 = vadd.f32 %v3637_v50, %v3636_v54  ;;  %v3706_v17 = vrot.slane %v3705_v22, 2  ;;  %v3745_v35 = vadd.f32 %v3744_v23, %v3743_v19  ;;  %v3813_v29 = vrot.slane %v3812_v62, 2  ;;  %s4522_s22 = sshra.s32 %s3884_s13, 4  ;;  %s4528_s24 = scalar_lea.hbm %s6933_s5, 8  ;;  %s4523_s22 = int_to_ptr.hbm [resolvable:$true] %s4522_s22 }
 0x572   : > { %s4524_s9 = scalar_lea.hbm %s4523_s22, 4  ;;  %p4529_p9 = scmp.lt.s32.totalorder %s4523_s22, %s6933_s5 }
 0x573   : > { %v3639_v0 = vrot.slane %v3638_v32, 1  ;;  %v3707_v38 = vadd.f32 %v3706_v17, %v3705_v22  ;;  %v3746_v51 = vrot.slane %v3745_v35, 1  ;;  %v3814_v42 = vadd.f32 %v3813_v29, %v3812_v62  ;;  %p4525_p8 = scmp.ne.s32.totalorder %s4523_s22, %s4524_s9  ;;  %p4530_p10 = scmp.lt.s32.totalorder %s4528_s24, %s4524_s9 }
 0x575   : > { %v3708_v9 = vrot.slane %v3707_v38, 1  ;;  %v3815_v8 = vrot.slane %v3814_v42, 1  ;;  %v3640_v48 = vadd.f32 %v3639_v0, %v3638_v32  ;;  %v3747_v61 = vadd.f32 %v3746_v51, %v3745_v35  ;;  %p4526_p11 = pnand %p4525_p8, %p4695_p3  ;;  %p4531_p12 = por %p4530_p10, %p4529_p9 }
 0x577   : > { %v3709_v14 = vadd.f32 %v3708_v9, %v3707_v38  ;;  %v3816_v27 = vadd.f32 %v3815_v8, %v3814_v42  ;;  %p4527_p2 = pneg %p4526_p11 }
 0x579   : > { %v3710_v40 = vsel %vm360_vm0, %v3640_v48, %v3709_v14  ;;  %v3817_v3 = vsel %vm360_vm0, %v3747_v61, %v3816_v27  ;;  %p4532_p13 = pnand %p4531_p12, %p4527_p2 }
 0x57a   : > { %v3819_v57 = vrot.slane %v3817_v3, 6 }
 0x57c   : > { %v3822_v49 = vsel %vm3821_vm4, %v3710_v40, %v3819_v57 }
 0x57d   : > { %3823 = vst [vmem:[%s295_s6] sm:$0xf] %v3822_v49 }
 0x57e   : > { %4535 = shalt.err (!%p4532_p13)
}
 0x57f   : > { %4292 = dma.vmem_to_hbm [thread:$0]  (%p4695_p3), %s3882_s7, 64, %s3884_s13, %s6860_s30  }
 0x580 PF: > { %s3895_s29 = sand.u32 1, %s4570_s18   ;;  %p7675_p0 = scmp.ge.s32.totalorder %s4582_s21, 2 }
 0x581   : > { %s3896_s8 = scalar_lea.sflag [#allocation4], %s3895_s29 }
 0x582   : > { %p4308_p5 = pnand %p7675_p0, %p4658_p6 }
 0x584   : > { %p4309_p7 = pneg %p4308_p5 }
 0x586   : > { %4561 = dma.done.wait (%p4309_p7), %s3896_s8, 4096  }
 0x587   : > { %4563 = vsyncadd (%p4309_p7), %s3896_s8, 4294963200  ;;  %s7676_s27 = sadd.s32 4294967294, %s4582_s21  }
 0x588   : > { %s3905_s23 = sand.u32 1, %s7676_s27  }
 0x589   : > { %s3906_s10 = scalar_lea.sflag [#allocation10], %s3905_s23 }
 0x58a   : > { %4565 = dma.done.wait (%p4309_p7), %s3906_s10, 4160  }
 0x58b   : > { %4567 = vsyncadd (%p4309_p7), %s3906_s10, 4294963136  ;;  %p23_p3 = scmp.ge.s32.totalorder %s4685_s14, 4   ;;  %s7677_s18 = smov %s4574_s19 }
 0x58c   : > { %s7678_s19 = smov %s4578_s20  ;;  %s7679_s20 = smov %s4701_s26 }
 0x58d   : > { %s7680_s21 = smov %s4685_s14  ;;  %25 = sbr.rel (!%p23_p3) target bundleno = 8 (0x8), region = 133 }
 0x592   :  { %3922 = vsyncpa [#allocation3], 1 }
 0x593   :  { %3924 = vsyncpa [#allocation3 + $0x1], 1 }
 0x594   :  { %3925 = vsyncpa [#allocation6], 1 }
 0x595   :  { %3926 = vsyncpa [#allocation4], 1 }
 0x596   :  { %3928 = vsyncpa [#allocation4 + $0x1], 1 }
 0x597   :  { %3929 = vsyncpa [#allocation10], 1 }
 0x598   :  { %3931 = vsyncpa [#allocation10 + $0x1], 1 }

</bundles_post_ra>
